<compile_context>
chip_gen: v7x
topology: tpu7x:2x2x1
jax: 0.10.0
libtpu: 0.0.40
codegen_flags: <defaults>
</compile_context>

<pallas_src>
import functools
import math

import numpy as np
import jax
import jax.numpy as jnp
from jax.experimental import pallas as pl
from jax.experimental.pallas import tpu as pltpu  # noqa: F401  (TPU tuning hooks)

RMS_EPS = 1e-4        # RunningMeanStd epsilon
LN_EPS = 1e-5         # nn.LayerNorm default eps
LEAKY_SLOPE = 0.01    # nn.LeakyReLU default negative_slope
NEG_INF = -1e30       # additive mask value for cross-batch attention entries
LANES = 128           # slab lane width (lane-dense packing)

# Perf/accuracy knobs (see perf review):
#  * MXU_WEIGHT_DTYPE: set to jnp.bfloat16 on v6e/v7x for full-rate MXU and half the
#    weight-DMA bytes (activations are cast only at the MXU boundary; LN/softmax/
#    residual/elementwise math stays f32 — required on v5e which has no bf16 VPU/EUP).
#    Default f32 to stay numerically closest to the PyTorch reference.
#  * SOFTMAX_APPROX_RECIP: pl.reciprocal(approx=True) rides the otherwise-idle EUP
#    slot but adds ~2^-12 relative error per softmax row; set False for bit-closeness.
MXU_WEIGHT_DTYPE = jnp.float32
SOFTMAX_APPROX_RECIP = True


# ----------------------------- in-kernel helpers ----------------------------

def _leaky_relu(x):
    return jnp.where(x >= 0, x, LEAKY_SLOPE * x)


def _erf(x):
    # Abramowitz & Stegun 7.1.26 polynomial erf (|err| < 1.5e-7); built only from
    # exp / mul / add / select so it lowers cleanly on Mosaic.
    a1, a2, a3, a4, a5 = (0.254829592, -0.284496736, 1.421413741,
                          -1.453152027, 1.061405429)
    p = 0.3275911
    sgn = jnp.where(x >= 0, 1.0, -1.0)
    ax = jnp.abs(x)
    t = 1.0 / (1.0 + p * ax)
    poly = ((((a5 * t + a4) * t + a3) * t + a2) * t + a1) * t
    return sgn * (1.0 - poly * jnp.exp(-ax * ax))


def _gelu_exact(x):
    # nn.GELU() default is the exact erf-based GELU.
    return 0.5 * x * (1.0 + _erf(x * (1.0 / math.sqrt(2.0))))


def _layer_norm(x, w, b):
    mu = jnp.mean(x, axis=-1, keepdims=True)
    var = jnp.mean(jnp.square(x - mu), axis=-1, keepdims=True)
    return (x - mu) * jax.lax.rsqrt(var + LN_EPS) * w + b


# ------------------------------- fused kernel -------------------------------

def _fused_forward_kernel(x_ref, t_ref, vec_ref, w_ref, o_ref, *,
                          batch, seq, din, hidden, num_heads, num_layers,
                          pad_out, voff, woff):
    f32 = jnp.float32
    n_x = batch * seq
    rows = n_x + batch
    head_dim = hidden // num_heads
    scale = 1.0 / math.sqrt(head_dim)

    # Static-offset slices into the two packed slabs (view + load, no DMA).
    def vrow(name, width):
        r = voff[name]
        return vec_ref[r:r + 1, 0:width]                      # (1, width) f32

    def wmat(name, nrows, ncols):
        r = woff[name]
        return w_ref[r:r + nrows, 0:ncols]                    # (nrows, ncols)

    def mxu(a, w):
        # Cast activations to the weight dtype at the MXU boundary only
        # (no-op when MXU_WEIGHT_DTYPE == float32); accumulate in f32.
        return jnp.dot(a.astype(w.dtype), w, preferred_element_type=f32)

    # ---- 1) RunningMeanStd.normalize + proj MLP over all B*S x tokens ----
    x = x_ref[...]                                            # (B*S, Din)
    mean = vrow("rms_mean", din)
    var = vrow("rms_var", din)
    xn = jnp.clip((x - mean) * jax.lax.rsqrt(var + RMS_EPS), -5.0, 5.0)
    h = _leaky_relu(mxu(xn, wmat("pw1", din, hidden)) + vrow("pb1", hidden))
    xh = mxu(h, wmat("pw2", hidden, hidden)) + vrow("pb2", hidden)

    # ---- 2) temb MLP (first Linear has in_features = 1 -> broadcast multiply) ----
    ht = _leaky_relu(t_ref[...] * vrow("tw1", hidden) + vrow("tb1", hidden))  # (B, H)
    th = mxu(ht, wmat("tw2", hidden, hidden)) + vrow("tb2", hidden)

    # ---- 3) Token slab (x tokens batch-major, then t tokens) + PE (from slab) ----
    pe = vec_ref[voff["pe"]:voff["pe"] + rows, 0:hidden]
    xt = jnp.concatenate([xh, th], axis=0) + pe               # (R, H)

    # Additive block-diagonal batch mask, generated in-kernel (no (R,R) DMA).
    # batch id: x-token row i -> i // seq ; t-token row i -> i - B*S.
    ri = jax.lax.broadcasted_iota(jnp.int32, (rows, rows), 0)
    ci = jax.lax.broadcasted_iota(jnp.int32, (rows, rows), 1)

    def batch_id(idx):
        xf = jnp.floor((idx.astype(f32) + 0.5) * (1.0 / seq))   # float floor-div
        tf = (idx - n_x).astype(f32)
        return jnp.where(idx < n_x, xf, tf)

    mask = jnp.where(batch_id(ri) == batch_id(ci), 0.0, NEG_INF)

    # ---- 4) Post-norm TransformerEncoderLayers (dropout = 0, exact GELU) ----
    for li in range(num_layers):
        # Fused QKV: one (R,H)@(H,3H) MXU matmul per layer.
        qkv = mxu(xt, wmat(f"l{li}_wqkv", hidden, 3 * hidden)) \
            + vrow(f"l{li}_bqkv", 3 * hidden)                  # (R, 3H)

        # Per-head attention with the out-projection reduction folded into the
        # accumulation (no (NH,R,H) intermediate, no separate head reduction).
        attn = jnp.zeros((rows, hidden), f32)
        wo_base = woff[f"l{li}_wo"]
        for hh in range(num_heads):
            lo = hh * head_dim
            q = qkv[:, lo:lo + head_dim]                                   # (R, HD)
            k = qkv[:, hidden + lo:hidden + lo + head_dim]
            v = qkv[:, 2 * hidden + lo:2 * hidden + lo + head_dim]
            s = jax.lax.dot_general(q, k, (((1,), (1,)), ((), ())),
                                    preferred_element_type=f32) * scale + mask
            s = s - jnp.max(s, axis=-1, keepdims=True)
            p = jnp.exp(s)
            p = p * pl.reciprocal(jnp.sum(p, axis=-1, keepdims=True),
                                  approx=SOFTMAX_APPROX_RECIP)
            oh = jnp.dot(p, v, preferred_element_type=f32)                 # (R, HD)
            wo_h = w_ref[wo_base + lo:wo_base + lo + head_dim, 0:hidden]   # (HD, H)
            attn = attn + mxu(oh, wo_h)

        x1 = _layer_norm(xt + attn + vrow(f"l{li}_bo", hidden),
                         vrow(f"l{li}_ln1w", hidden), vrow(f"l{li}_ln1b", hidden))
        ff = _gelu_exact(mxu(x1, wmat(f"l{li}_wff1", hidden, hidden))
                         + vrow(f"l{li}_bff1", hidden))
        ff = mxu(ff, wmat(f"l{li}_wff2", hidden, hidden)) + vrow(f"l{li}_bff2", hidden)
        xt = _layer_norm(x1 + ff, vrow(f"l{li}_ln2w", hidden), vrow(f"l{li}_ln2b", hidden))

    # ---- 5) deproj: only the B*S x-token rows are returned by the module ----
    xo = xt[0:n_x, :]
    d = _leaky_relu(mxu(xo, wmat("dw1", hidden, hidden)) + vrow("db1", hidden))
    o_ref[...] = mxu(d, wmat("dw2", hidden, pad_out)) + vrow("db2", pad_out)


# ------------------------------ pallas wrapper -------------------------------

def _rep_spec(shape):
    """Full-array block (no grid)."""
    nd = len(shape)
    return pl.BlockSpec(shape, lambda *_, _nd=nd: (0,) * _nd)


def _round_up(n, m):
    return ((n + m - 1) // m) * m


def _positional_encoding(seq1, hidden):
    # Matches the reference exactly: base 1000, exponent arange(H//2) * (-log(1000)/H).
    idxs = np.arange(seq1, dtype=np.float32)
    div = np.exp(np.arange(hidden // 2, dtype=np.float32)
                 * (-np.log(1000.0) / hidden))
    ang = idxs[:, None] * div[None, :]
    pe = np.zeros((seq1, hidden), np.float32)
    pe[:, 0::2] = np.sin(ang)
    pe[:, 1::2] = np.cos(ang)
    return pe


def pack_params(params, *, num_heads, bsz, seq):
    """One-time host-side packing of every parameter into two lane-dense slabs.

    Returns a dict with the two slabs, the static row offsets of every tensor,
    and the shape metadata the kernel is specialized for.
    """
    din = int(np.shape(params["rms_mean"])[-1])
    hidden = int(np.shape(params["proj"][2])[1])
    num_layers = len(params["layers"])
    assert hidden % num_heads == 0
    assert hidden % 2 == 0, "positional encoding assumes even hidden_size"
    n_x, rows = bsz * seq, bsz * (seq + 1)
    pad_out = _round_up(din, LANES)

    voff, vrows = {}, []
    woff, wrows = {}, []

    def add_vec(name, a):                       # rows of the (.,128) f32 vector slab
        a = np.asarray(a, np.float32)
        a = a.reshape(-1, a.shape[-1])
        assert a.shape[-1] <= LANES
        voff[name] = sum(b.shape[0] for b in vrows)
        blk = np.zeros((a.shape[0], LANES), np.float32)
        blk[:, :a.shape[1]] = a
        vrows.append(blk)

    def align_vec(mult=8):
        pad = (-sum(b.shape[0] for b in vrows)) % mult
        if pad:
            vrows.append(np.zeros((pad, LANES), np.float32))

    def add_w(name, a):                         # sublane-stacked weight slab blocks
        a = np.asarray(a, np.float32)
        assert a.shape[-1] <= LANES
        woff[name] = sum(b.shape[0] for b in wrows)
        blk = np.zeros((_round_up(a.shape[0], 8), LANES), np.float32)
        blk[:a.shape[0], :a.shape[1]] = a
        wrows.append(blk)

    pw1, pb1, pw2, pb2 = params["proj"]
    tw1, tb1, tw2, tb2 = params["temb"]
    dw1, db1, dw2, db2 = params["deproj"]

    add_vec("rms_mean", params["rms_mean"]); add_vec("rms_var", params["rms_var"])
    add_vec("pb1", pb1); add_vec("pb2", pb2)
    add_vec("tw1", tw1); add_vec("tb1", tb1); add_vec("tb2", tb2)
    add_vec("db1", db1)
    add_vec("db2", np.pad(np.asarray(db2, np.float32), ((0, 0), (0, pad_out - din))))

    add_w("pw1", pw1); add_w("pw2", pw2); add_w("tw2", tw2)
    add_w("dw1", dw1)
    add_w("dw2", np.pad(np.asarray(dw2, np.float32), ((0, 0), (0, pad_out - din))))

    for li, (wqkv, bqkv, wo, bo, ln1w, ln1b, ln2w, ln2b,
             wff1, bff1, wff2, bff2) in enumerate(params["layers"]):
        add_vec(f"l{li}_bqkv", bqkv); add_vec(f"l{li}_bo", bo)
        add_vec(f"l{li}_ln1w", ln1w); add_vec(f"l{li}_ln1b", ln1b)
        add_vec(f"l{li}_bff1", bff1); add_vec(f"l{li}_bff2", bff2)
        add_vec(f"l{li}_ln2w", ln2w); add_vec(f"l{li}_ln2b", ln2b)
        add_w(f"l{li}_wqkv", wqkv)      # (H, 3H): fused QKV weight
        add_w(f"l{li}_wo", wo)          # (H, H): rows h*HD..(h+1)*HD are head h
        add_w(f"l{li}_wff1", wff1); add_w(f"l{li}_wff2", wff2)

    # Positional-encoding rows in the kernel's slab row order:
    # x tokens batch-major (positions 0..S-1), then the B t tokens (position S).
    pe = _positional_encoding(seq + 1, hidden)
    pe_full = np.concatenate([np.tile(pe[:seq], (bsz, 1)),
                              np.tile(pe[seq:seq + 1], (bsz, 1))], axis=0)
    assert pe_full.shape == (rows, hidden)
    align_vec(8)                         # 8-aligned sublane offset for the PE block
    add_vec("pe", pe_full)

    vec_slab = jnp.asarray(np.concatenate(vrows, axis=0))
    w_slab = jnp.asarray(np.concatenate(wrows, axis=0)).astype(MXU_WEIGHT_DTYPE)

    meta = dict(bsz=bsz, seq=seq, din=din, hidden=hidden, num_heads=num_heads,
                num_layers=num_layers, pad_out=pad_out, n_x=n_x)
    return {"vec": vec_slab, "w": w_slab, "voff": voff, "woff": woff, "meta": meta}


def transformer_denoiser_forward(packed, x, t):
    meta = packed["meta"]
    bsz, seq, din = meta["bsz"], meta["seq"], meta["din"]
    assert x.shape == (bsz, seq, din), "packed params are specialized to (bsz, seq, din)"
    n_x = meta["n_x"]
    pad_out = meta["pad_out"]

    kernel = functools.partial(
        _fused_forward_kernel,
        batch=bsz, seq=seq, din=din, hidden=meta["hidden"],
        num_heads=meta["num_heads"], num_layers=meta["num_layers"],
        pad_out=pad_out, voff=packed["voff"], woff=packed["woff"])

    args = (x.reshape(n_x, din).astype(jnp.float32),
            t.reshape(bsz, 1).astype(jnp.float32),
            packed["vec"], packed["w"])

    out = pl.pallas_call(
        kernel,
        out_shape=jax.ShapeDtypeStruct((n_x, pad_out), jnp.float32),
        in_specs=[_rep_spec(a.shape) for a in args],
        out_specs=_rep_spec((n_x, pad_out)),
    )(*args)

    # Rows [0, B*S) are exactly deproj(encoder(xt))[:, :-1], flattened batch-major.
    return out[:, :din].reshape(bsz, seq, din)


# ------------------------------ params & main --------------------------------

def init_params(key, input_size, hidden_size, num_layers):
    def linear(k, dinp, dout, wscale=0.1, bscale=0.01):
        kw, kb = jax.random.split(k)
        w = jax.random.normal(kw, (dinp, dout), jnp.float32) * wscale
        b = jax.random.normal(kb, (1, dout), jnp.float32) * bscale
        return w, b

    keys = jax.random.split(key, 6 + num_layers)
    params = {
        "rms_mean": jnp.zeros((1, input_size), jnp.float32),
        "rms_var": jnp.ones((1, input_size), jnp.float32),
        "proj": linear(keys[0], input_size, hidden_size)
                + linear(keys[1], hidden_size, hidden_size),
        "temb": linear(keys[2], 1, hidden_size)
                + linear(keys[3], hidden_size, hidden_size),
        "deproj": linear(keys[4], hidden_size, hidden_size)
                  + linear(keys[5], hidden_size, input_size),
    }
    layers = []
    for li in range(num_layers):
        k = jax.random.split(keys[6 + li], 4)
        wqkv, bqkv = linear(k[0], hidden_size, 3 * hidden_size)
        wo, bo = linear(k[1], hidden_size, hidden_size)
        wff1, bff1 = linear(k[2], hidden_size, hidden_size)  # dim_feedforward == hidden
        wff2, bff2 = linear(k[3], hidden_size, hidden_size)
        ones = jnp.ones((1, hidden_size), jnp.float32)
        zeros = jnp.zeros((1, hidden_size), jnp.float32)
        layers.append((wqkv, bqkv, wo, bo, ones, zeros, ones, zeros,
                       wff1, bff1, wff2, bff2))
    params["layers"] = layers
    return params


if __name__ == "__main__":
    input_size, hidden_size, num_heads, num_layers = 4, 32, 4, 2
    bsz, seq = 2, 8

    key = jax.random.PRNGKey(0)
    kp, kx, kt = jax.random.split(key, 3)
    params = init_params(kp, input_size, hidden_size, num_layers)
    packed = pack_params(params, num_heads=num_heads, bsz=bsz, seq=seq)

    x = jax.random.normal(kx, (bsz, seq, input_size), jnp.float32)
    t = jax.random.uniform(kt, (bsz, 1, 1), jnp.float32)

    out = transformer_denoiser_forward(packed, x, t)
    out = jax.block_until_ready(out)
    assert out.shape == (bsz, seq, input_size) and out.dtype == jnp.float32
    assert bool(jnp.all(jnp.isfinite(out)))
    print("KERNEL_OK")
</pallas_src>

<mosaic_0001>
module attributes {stable_mosaic.version = 11 : i64} {
  func.func @_fused_forward_kernel(%arg0: memref<16x4xf32, #tpu.memory_space<vmem>>, %arg1: memref<2x1xf32, #tpu.memory_space<vmem>>, %arg2: memref<50x128xf32, #tpu.memory_space<vmem>>, %arg3: memref<392x128xf32, #tpu.memory_space<vmem>>, %arg4: memref<16x128xf32, #tpu.memory_space<vmem>>) attributes {dimension_semantics = [], scalar_prefetch = 0 : i64, scratch_operands = 0 : i64, tpu.core_type = #tpu.core_type<tc>} {
    %c0 = arith.constant 0 : index
    %c0_0 = arith.constant 0 : index
    %0 = vector.load %arg0[%c0, %c0_0] : memref<16x4xf32, #tpu.memory_space<vmem>>, vector<16x4xf32>
    %c0_1 = arith.constant 0 : index
    %c0_2 = arith.constant 0 : index
    %1 = vector.load %arg2[%c0_1, %c0_2] : memref<50x128xf32, #tpu.memory_space<vmem>>, vector<1x4xf32>
    %c1 = arith.constant 1 : index
    %c0_3 = arith.constant 0 : index
    %2 = vector.load %arg2[%c1, %c0_3] : memref<50x128xf32, #tpu.memory_space<vmem>>, vector<1x4xf32>
    %3 = vector.broadcast %1 : vector<1x4xf32> to vector<16x4xf32>
    %4 = arith.subf %0, %3 : vector<16x4xf32>
    %cst = arith.constant 9.99999974E-5 : f32
    %5 = vector.broadcast %cst : f32 to vector<1x4xf32>
    %6 = arith.addf %2, %5 : vector<1x4xf32>
    %7 = math.rsqrt %6 : vector<1x4xf32>
    %8 = vector.broadcast %7 : vector<1x4xf32> to vector<16x4xf32>
    %9 = arith.mulf %4, %8 : vector<16x4xf32>
    %cst_4 = arith.constant -5.000000e+00 : f32
    %cst_5 = arith.constant 5.000000e+00 : f32
    %10 = vector.broadcast %cst_4 : f32 to vector<16x4xf32>
    %11 = arith.maximumf %10, %9 : vector<16x4xf32>
    %12 = vector.broadcast %cst_5 : f32 to vector<16x4xf32>
    %13 = arith.minimumf %12, %11 : vector<16x4xf32>
    %c0_6 = arith.constant 0 : index
    %c0_7 = arith.constant 0 : index
    %14 = vector.load %arg3[%c0_6, %c0_7] : memref<392x128xf32, #tpu.memory_space<vmem>>, vector<4x32xf32>
    %cst_8 = arith.constant dense<0.000000e+00> : vector<16x32xf32>
    %15 = tpu.matmul %13, %14, %cst_8 {dimension_numbers = #tpu.dot_dimension_numbers<[1], [0], [0], [1], [0, 0, 1, 1], [], []>} : vector<16x4xf32>, vector<4x32xf32>, vector<16x32xf32> -> vector<16x32xf32>
    %c2 = arith.constant 2 : index
    %c0_9 = arith.constant 0 : index
    %16 = vector.load %arg2[%c2, %c0_9] : memref<50x128xf32, #tpu.memory_space<vmem>>, vector<1x32xf32>
    %17 = vector.broadcast %16 : vector<1x32xf32> to vector<16x32xf32>
    %18 = arith.addf %15, %17 : vector<16x32xf32>
    %cst_10 = arith.constant 0.000000e+00 : f32
    %19 = vector.broadcast %cst_10 : f32 to vector<16x32xf32>
    %20 = arith.cmpf oge, %18, %19 : vector<16x32xf32>
    %cst_11 = arith.constant 0.00999999977 : f32
    %21 = vector.broadcast %cst_11 : f32 to vector<16x32xf32>
    %22 = arith.mulf %21, %18 : vector<16x32xf32>
    %23 = arith.select %20, %18, %22 : vector<16x32xi1>, vector<16x32xf32>
    %c8 = arith.constant 8 : index
    %c0_12 = arith.constant 0 : index
    %24 = vector.load %arg3[%c8, %c0_12] : memref<392x128xf32, #tpu.memory_space<vmem>>, vector<32x32xf32>
    %cst_13 = arith.constant dense<0.000000e+00> : vector<16x32xf32>
    %25 = tpu.matmul %23, %24, %cst_13 {dimension_numbers = #tpu.dot_dimension_numbers<[1], [0], [0], [1], [0, 0, 1, 1], [], []>} : vector<16x32xf32>, vector<32x32xf32>, vector<16x32xf32> -> vector<16x32xf32>
    %c3 = arith.constant 3 : index
    %c0_14 = arith.constant 0 : index
    %26 = vector.load %arg2[%c3, %c0_14] : memref<50x128xf32, #tpu.memory_space<vmem>>, vector<1x32xf32>
    %27 = vector.broadcast %26 : vector<1x32xf32> to vector<16x32xf32>
    %28 = arith.addf %25, %27 : vector<16x32xf32>
    %c0_15 = arith.constant 0 : index
    %c0_16 = arith.constant 0 : index
    %29 = vector.load %arg1[%c0_15, %c0_16] : memref<2x1xf32, #tpu.memory_space<vmem>>, vector<2x1xf32>
    %c4 = arith.constant 4 : index
    %c0_17 = arith.constant 0 : index
    %30 = vector.load %arg2[%c4, %c0_17] : memref<50x128xf32, #tpu.memory_space<vmem>>, vector<1x32xf32>
    %31 = vector.broadcast %29 : vector<2x1xf32> to vector<2x32xf32>
    %32 = vector.broadcast %30 : vector<1x32xf32> to vector<2x32xf32>
    %33 = arith.mulf %31, %32 : vector<2x32xf32>
    %c5 = arith.constant 5 : index
    %c0_18 = arith.constant 0 : index
    %34 = vector.load %arg2[%c5, %c0_18] : memref<50x128xf32, #tpu.memory_space<vmem>>, vector<1x32xf32>
    %35 = vector.broadcast %34 : vector<1x32xf32> to vector<2x32xf32>
    %36 = arith.addf %33, %35 : vector<2x32xf32>
    %cst_19 = arith.constant 0.000000e+00 : f32
    %37 = vector.broadcast %cst_19 : f32 to vector<2x32xf32>
    %38 = arith.cmpf oge, %36, %37 : vector<2x32xf32>
    %cst_20 = arith.constant 0.00999999977 : f32
    %39 = vector.broadcast %cst_20 : f32 to vector<2x32xf32>
    %40 = arith.mulf %39, %36 : vector<2x32xf32>
    %41 = arith.select %38, %36, %40 : vector<2x32xi1>, vector<2x32xf32>
    %c40 = arith.constant 40 : index
    %c0_21 = arith.constant 0 : index
    %42 = vector.load %arg3[%c40, %c0_21] : memref<392x128xf32, #tpu.memory_space<vmem>>, vector<32x32xf32>
    %cst_22 = arith.constant dense<0.000000e+00> : vector<2x32xf32>
    %43 = tpu.matmul %41, %42, %cst_22 {dimension_numbers = #tpu.dot_dimension_numbers<[1], [0], [0], [1], [0, 0, 1, 1], [], []>} : vector<2x32xf32>, vector<32x32xf32>, vector<2x32xf32> -> vector<2x32xf32>
    %c6 = arith.constant 6 : index
    %c0_23 = arith.constant 0 : index
    %44 = vector.load %arg2[%c6, %c0_23] : memref<50x128xf32, #tpu.memory_space<vmem>>, vector<1x32xf32>
    %45 = vector.broadcast %44 : vector<1x32xf32> to vector<2x32xf32>
    %46 = arith.addf %43, %45 : vector<2x32xf32>
    %c32 = arith.constant 32 : index
    %c0_24 = arith.constant 0 : index
    %47 = vector.load %arg2[%c32, %c0_24] : memref<50x128xf32, #tpu.memory_space<vmem>>, vector<18x32xf32>
    %48 = tpu.concatenate %28, %46 in 0 : vector<16x32xf32>, vector<2x32xf32> -> vector<18x32xf32>
    %49 = arith.addf %48, %47 : vector<18x32xf32>
    %50 = tpu.iota {dimensions = array<i32: 0>} : vector<18x18xi32>
    %51 = tpu.iota {dimensions = array<i32: 1>} : vector<18x18xi32>
    %52 = arith.sitofp %50 : vector<18x18xi32> to vector<18x18xf32>
    %cst_25 = arith.constant 5.000000e-01 : f32
    %53 = vector.broadcast %cst_25 : f32 to vector<18x18xf32>
    %54 = arith.addf %52, %53 : vector<18x18xf32>
    %cst_26 = arith.constant 1.250000e-01 : f32
    %55 = vector.broadcast %cst_26 : f32 to vector<18x18xf32>
    %56 = arith.mulf %54, %55 : vector<18x18xf32>
    %57 = math.floor %56 : vector<18x18xf32>
    %c16_i32 = arith.constant 16 : i32
    %58 = vector.broadcast %c16_i32 : i32 to vector<18x18xi32>
    %59 = arith.subi %50, %58 : vector<18x18xi32>
    %60 = arith.sitofp %59 : vector<18x18xi32> to vector<18x18xf32>
    %c16_i32_27 = arith.constant 16 : i32
    %61 = vector.broadcast %c16_i32_27 : i32 to vector<18x18xi32>
    %62 = arith.cmpi slt, %50, %61 : vector<18x18xi32>
    %63 = arith.select %62, %57, %60 : vector<18x18xi1>, vector<18x18xf32>
    %64 = arith.sitofp %51 : vector<18x18xi32> to vector<18x18xf32>
    %cst_28 = arith.constant 5.000000e-01 : f32
    %65 = vector.broadcast %cst_28 : f32 to vector<18x18xf32>
    %66 = arith.addf %64, %65 : vector<18x18xf32>
    %cst_29 = arith.constant 1.250000e-01 : f32
    %67 = vector.broadcast %cst_29 : f32 to vector<18x18xf32>
    %68 = arith.mulf %66, %67 : vector<18x18xf32>
    %69 = math.floor %68 : vector<18x18xf32>
    %c16_i32_30 = arith.constant 16 : i32
    %70 = vector.broadcast %c16_i32_30 : i32 to vector<18x18xi32>
    %71 = arith.subi %51, %70 : vector<18x18xi32>
    %72 = arith.sitofp %71 : vector<18x18xi32> to vector<18x18xf32>
    %c16_i32_31 = arith.constant 16 : i32
    %73 = vector.broadcast %c16_i32_31 : i32 to vector<18x18xi32>
    %74 = arith.cmpi slt, %51, %73 : vector<18x18xi32>
    %75 = arith.select %74, %69, %72 : vector<18x18xi1>, vector<18x18xf32>
    %76 = arith.cmpf oeq, %63, %75 : vector<18x18xf32>
    %cst_32 = arith.constant 0.000000e+00 : f32
    %cst_33 = arith.constant -1.000000e+30 : f32
    %77 = vector.broadcast %cst_32 : f32 to vector<18x18xf32>
    %78 = vector.broadcast %cst_33 : f32 to vector<18x18xf32>
    %79 = arith.select %76, %77, %78 : vector<18x18xi1>, vector<18x18xf32>
    %c136 = arith.constant 136 : index
    %c0_34 = arith.constant 0 : index
    %80 = vector.load %arg3[%c136, %c0_34] : memref<392x128xf32, #tpu.memory_space<vmem>>, vector<32x96xf32>
    %cst_35 = arith.constant dense<0.000000e+00> : vector<18x96xf32>
    %81 = tpu.matmul %49, %80, %cst_35 {dimension_numbers = #tpu.dot_dimension_numbers<[1], [0], [0], [1], [0, 0, 1, 1], [], []>} : vector<18x32xf32>, vector<32x96xf32>, vector<18x96xf32> -> vector<18x96xf32>
    %c9 = arith.constant 9 : index
    %c0_36 = arith.constant 0 : index
    %82 = vector.load %arg2[%c9, %c0_36] : memref<50x128xf32, #tpu.memory_space<vmem>>, vector<1x96xf32>
    %83 = vector.broadcast %82 : vector<1x96xf32> to vector<18x96xf32>
    %84 = arith.addf %81, %83 : vector<18x96xf32>
    %cst_37 = arith.constant 0.000000e+00 : f32
    %85 = vector.broadcast %cst_37 : f32 to vector<18x32xf32>
    %86 = vector.extract_strided_slice %84 {offsets = [0, 0], sizes = [18, 8], strides = [1, 1]} : vector<18x96xf32> to vector<18x8xf32>
    %87 = vector.extract_strided_slice %84 {offsets = [0, 32], sizes = [18, 8], strides = [1, 1]} : vector<18x96xf32> to vector<18x8xf32>
    %88 = vector.extract_strided_slice %84 {offsets = [0, 64], sizes = [18, 8], strides = [1, 1]} : vector<18x96xf32> to vector<18x8xf32>
    %cst_38 = arith.constant dense<0.000000e+00> : vector<18x18xf32>
    %89 = tpu.matmul %86, %87, %cst_38 {dimension_numbers = #tpu.dot_dimension_numbers<[1], [1], [0], [0], [0, 0, 1, 0], [], []>} : vector<18x8xf32>, vector<18x8xf32>, vector<18x18xf32> -> vector<18x18xf32>
    %cst_39 = arith.constant 0.353553385 : f32
    %90 = vector.broadcast %cst_39 : f32 to vector<18x18xf32>
    %91 = arith.mulf %89, %90 : vector<18x18xf32>
    %92 = arith.addf %91, %79 : vector<18x18xf32>
    %cst_40 = arith.constant dense<0xFF800000> : vector<18xf32>
    %93 = vector.multi_reduction <maximumf>, %92, %cst_40 [1] : vector<18x18xf32> to vector<18xf32>
    %94 = vector.shape_cast %93 : vector<18xf32> to vector<18x1xf32>
    %95 = vector.broadcast %94 : vector<18x1xf32> to vector<18x18xf32>
    %96 = arith.subf %92, %95 : vector<18x18xf32>
    %97 = math.exp %96 : vector<18x18xf32>
    %cst_41 = arith.constant dense<0.000000e+00> : vector<18xf32>
    %98 = vector.multi_reduction <add>, %97, %cst_41 [1] : vector<18x18xf32> to vector<18xf32>
    %99 = vector.shape_cast %98 : vector<18xf32> to vector<18x1xf32>
    %100 = tpu.reciprocal %99 {approx = true} : vector<18x1xf32> -> vector<18x1xf32>
    %101 = vector.broadcast %100 : vector<18x1xf32> to vector<18x18xf32>
    %102 = arith.mulf %97, %101 : vector<18x18xf32>
    %cst_42 = arith.constant dense<0.000000e+00> : vector<18x8xf32>
    %103 = tpu.matmul %102, %88, %cst_42 {dimension_numbers = #tpu.dot_dimension_numbers<[1], [0], [0], [1], [0, 0, 1, 1], [], []>} : vector<18x18xf32>, vector<18x8xf32>, vector<18x8xf32> -> vector<18x8xf32>
    %c168 = arith.constant 168 : index
    %c0_43 = arith.constant 0 : index
    %104 = vector.load %arg3[%c168, %c0_43] : memref<392x128xf32, #tpu.memory_space<vmem>>, vector<8x32xf32>
    %cst_44 = arith.constant dense<0.000000e+00> : vector<18x32xf32>
    %105 = tpu.matmul %103, %104, %cst_44 {dimension_numbers = #tpu.dot_dimension_numbers<[1], [0], [0], [1], [0, 0, 1, 1], [], []>} : vector<18x8xf32>, vector<8x32xf32>, vector<18x32xf32> -> vector<18x32xf32>
    %106 = arith.addf %85, %105 : vector<18x32xf32>
    %107 = vector.extract_strided_slice %84 {offsets = [0, 8], sizes = [18, 8], strides = [1, 1]} : vector<18x96xf32> to vector<18x8xf32>
    %108 = vector.extract_strided_slice %84 {offsets = [0, 40], sizes = [18, 8], strides = [1, 1]} : vector<18x96xf32> to vector<18x8xf32>
    %109 = vector.extract_strided_slice %84 {offsets = [0, 72], sizes = [18, 8], strides = [1, 1]} : vector<18x96xf32> to vector<18x8xf32>
    %cst_45 = arith.constant dense<0.000000e+00> : vector<18x18xf32>
    %110 = tpu.matmul %107, %108, %cst_45 {dimension_numbers = #tpu.dot_dimension_numbers<[1], [1], [0], [0], [0, 0, 1, 0], [], []>} : vector<18x8xf32>, vector<18x8xf32>, vector<18x18xf32> -> vector<18x18xf32>
    %cst_46 = arith.constant 0.353553385 : f32
    %111 = vector.broadcast %cst_46 : f32 to vector<18x18xf32>
    %112 = arith.mulf %110, %111 : vector<18x18xf32>
    %113 = arith.addf %112, %79 : vector<18x18xf32>
    %cst_47 = arith.constant dense<0xFF800000> : vector<18xf32>
    %114 = vector.multi_reduction <maximumf>, %113, %cst_47 [1] : vector<18x18xf32> to vector<18xf32>
    %115 = vector.shape_cast %114 : vector<18xf32> to vector<18x1xf32>
    %116 = vector.broadcast %115 : vector<18x1xf32> to vector<18x18xf32>
    %117 = arith.subf %113, %116 : vector<18x18xf32>
    %118 = math.exp %117 : vector<18x18xf32>
    %cst_48 = arith.constant dense<0.000000e+00> : vector<18xf32>
    %119 = vector.multi_reduction <add>, %118, %cst_48 [1] : vector<18x18xf32> to vector<18xf32>
    %120 = vector.shape_cast %119 : vector<18xf32> to vector<18x1xf32>
    %121 = tpu.reciprocal %120 {approx = true} : vector<18x1xf32> -> vector<18x1xf32>
    %122 = vector.broadcast %121 : vector<18x1xf32> to vector<18x18xf32>
    %123 = arith.mulf %118, %122 : vector<18x18xf32>
    %cst_49 = arith.constant dense<0.000000e+00> : vector<18x8xf32>
    %124 = tpu.matmul %123, %109, %cst_49 {dimension_numbers = #tpu.dot_dimension_numbers<[1], [0], [0], [1], [0, 0, 1, 1], [], []>} : vector<18x18xf32>, vector<18x8xf32>, vector<18x8xf32> -> vector<18x8xf32>
    %c176 = arith.constant 176 : index
    %c0_50 = arith.constant 0 : index
    %125 = vector.load %arg3[%c176, %c0_50] : memref<392x128xf32, #tpu.memory_space<vmem>>, vector<8x32xf32>
    %cst_51 = arith.constant dense<0.000000e+00> : vector<18x32xf32>
    %126 = tpu.matmul %124, %125, %cst_51 {dimension_numbers = #tpu.dot_dimension_numbers<[1], [0], [0], [1], [0, 0, 1, 1], [], []>} : vector<18x8xf32>, vector<8x32xf32>, vector<18x32xf32> -> vector<18x32xf32>
    %127 = arith.addf %106, %126 : vector<18x32xf32>
    %128 = vector.extract_strided_slice %84 {offsets = [0, 16], sizes = [18, 8], strides = [1, 1]} : vector<18x96xf32> to vector<18x8xf32>
    %129 = vector.extract_strided_slice %84 {offsets = [0, 48], sizes = [18, 8], strides = [1, 1]} : vector<18x96xf32> to vector<18x8xf32>
    %130 = vector.extract_strided_slice %84 {offsets = [0, 80], sizes = [18, 8], strides = [1, 1]} : vector<18x96xf32> to vector<18x8xf32>
    %cst_52 = arith.constant dense<0.000000e+00> : vector<18x18xf32>
    %131 = tpu.matmul %128, %129, %cst_52 {dimension_numbers = #tpu.dot_dimension_numbers<[1], [1], [0], [0], [0, 0, 1, 0], [], []>} : vector<18x8xf32>, vector<18x8xf32>, vector<18x18xf32> -> vector<18x18xf32>
    %cst_53 = arith.constant 0.353553385 : f32
    %132 = vector.broadcast %cst_53 : f32 to vector<18x18xf32>
    %133 = arith.mulf %131, %132 : vector<18x18xf32>
    %134 = arith.addf %133, %79 : vector<18x18xf32>
    %cst_54 = arith.constant dense<0xFF800000> : vector<18xf32>
    %135 = vector.multi_reduction <maximumf>, %134, %cst_54 [1] : vector<18x18xf32> to vector<18xf32>
    %136 = vector.shape_cast %135 : vector<18xf32> to vector<18x1xf32>
    %137 = vector.broadcast %136 : vector<18x1xf32> to vector<18x18xf32>
    %138 = arith.subf %134, %137 : vector<18x18xf32>
    %139 = math.exp %138 : vector<18x18xf32>
    %cst_55 = arith.constant dense<0.000000e+00> : vector<18xf32>
    %140 = vector.multi_reduction <add>, %139, %cst_55 [1] : vector<18x18xf32> to vector<18xf32>
    %141 = vector.shape_cast %140 : vector<18xf32> to vector<18x1xf32>
    %142 = tpu.reciprocal %141 {approx = true} : vector<18x1xf32> -> vector<18x1xf32>
    %143 = vector.broadcast %142 : vector<18x1xf32> to vector<18x18xf32>
    %144 = arith.mulf %139, %143 : vector<18x18xf32>
    %cst_56 = arith.constant dense<0.000000e+00> : vector<18x8xf32>
    %145 = tpu.matmul %144, %130, %cst_56 {dimension_numbers = #tpu.dot_dimension_numbers<[1], [0], [0], [1], [0, 0, 1, 1], [], []>} : vector<18x18xf32>, vector<18x8xf32>, vector<18x8xf32> -> vector<18x8xf32>
    %c184 = arith.constant 184 : index
    %c0_57 = arith.constant 0 : index
    %146 = vector.load %arg3[%c184, %c0_57] : memref<392x128xf32, #tpu.memory_space<vmem>>, vector<8x32xf32>
    %cst_58 = arith.constant dense<0.000000e+00> : vector<18x32xf32>
    %147 = tpu.matmul %145, %146, %cst_58 {dimension_numbers = #tpu.dot_dimension_numbers<[1], [0], [0], [1], [0, 0, 1, 1], [], []>} : vector<18x8xf32>, vector<8x32xf32>, vector<18x32xf32> -> vector<18x32xf32>
    %148 = arith.addf %127, %147 : vector<18x32xf32>
    %149 = vector.extract_strided_slice %84 {offsets = [0, 24], sizes = [18, 8], strides = [1, 1]} : vector<18x96xf32> to vector<18x8xf32>
    %150 = vector.extract_strided_slice %84 {offsets = [0, 56], sizes = [18, 8], strides = [1, 1]} : vector<18x96xf32> to vector<18x8xf32>
    %151 = vector.extract_strided_slice %84 {offsets = [0, 88], sizes = [18, 8], strides = [1, 1]} : vector<18x96xf32> to vector<18x8xf32>
    %cst_59 = arith.constant dense<0.000000e+00> : vector<18x18xf32>
    %152 = tpu.matmul %149, %150, %cst_59 {dimension_numbers = #tpu.dot_dimension_numbers<[1], [1], [0], [0], [0, 0, 1, 0], [], []>} : vector<18x8xf32>, vector<18x8xf32>, vector<18x18xf32> -> vector<18x18xf32>
    %cst_60 = arith.constant 0.353553385 : f32
    %153 = vector.broadcast %cst_60 : f32 to vector<18x18xf32>
    %154 = arith.mulf %152, %153 : vector<18x18xf32>
    %155 = arith.addf %154, %79 : vector<18x18xf32>
    %cst_61 = arith.constant dense<0xFF800000> : vector<18xf32>
    %156 = vector.multi_reduction <maximumf>, %155, %cst_61 [1] : vector<18x18xf32> to vector<18xf32>
    %157 = vector.shape_cast %156 : vector<18xf32> to vector<18x1xf32>
    %158 = vector.broadcast %157 : vector<18x1xf32> to vector<18x18xf32>
    %159 = arith.subf %155, %158 : vector<18x18xf32>
    %160 = math.exp %159 : vector<18x18xf32>
    %cst_62 = arith.constant dense<0.000000e+00> : vector<18xf32>
    %161 = vector.multi_reduction <add>, %160, %cst_62 [1] : vector<18x18xf32> to vector<18xf32>
    %162 = vector.shape_cast %161 : vector<18xf32> to vector<18x1xf32>
    %163 = tpu.reciprocal %162 {approx = true} : vector<18x1xf32> -> vector<18x1xf32>
    %164 = vector.broadcast %163 : vector<18x1xf32> to vector<18x18xf32>
    %165 = arith.mulf %160, %164 : vector<18x18xf32>
    %cst_63 = arith.constant dense<0.000000e+00> : vector<18x8xf32>
    %166 = tpu.matmul %165, %151, %cst_63 {dimension_numbers = #tpu.dot_dimension_numbers<[1], [0], [0], [1], [0, 0, 1, 1], [], []>} : vector<18x18xf32>, vector<18x8xf32>, vector<18x8xf32> -> vector<18x8xf32>
    %c192 = arith.constant 192 : index
    %c0_64 = arith.constant 0 : index
    %167 = vector.load %arg3[%c192, %c0_64] : memref<392x128xf32, #tpu.memory_space<vmem>>, vector<8x32xf32>
    %cst_65 = arith.constant dense<0.000000e+00> : vector<18x32xf32>
    %168 = tpu.matmul %166, %167, %cst_65 {dimension_numbers = #tpu.dot_dimension_numbers<[1], [0], [0], [1], [0, 0, 1, 1], [], []>} : vector<18x8xf32>, vector<8x32xf32>, vector<18x32xf32> -> vector<18x32xf32>
    %169 = arith.addf %148, %168 : vector<18x32xf32>
    %170 = arith.addf %49, %169 : vector<18x32xf32>
    %c10 = arith.constant 10 : index
    %c0_66 = arith.constant 0 : index
    %171 = vector.load %arg2[%c10, %c0_66] : memref<50x128xf32, #tpu.memory_space<vmem>>, vector<1x32xf32>
    %172 = vector.broadcast %171 : vector<1x32xf32> to vector<18x32xf32>
    %173 = arith.addf %170, %172 : vector<18x32xf32>
    %c11 = arith.constant 11 : index
    %c0_67 = arith.constant 0 : index
    %174 = vector.load %arg2[%c11, %c0_67] : memref<50x128xf32, #tpu.memory_space<vmem>>, vector<1x32xf32>
    %c12 = arith.constant 12 : index
    %c0_68 = arith.constant 0 : index
    %175 = vector.load %arg2[%c12, %c0_68] : memref<50x128xf32, #tpu.memory_space<vmem>>, vector<1x32xf32>
    %cst_69 = arith.constant dense<0.000000e+00> : vector<18xf32>
    %176 = vector.multi_reduction <add>, %173, %cst_69 [1] : vector<18x32xf32> to vector<18xf32>
    %177 = vector.shape_cast %176 : vector<18xf32> to vector<18x1xf32>
    %cst_70 = arith.constant 3.200000e+01 : f32
    %178 = vector.broadcast %cst_70 : f32 to vector<18x1xf32>
    %179 = arith.divf %177, %178 : vector<18x1xf32>
    %180 = vector.broadcast %179 : vector<18x1xf32> to vector<18x32xf32>
    %181 = arith.subf %173, %180 : vector<18x32xf32>
    %182 = arith.mulf %181, %181 : vector<18x32xf32>
    %cst_71 = arith.constant dense<0.000000e+00> : vector<18xf32>
    %183 = vector.multi_reduction <add>, %182, %cst_71 [1] : vector<18x32xf32> to vector<18xf32>
    %184 = vector.shape_cast %183 : vector<18xf32> to vector<18x1xf32>
    %cst_72 = arith.constant 3.200000e+01 : f32
    %185 = vector.broadcast %cst_72 : f32 to vector<18x1xf32>
    %186 = arith.divf %184, %185 : vector<18x1xf32>
    %187 = vector.broadcast %179 : vector<18x1xf32> to vector<18x32xf32>
    %188 = arith.subf %173, %187 : vector<18x32xf32>
    %cst_73 = arith.constant 9.99999974E-6 : f32
    %189 = vector.broadcast %cst_73 : f32 to vector<18x1xf32>
    %190 = arith.addf %186, %189 : vector<18x1xf32>
    %191 = math.rsqrt %190 : vector<18x1xf32>
    %192 = vector.broadcast %191 : vector<18x1xf32> to vector<18x32xf32>
    %193 = arith.mulf %188, %192 : vector<18x32xf32>
    %194 = vector.broadcast %174 : vector<1x32xf32> to vector<18x32xf32>
    %195 = arith.mulf %193, %194 : vector<18x32xf32>
    %196 = vector.broadcast %175 : vector<1x32xf32> to vector<18x32xf32>
    %197 = arith.addf %195, %196 : vector<18x32xf32>
    %c200 = arith.constant 200 : index
    %c0_74 = arith.constant 0 : index
    %198 = vector.load %arg3[%c200, %c0_74] : memref<392x128xf32, #tpu.memory_space<vmem>>, vector<32x32xf32>
    %cst_75 = arith.constant dense<0.000000e+00> : vector<18x32xf32>
    %199 = tpu.matmul %197, %198, %cst_75 {dimension_numbers = #tpu.dot_dimension_numbers<[1], [0], [0], [1], [0, 0, 1, 1], [], []>} : vector<18x32xf32>, vector<32x32xf32>, vector<18x32xf32> -> vector<18x32xf32>
    %c13 = arith.constant 13 : index
    %c0_76 = arith.constant 0 : index
    %200 = vector.load %arg2[%c13, %c0_76] : memref<50x128xf32, #tpu.memory_space<vmem>>, vector<1x32xf32>
    %201 = vector.broadcast %200 : vector<1x32xf32> to vector<18x32xf32>
    %202 = arith.addf %199, %201 : vector<18x32xf32>
    %cst_77 = arith.constant 5.000000e-01 : f32
    %203 = vector.broadcast %cst_77 : f32 to vector<18x32xf32>
    %204 = arith.mulf %203, %202 : vector<18x32xf32>
    %cst_78 = arith.constant 0.707106769 : f32
    %205 = vector.broadcast %cst_78 : f32 to vector<18x32xf32>
    %206 = arith.mulf %202, %205 : vector<18x32xf32>
    %cst_79 = arith.constant 0.000000e+00 : f32
    %207 = vector.broadcast %cst_79 : f32 to vector<18x32xf32>
    %208 = arith.cmpf oge, %206, %207 : vector<18x32xf32>
    %cst_80 = arith.constant 1.000000e+00 : f32
    %cst_81 = arith.constant -1.000000e+00 : f32
    %209 = vector.broadcast %cst_80 : f32 to vector<18x32xf32>
    %210 = vector.broadcast %cst_81 : f32 to vector<18x32xf32>
    %211 = arith.select %208, %209, %210 : vector<18x32xi1>, vector<18x32xf32>
    %212 = math.absf %206 : vector<18x32xf32>
    %cst_82 = arith.constant 0.327591091 : f32
    %213 = vector.broadcast %cst_82 : f32 to vector<18x32xf32>
    %214 = arith.mulf %213, %212 : vector<18x32xf32>
    %cst_83 = arith.constant 1.000000e+00 : f32
    %215 = vector.broadcast %cst_83 : f32 to vector<18x32xf32>
    %216 = arith.addf %215, %214 : vector<18x32xf32>
    %cst_84 = arith.constant 1.000000e+00 : f32
    %217 = vector.broadcast %cst_84 : f32 to vector<18x32xf32>
    %218 = arith.divf %217, %216 : vector<18x32xf32>
    %cst_85 = arith.constant 1.06140542 : f32
    %219 = vector.broadcast %cst_85 : f32 to vector<18x32xf32>
    %220 = arith.mulf %219, %218 : vector<18x32xf32>
    %cst_86 = arith.constant -1.45315206 : f32
    %221 = vector.broadcast %cst_86 : f32 to vector<18x32xf32>
    %222 = arith.addf %220, %221 : vector<18x32xf32>
    %223 = arith.mulf %222, %218 : vector<18x32xf32>
    %cst_87 = arith.constant 1.42141378 : f32
    %224 = vector.broadcast %cst_87 : f32 to vector<18x32xf32>
    %225 = arith.addf %223, %224 : vector<18x32xf32>
    %226 = arith.mulf %225, %218 : vector<18x32xf32>
    %cst_88 = arith.constant -0.284496725 : f32
    %227 = vector.broadcast %cst_88 : f32 to vector<18x32xf32>
    %228 = arith.addf %226, %227 : vector<18x32xf32>
    %229 = arith.mulf %228, %218 : vector<18x32xf32>
    %cst_89 = arith.constant 0.254829586 : f32
    %230 = vector.broadcast %cst_89 : f32 to vector<18x32xf32>
    %231 = arith.addf %229, %230 : vector<18x32xf32>
    %232 = arith.mulf %231, %218 : vector<18x32xf32>
    %cst_90 = arith.constant 0.000000e+00 : f32
    %233 = vector.broadcast %cst_90 : f32 to vector<18x32xf32>
    %234 = arith.subf %233, %212 : vector<18x32xf32>
    %235 = arith.mulf %234, %212 : vector<18x32xf32>
    %236 = math.exp %235 : vector<18x32xf32>
    %237 = arith.mulf %232, %236 : vector<18x32xf32>
    %cst_91 = arith.constant 1.000000e+00 : f32
    %238 = vector.broadcast %cst_91 : f32 to vector<18x32xf32>
    %239 = arith.subf %238, %237 : vector<18x32xf32>
    %240 = arith.mulf %211, %239 : vector<18x32xf32>
    %cst_92 = arith.constant 1.000000e+00 : f32
    %241 = vector.broadcast %cst_92 : f32 to vector<18x32xf32>
    %242 = arith.addf %241, %240 : vector<18x32xf32>
    %243 = arith.mulf %204, %242 : vector<18x32xf32>
    %c232 = arith.constant 232 : index
    %c0_93 = arith.constant 0 : index
    %244 = vector.load %arg3[%c232, %c0_93] : memref<392x128xf32, #tpu.memory_space<vmem>>, vector<32x32xf32>
    %cst_94 = arith.constant dense<0.000000e+00> : vector<18x32xf32>
    %245 = tpu.matmul %243, %244, %cst_94 {dimension_numbers = #tpu.dot_dimension_numbers<[1], [0], [0], [1], [0, 0, 1, 1], [], []>} : vector<18x32xf32>, vector<32x32xf32>, vector<18x32xf32> -> vector<18x32xf32>
    %c14 = arith.constant 14 : index
    %c0_95 = arith.constant 0 : index
    %246 = vector.load %arg2[%c14, %c0_95] : memref<50x128xf32, #tpu.memory_space<vmem>>, vector<1x32xf32>
    %247 = vector.broadcast %246 : vector<1x32xf32> to vector<18x32xf32>
    %248 = arith.addf %245, %247 : vector<18x32xf32>
    %249 = arith.addf %197, %248 : vector<18x32xf32>
    %c15 = arith.constant 15 : index
    %c0_96 = arith.constant 0 : index
    %250 = vector.load %arg2[%c15, %c0_96] : memref<50x128xf32, #tpu.memory_space<vmem>>, vector<1x32xf32>
    %c16 = arith.constant 16 : index
    %c0_97 = arith.constant 0 : index
    %251 = vector.load %arg2[%c16, %c0_97] : memref<50x128xf32, #tpu.memory_space<vmem>>, vector<1x32xf32>
    %cst_98 = arith.constant dense<0.000000e+00> : vector<18xf32>
    %252 = vector.multi_reduction <add>, %249, %cst_98 [1] : vector<18x32xf32> to vector<18xf32>
    %253 = vector.shape_cast %252 : vector<18xf32> to vector<18x1xf32>
    %cst_99 = arith.constant 3.200000e+01 : f32
    %254 = vector.broadcast %cst_99 : f32 to vector<18x1xf32>
    %255 = arith.divf %253, %254 : vector<18x1xf32>
    %256 = vector.broadcast %255 : vector<18x1xf32> to vector<18x32xf32>
    %257 = arith.subf %249, %256 : vector<18x32xf32>
    %258 = arith.mulf %257, %257 : vector<18x32xf32>
    %cst_100 = arith.constant dense<0.000000e+00> : vector<18xf32>
    %259 = vector.multi_reduction <add>, %258, %cst_100 [1] : vector<18x32xf32> to vector<18xf32>
    %260 = vector.shape_cast %259 : vector<18xf32> to vector<18x1xf32>
    %cst_101 = arith.constant 3.200000e+01 : f32
    %261 = vector.broadcast %cst_101 : f32 to vector<18x1xf32>
    %262 = arith.divf %260, %261 : vector<18x1xf32>
    %263 = vector.broadcast %255 : vector<18x1xf32> to vector<18x32xf32>
    %264 = arith.subf %249, %263 : vector<18x32xf32>
    %cst_102 = arith.constant 9.99999974E-6 : f32
    %265 = vector.broadcast %cst_102 : f32 to vector<18x1xf32>
    %266 = arith.addf %262, %265 : vector<18x1xf32>
    %267 = math.rsqrt %266 : vector<18x1xf32>
    %268 = vector.broadcast %267 : vector<18x1xf32> to vector<18x32xf32>
    %269 = arith.mulf %264, %268 : vector<18x32xf32>
    %270 = vector.broadcast %250 : vector<1x32xf32> to vector<18x32xf32>
    %271 = arith.mulf %269, %270 : vector<18x32xf32>
    %272 = vector.broadcast %251 : vector<1x32xf32> to vector<18x32xf32>
    %273 = arith.addf %271, %272 : vector<18x32xf32>
    %c264 = arith.constant 264 : index
    %c0_103 = arith.constant 0 : index
    %274 = vector.load %arg3[%c264, %c0_103] : memref<392x128xf32, #tpu.memory_space<vmem>>, vector<32x96xf32>
    %cst_104 = arith.constant dense<0.000000e+00> : vector<18x96xf32>
    %275 = tpu.matmul %273, %274, %cst_104 {dimension_numbers = #tpu.dot_dimension_numbers<[1], [0], [0], [1], [0, 0, 1, 1], [], []>} : vector<18x32xf32>, vector<32x96xf32>, vector<18x96xf32> -> vector<18x96xf32>
    %c17 = arith.constant 17 : index
    %c0_105 = arith.constant 0 : index
    %276 = vector.load %arg2[%c17, %c0_105] : memref<50x128xf32, #tpu.memory_space<vmem>>, vector<1x96xf32>
    %277 = vector.broadcast %276 : vector<1x96xf32> to vector<18x96xf32>
    %278 = arith.addf %275, %277 : vector<18x96xf32>
    %cst_106 = arith.constant 0.000000e+00 : f32
    %279 = vector.broadcast %cst_106 : f32 to vector<18x32xf32>
    %280 = vector.extract_strided_slice %278 {offsets = [0, 0], sizes = [18, 8], strides = [1, 1]} : vector<18x96xf32> to vector<18x8xf32>
    %281 = vector.extract_strided_slice %278 {offsets = [0, 32], sizes = [18, 8], strides = [1, 1]} : vector<18x96xf32> to vector<18x8xf32>
    %282 = vector.extract_strided_slice %278 {offsets = [0, 64], sizes = [18, 8], strides = [1, 1]} : vector<18x96xf32> to vector<18x8xf32>
    %cst_107 = arith.constant dense<0.000000e+00> : vector<18x18xf32>
    %283 = tpu.matmul %280, %281, %cst_107 {dimension_numbers = #tpu.dot_dimension_numbers<[1], [1], [0], [0], [0, 0, 1, 0], [], []>} : vector<18x8xf32>, vector<18x8xf32>, vector<18x18xf32> -> vector<18x18xf32>
    %cst_108 = arith.constant 0.353553385 : f32
    %284 = vector.broadcast %cst_108 : f32 to vector<18x18xf32>
    %285 = arith.mulf %283, %284 : vector<18x18xf32>
    %286 = arith.addf %285, %79 : vector<18x18xf32>
    %cst_109 = arith.constant dense<0xFF800000> : vector<18xf32>
    %287 = vector.multi_reduction <maximumf>, %286, %cst_109 [1] : vector<18x18xf32> to vector<18xf32>
    %288 = vector.shape_cast %287 : vector<18xf32> to vector<18x1xf32>
    %289 = vector.broadcast %288 : vector<18x1xf32> to vector<18x18xf32>
    %290 = arith.subf %286, %289 : vector<18x18xf32>
    %291 = math.exp %290 : vector<18x18xf32>
    %cst_110 = arith.constant dense<0.000000e+00> : vector<18xf32>
    %292 = vector.multi_reduction <add>, %291, %cst_110 [1] : vector<18x18xf32> to vector<18xf32>
    %293 = vector.shape_cast %292 : vector<18xf32> to vector<18x1xf32>
    %294 = tpu.reciprocal %293 {approx = true} : vector<18x1xf32> -> vector<18x1xf32>
    %295 = vector.broadcast %294 : vector<18x1xf32> to vector<18x18xf32>
    %296 = arith.mulf %291, %295 : vector<18x18xf32>
    %cst_111 = arith.constant dense<0.000000e+00> : vector<18x8xf32>
    %297 = tpu.matmul %296, %282, %cst_111 {dimension_numbers = #tpu.dot_dimension_numbers<[1], [0], [0], [1], [0, 0, 1, 1], [], []>} : vector<18x18xf32>, vector<18x8xf32>, vector<18x8xf32> -> vector<18x8xf32>
    %c296 = arith.constant 296 : index
    %c0_112 = arith.constant 0 : index
    %298 = vector.load %arg3[%c296, %c0_112] : memref<392x128xf32, #tpu.memory_space<vmem>>, vector<8x32xf32>
    %cst_113 = arith.constant dense<0.000000e+00> : vector<18x32xf32>
    %299 = tpu.matmul %297, %298, %cst_113 {dimension_numbers = #tpu.dot_dimension_numbers<[1], [0], [0], [1], [0, 0, 1, 1], [], []>} : vector<18x8xf32>, vector<8x32xf32>, vector<18x32xf32> -> vector<18x32xf32>
    %300 = arith.addf %279, %299 : vector<18x32xf32>
    %301 = vector.extract_strided_slice %278 {offsets = [0, 8], sizes = [18, 8], strides = [1, 1]} : vector<18x96xf32> to vector<18x8xf32>
    %302 = vector.extract_strided_slice %278 {offsets = [0, 40], sizes = [18, 8], strides = [1, 1]} : vector<18x96xf32> to vector<18x8xf32>
    %303 = vector.extract_strided_slice %278 {offsets = [0, 72], sizes = [18, 8], strides = [1, 1]} : vector<18x96xf32> to vector<18x8xf32>
    %cst_114 = arith.constant dense<0.000000e+00> : vector<18x18xf32>
    %304 = tpu.matmul %301, %302, %cst_114 {dimension_numbers = #tpu.dot_dimension_numbers<[1], [1], [0], [0], [0, 0, 1, 0], [], []>} : vector<18x8xf32>, vector<18x8xf32>, vector<18x18xf32> -> vector<18x18xf32>
    %cst_115 = arith.constant 0.353553385 : f32
    %305 = vector.broadcast %cst_115 : f32 to vector<18x18xf32>
    %306 = arith.mulf %304, %305 : vector<18x18xf32>
    %307 = arith.addf %306, %79 : vector<18x18xf32>
    %cst_116 = arith.constant dense<0xFF800000> : vector<18xf32>
    %308 = vector.multi_reduction <maximumf>, %307, %cst_116 [1] : vector<18x18xf32> to vector<18xf32>
    %309 = vector.shape_cast %308 : vector<18xf32> to vector<18x1xf32>
    %310 = vector.broadcast %309 : vector<18x1xf32> to vector<18x18xf32>
    %311 = arith.subf %307, %310 : vector<18x18xf32>
    %312 = math.exp %311 : vector<18x18xf32>
    %cst_117 = arith.constant dense<0.000000e+00> : vector<18xf32>
    %313 = vector.multi_reduction <add>, %312, %cst_117 [1] : vector<18x18xf32> to vector<18xf32>
    %314 = vector.shape_cast %313 : vector<18xf32> to vector<18x1xf32>
    %315 = tpu.reciprocal %314 {approx = true} : vector<18x1xf32> -> vector<18x1xf32>
    %316 = vector.broadcast %315 : vector<18x1xf32> to vector<18x18xf32>
    %317 = arith.mulf %312, %316 : vector<18x18xf32>
    %cst_118 = arith.constant dense<0.000000e+00> : vector<18x8xf32>
    %318 = tpu.matmul %317, %303, %cst_118 {dimension_numbers = #tpu.dot_dimension_numbers<[1], [0], [0], [1], [0, 0, 1, 1], [], []>} : vector<18x18xf32>, vector<18x8xf32>, vector<18x8xf32> -> vector<18x8xf32>
    %c304 = arith.constant 304 : index
    %c0_119 = arith.constant 0 : index
    %319 = vector.load %arg3[%c304, %c0_119] : memref<392x128xf32, #tpu.memory_space<vmem>>, vector<8x32xf32>
    %cst_120 = arith.constant dense<0.000000e+00> : vector<18x32xf32>
    %320 = tpu.matmul %318, %319, %cst_120 {dimension_numbers = #tpu.dot_dimension_numbers<[1], [0], [0], [1], [0, 0, 1, 1], [], []>} : vector<18x8xf32>, vector<8x32xf32>, vector<18x32xf32> -> vector<18x32xf32>
    %321 = arith.addf %300, %320 : vector<18x32xf32>
    %322 = vector.extract_strided_slice %278 {offsets = [0, 16], sizes = [18, 8], strides = [1, 1]} : vector<18x96xf32> to vector<18x8xf32>
    %323 = vector.extract_strided_slice %278 {offsets = [0, 48], sizes = [18, 8], strides = [1, 1]} : vector<18x96xf32> to vector<18x8xf32>
    %324 = vector.extract_strided_slice %278 {offsets = [0, 80], sizes = [18, 8], strides = [1, 1]} : vector<18x96xf32> to vector<18x8xf32>
    %cst_121 = arith.constant dense<0.000000e+00> : vector<18x18xf32>
    %325 = tpu.matmul %322, %323, %cst_121 {dimension_numbers = #tpu.dot_dimension_numbers<[1], [1], [0], [0], [0, 0, 1, 0], [], []>} : vector<18x8xf32>, vector<18x8xf32>, vector<18x18xf32> -> vector<18x18xf32>
    %cst_122 = arith.constant 0.353553385 : f32
    %326 = vector.broadcast %cst_122 : f32 to vector<18x18xf32>
    %327 = arith.mulf %325, %326 : vector<18x18xf32>
    %328 = arith.addf %327, %79 : vector<18x18xf32>
    %cst_123 = arith.constant dense<0xFF800000> : vector<18xf32>
    %329 = vector.multi_reduction <maximumf>, %328, %cst_123 [1] : vector<18x18xf32> to vector<18xf32>
    %330 = vector.shape_cast %329 : vector<18xf32> to vector<18x1xf32>
    %331 = vector.broadcast %330 : vector<18x1xf32> to vector<18x18xf32>
    %332 = arith.subf %328, %331 : vector<18x18xf32>
    %333 = math.exp %332 : vector<18x18xf32>
    %cst_124 = arith.constant dense<0.000000e+00> : vector<18xf32>
    %334 = vector.multi_reduction <add>, %333, %cst_124 [1] : vector<18x18xf32> to vector<18xf32>
    %335 = vector.shape_cast %334 : vector<18xf32> to vector<18x1xf32>
    %336 = tpu.reciprocal %335 {approx = true} : vector<18x1xf32> -> vector<18x1xf32>
    %337 = vector.broadcast %336 : vector<18x1xf32> to vector<18x18xf32>
    %338 = arith.mulf %333, %337 : vector<18x18xf32>
    %cst_125 = arith.constant dense<0.000000e+00> : vector<18x8xf32>
    %339 = tpu.matmul %338, %324, %cst_125 {dimension_numbers = #tpu.dot_dimension_numbers<[1], [0], [0], [1], [0, 0, 1, 1], [], []>} : vector<18x18xf32>, vector<18x8xf32>, vector<18x8xf32> -> vector<18x8xf32>
    %c312 = arith.constant 312 : index
    %c0_126 = arith.constant 0 : index
    %340 = vector.load %arg3[%c312, %c0_126] : memref<392x128xf32, #tpu.memory_space<vmem>>, vector<8x32xf32>
    %cst_127 = arith.constant dense<0.000000e+00> : vector<18x32xf32>
    %341 = tpu.matmul %339, %340, %cst_127 {dimension_numbers = #tpu.dot_dimension_numbers<[1], [0], [0], [1], [0, 0, 1, 1], [], []>} : vector<18x8xf32>, vector<8x32xf32>, vector<18x32xf32> -> vector<18x32xf32>
    %342 = arith.addf %321, %341 : vector<18x32xf32>
    %343 = vector.extract_strided_slice %278 {offsets = [0, 24], sizes = [18, 8], strides = [1, 1]} : vector<18x96xf32> to vector<18x8xf32>
    %344 = vector.extract_strided_slice %278 {offsets = [0, 56], sizes = [18, 8], strides = [1, 1]} : vector<18x96xf32> to vector<18x8xf32>
    %345 = vector.extract_strided_slice %278 {offsets = [0, 88], sizes = [18, 8], strides = [1, 1]} : vector<18x96xf32> to vector<18x8xf32>
    %cst_128 = arith.constant dense<0.000000e+00> : vector<18x18xf32>
    %346 = tpu.matmul %343, %344, %cst_128 {dimension_numbers = #tpu.dot_dimension_numbers<[1], [1], [0], [0], [0, 0, 1, 0], [], []>} : vector<18x8xf32>, vector<18x8xf32>, vector<18x18xf32> -> vector<18x18xf32>
    %cst_129 = arith.constant 0.353553385 : f32
    %347 = vector.broadcast %cst_129 : f32 to vector<18x18xf32>
    %348 = arith.mulf %346, %347 : vector<18x18xf32>
    %349 = arith.addf %348, %79 : vector<18x18xf32>
    %cst_130 = arith.constant dense<0xFF800000> : vector<18xf32>
    %350 = vector.multi_reduction <maximumf>, %349, %cst_130 [1] : vector<18x18xf32> to vector<18xf32>
    %351 = vector.shape_cast %350 : vector<18xf32> to vector<18x1xf32>
    %352 = vector.broadcast %351 : vector<18x1xf32> to vector<18x18xf32>
    %353 = arith.subf %349, %352 : vector<18x18xf32>
    %354 = math.exp %353 : vector<18x18xf32>
    %cst_131 = arith.constant dense<0.000000e+00> : vector<18xf32>
    %355 = vector.multi_reduction <add>, %354, %cst_131 [1] : vector<18x18xf32> to vector<18xf32>
    %356 = vector.shape_cast %355 : vector<18xf32> to vector<18x1xf32>
    %357 = tpu.reciprocal %356 {approx = true} : vector<18x1xf32> -> vector<18x1xf32>
    %358 = vector.broadcast %357 : vector<18x1xf32> to vector<18x18xf32>
    %359 = arith.mulf %354, %358 : vector<18x18xf32>
    %cst_132 = arith.constant dense<0.000000e+00> : vector<18x8xf32>
    %360 = tpu.matmul %359, %345, %cst_132 {dimension_numbers = #tpu.dot_dimension_numbers<[1], [0], [0], [1], [0, 0, 1, 1], [], []>} : vector<18x18xf32>, vector<18x8xf32>, vector<18x8xf32> -> vector<18x8xf32>
    %c320 = arith.constant 320 : index
    %c0_133 = arith.constant 0 : index
    %361 = vector.load %arg3[%c320, %c0_133] : memref<392x128xf32, #tpu.memory_space<vmem>>, vector<8x32xf32>
    %cst_134 = arith.constant dense<0.000000e+00> : vector<18x32xf32>
    %362 = tpu.matmul %360, %361, %cst_134 {dimension_numbers = #tpu.dot_dimension_numbers<[1], [0], [0], [1], [0, 0, 1, 1], [], []>} : vector<18x8xf32>, vector<8x32xf32>, vector<18x32xf32> -> vector<18x32xf32>
    %363 = arith.addf %342, %362 : vector<18x32xf32>
    %364 = arith.addf %273, %363 : vector<18x32xf32>
    %c18 = arith.constant 18 : index
    %c0_135 = arith.constant 0 : index
    %365 = vector.load %arg2[%c18, %c0_135] : memref<50x128xf32, #tpu.memory_space<vmem>>, vector<1x32xf32>
    %366 = vector.broadcast %365 : vector<1x32xf32> to vector<18x32xf32>
    %367 = arith.addf %364, %366 : vector<18x32xf32>
    %c19 = arith.constant 19 : index
    %c0_136 = arith.constant 0 : index
    %368 = vector.load %arg2[%c19, %c0_136] : memref<50x128xf32, #tpu.memory_space<vmem>>, vector<1x32xf32>
    %c20 = arith.constant 20 : index
    %c0_137 = arith.constant 0 : index
    %369 = vector.load %arg2[%c20, %c0_137] : memref<50x128xf32, #tpu.memory_space<vmem>>, vector<1x32xf32>
    %cst_138 = arith.constant dense<0.000000e+00> : vector<18xf32>
    %370 = vector.multi_reduction <add>, %367, %cst_138 [1] : vector<18x32xf32> to vector<18xf32>
    %371 = vector.shape_cast %370 : vector<18xf32> to vector<18x1xf32>
    %cst_139 = arith.constant 3.200000e+01 : f32
    %372 = vector.broadcast %cst_139 : f32 to vector<18x1xf32>
    %373 = arith.divf %371, %372 : vector<18x1xf32>
    %374 = vector.broadcast %373 : vector<18x1xf32> to vector<18x32xf32>
    %375 = arith.subf %367, %374 : vector<18x32xf32>
    %376 = arith.mulf %375, %375 : vector<18x32xf32>
    %cst_140 = arith.constant dense<0.000000e+00> : vector<18xf32>
    %377 = vector.multi_reduction <add>, %376, %cst_140 [1] : vector<18x32xf32> to vector<18xf32>
    %378 = vector.shape_cast %377 : vector<18xf32> to vector<18x1xf32>
    %cst_141 = arith.constant 3.200000e+01 : f32
    %379 = vector.broadcast %cst_141 : f32 to vector<18x1xf32>
    %380 = arith.divf %378, %379 : vector<18x1xf32>
    %381 = vector.broadcast %373 : vector<18x1xf32> to vector<18x32xf32>
    %382 = arith.subf %367, %381 : vector<18x32xf32>
    %cst_142 = arith.constant 9.99999974E-6 : f32
    %383 = vector.broadcast %cst_142 : f32 to vector<18x1xf32>
    %384 = arith.addf %380, %383 : vector<18x1xf32>
    %385 = math.rsqrt %384 : vector<18x1xf32>
    %386 = vector.broadcast %385 : vector<18x1xf32> to vector<18x32xf32>
    %387 = arith.mulf %382, %386 : vector<18x32xf32>
    %388 = vector.broadcast %368 : vector<1x32xf32> to vector<18x32xf32>
    %389 = arith.mulf %387, %388 : vector<18x32xf32>
    %390 = vector.broadcast %369 : vector<1x32xf32> to vector<18x32xf32>
    %391 = arith.addf %389, %390 : vector<18x32xf32>
    %c328 = arith.constant 328 : index
    %c0_143 = arith.constant 0 : index
    %392 = vector.load %arg3[%c328, %c0_143] : memref<392x128xf32, #tpu.memory_space<vmem>>, vector<32x32xf32>
    %cst_144 = arith.constant dense<0.000000e+00> : vector<18x32xf32>
    %393 = tpu.matmul %391, %392, %cst_144 {dimension_numbers = #tpu.dot_dimension_numbers<[1], [0], [0], [1], [0, 0, 1, 1], [], []>} : vector<18x32xf32>, vector<32x32xf32>, vector<18x32xf32> -> vector<18x32xf32>
    %c21 = arith.constant 21 : index
    %c0_145 = arith.constant 0 : index
    %394 = vector.load %arg2[%c21, %c0_145] : memref<50x128xf32, #tpu.memory_space<vmem>>, vector<1x32xf32>
    %395 = vector.broadcast %394 : vector<1x32xf32> to vector<18x32xf32>
    %396 = arith.addf %393, %395 : vector<18x32xf32>
    %cst_146 = arith.constant 5.000000e-01 : f32
    %397 = vector.broadcast %cst_146 : f32 to vector<18x32xf32>
    %398 = arith.mulf %397, %396 : vector<18x32xf32>
    %cst_147 = arith.constant 0.707106769 : f32
    %399 = vector.broadcast %cst_147 : f32 to vector<18x32xf32>
    %400 = arith.mulf %396, %399 : vector<18x32xf32>
    %cst_148 = arith.constant 0.000000e+00 : f32
    %401 = vector.broadcast %cst_148 : f32 to vector<18x32xf32>
    %402 = arith.cmpf oge, %400, %401 : vector<18x32xf32>
    %cst_149 = arith.constant 1.000000e+00 : f32
    %cst_150 = arith.constant -1.000000e+00 : f32
    %403 = vector.broadcast %cst_149 : f32 to vector<18x32xf32>
    %404 = vector.broadcast %cst_150 : f32 to vector<18x32xf32>
    %405 = arith.select %402, %403, %404 : vector<18x32xi1>, vector<18x32xf32>
    %406 = math.absf %400 : vector<18x32xf32>
    %cst_151 = arith.constant 0.327591091 : f32
    %407 = vector.broadcast %cst_151 : f32 to vector<18x32xf32>
    %408 = arith.mulf %407, %406 : vector<18x32xf32>
    %cst_152 = arith.constant 1.000000e+00 : f32
    %409 = vector.broadcast %cst_152 : f32 to vector<18x32xf32>
    %410 = arith.addf %409, %408 : vector<18x32xf32>
    %cst_153 = arith.constant 1.000000e+00 : f32
    %411 = vector.broadcast %cst_153 : f32 to vector<18x32xf32>
    %412 = arith.divf %411, %410 : vector<18x32xf32>
    %cst_154 = arith.constant 1.06140542 : f32
    %413 = vector.broadcast %cst_154 : f32 to vector<18x32xf32>
    %414 = arith.mulf %413, %412 : vector<18x32xf32>
    %cst_155 = arith.constant -1.45315206 : f32
    %415 = vector.broadcast %cst_155 : f32 to vector<18x32xf32>
    %416 = arith.addf %414, %415 : vector<18x32xf32>
    %417 = arith.mulf %416, %412 : vector<18x32xf32>
    %cst_156 = arith.constant 1.42141378 : f32
    %418 = vector.broadcast %cst_156 : f32 to vector<18x32xf32>
    %419 = arith.addf %417, %418 : vector<18x32xf32>
    %420 = arith.mulf %419, %412 : vector<18x32xf32>
    %cst_157 = arith.constant -0.284496725 : f32
    %421 = vector.broadcast %cst_157 : f32 to vector<18x32xf32>
    %422 = arith.addf %420, %421 : vector<18x32xf32>
    %423 = arith.mulf %422, %412 : vector<18x32xf32>
    %cst_158 = arith.constant 0.254829586 : f32
    %424 = vector.broadcast %cst_158 : f32 to vector<18x32xf32>
    %425 = arith.addf %423, %424 : vector<18x32xf32>
    %426 = arith.mulf %425, %412 : vector<18x32xf32>
    %cst_159 = arith.constant 0.000000e+00 : f32
    %427 = vector.broadcast %cst_159 : f32 to vector<18x32xf32>
    %428 = arith.subf %427, %406 : vector<18x32xf32>
    %429 = arith.mulf %428, %406 : vector<18x32xf32>
    %430 = math.exp %429 : vector<18x32xf32>
    %431 = arith.mulf %426, %430 : vector<18x32xf32>
    %cst_160 = arith.constant 1.000000e+00 : f32
    %432 = vector.broadcast %cst_160 : f32 to vector<18x32xf32>
    %433 = arith.subf %432, %431 : vector<18x32xf32>
    %434 = arith.mulf %405, %433 : vector<18x32xf32>
    %cst_161 = arith.constant 1.000000e+00 : f32
    %435 = vector.broadcast %cst_161 : f32 to vector<18x32xf32>
    %436 = arith.addf %435, %434 : vector<18x32xf32>
    %437 = arith.mulf %398, %436 : vector<18x32xf32>
    %c360 = arith.constant 360 : index
    %c0_162 = arith.constant 0 : index
    %438 = vector.load %arg3[%c360, %c0_162] : memref<392x128xf32, #tpu.memory_space<vmem>>, vector<32x32xf32>
    %cst_163 = arith.constant dense<0.000000e+00> : vector<18x32xf32>
    %439 = tpu.matmul %437, %438, %cst_163 {dimension_numbers = #tpu.dot_dimension_numbers<[1], [0], [0], [1], [0, 0, 1, 1], [], []>} : vector<18x32xf32>, vector<32x32xf32>, vector<18x32xf32> -> vector<18x32xf32>
    %c22 = arith.constant 22 : index
    %c0_164 = arith.constant 0 : index
    %440 = vector.load %arg2[%c22, %c0_164] : memref<50x128xf32, #tpu.memory_space<vmem>>, vector<1x32xf32>
    %441 = vector.broadcast %440 : vector<1x32xf32> to vector<18x32xf32>
    %442 = arith.addf %439, %441 : vector<18x32xf32>
    %443 = arith.addf %391, %442 : vector<18x32xf32>
    %c23 = arith.constant 23 : index
    %c0_165 = arith.constant 0 : index
    %444 = vector.load %arg2[%c23, %c0_165] : memref<50x128xf32, #tpu.memory_space<vmem>>, vector<1x32xf32>
    %c24 = arith.constant 24 : index
    %c0_166 = arith.constant 0 : index
    %445 = vector.load %arg2[%c24, %c0_166] : memref<50x128xf32, #tpu.memory_space<vmem>>, vector<1x32xf32>
    %cst_167 = arith.constant dense<0.000000e+00> : vector<18xf32>
    %446 = vector.multi_reduction <add>, %443, %cst_167 [1] : vector<18x32xf32> to vector<18xf32>
    %447 = vector.shape_cast %446 : vector<18xf32> to vector<18x1xf32>
    %cst_168 = arith.constant 3.200000e+01 : f32
    %448 = vector.broadcast %cst_168 : f32 to vector<18x1xf32>
    %449 = arith.divf %447, %448 : vector<18x1xf32>
    %450 = vector.broadcast %449 : vector<18x1xf32> to vector<18x32xf32>
    %451 = arith.subf %443, %450 : vector<18x32xf32>
    %452 = arith.mulf %451, %451 : vector<18x32xf32>
    %cst_169 = arith.constant dense<0.000000e+00> : vector<18xf32>
    %453 = vector.multi_reduction <add>, %452, %cst_169 [1] : vector<18x32xf32> to vector<18xf32>
    %454 = vector.shape_cast %453 : vector<18xf32> to vector<18x1xf32>
    %cst_170 = arith.constant 3.200000e+01 : f32
    %455 = vector.broadcast %cst_170 : f32 to vector<18x1xf32>
    %456 = arith.divf %454, %455 : vector<18x1xf32>
    %457 = vector.broadcast %449 : vector<18x1xf32> to vector<18x32xf32>
    %458 = arith.subf %443, %457 : vector<18x32xf32>
    %cst_171 = arith.constant 9.99999974E-6 : f32
    %459 = vector.broadcast %cst_171 : f32 to vector<18x1xf32>
    %460 = arith.addf %456, %459 : vector<18x1xf32>
    %461 = math.rsqrt %460 : vector<18x1xf32>
    %462 = vector.broadcast %461 : vector<18x1xf32> to vector<18x32xf32>
    %463 = arith.mulf %458, %462 : vector<18x32xf32>
    %464 = vector.broadcast %444 : vector<1x32xf32> to vector<18x32xf32>
    %465 = arith.mulf %463, %464 : vector<18x32xf32>
    %466 = vector.broadcast %445 : vector<1x32xf32> to vector<18x32xf32>
    %467 = arith.addf %465, %466 : vector<18x32xf32>
    %468 = vector.extract_strided_slice %467 {offsets = [0, 0], sizes = [16, 32], strides = [1, 1]} : vector<18x32xf32> to vector<16x32xf32>
    %c72 = arith.constant 72 : index
    %c0_172 = arith.constant 0 : index
    %469 = vector.load %arg3[%c72, %c0_172] : memref<392x128xf32, #tpu.memory_space<vmem>>, vector<32x32xf32>
    %cst_173 = arith.constant dense<0.000000e+00> : vector<16x32xf32>
    %470 = tpu.matmul %468, %469, %cst_173 {dimension_numbers = #tpu.dot_dimension_numbers<[1], [0], [0], [1], [0, 0, 1, 1], [], []>} : vector<16x32xf32>, vector<32x32xf32>, vector<16x32xf32> -> vector<16x32xf32>
    %c7 = arith.constant 7 : index
    %c0_174 = arith.constant 0 : index
    %471 = vector.load %arg2[%c7, %c0_174] : memref<50x128xf32, #tpu.memory_space<vmem>>, vector<1x32xf32>
    %472 = vector.broadcast %471 : vector<1x32xf32> to vector<16x32xf32>
    %473 = arith.addf %470, %472 : vector<16x32xf32>
    %cst_175 = arith.constant 0.000000e+00 : f32
    %474 = vector.broadcast %cst_175 : f32 to vector<16x32xf32>
    %475 = arith.cmpf oge, %473, %474 : vector<16x32xf32>
    %cst_176 = arith.constant 0.00999999977 : f32
    %476 = vector.broadcast %cst_176 : f32 to vector<16x32xf32>
    %477 = arith.mulf %476, %473 : vector<16x32xf32>
    %478 = arith.select %475, %473, %477 : vector<16x32xi1>, vector<16x32xf32>
    %c104 = arith.constant 104 : index
    %c0_177 = arith.constant 0 : index
    %479 = vector.load %arg3[%c104, %c0_177] : memref<392x128xf32, #tpu.memory_space<vmem>>, vector<32x128xf32>
    %cst_178 = arith.constant dense<0.000000e+00> : vector<16x128xf32>
    %480 = tpu.matmul %478, %479, %cst_178 {dimension_numbers = #tpu.dot_dimension_numbers<[1], [0], [0], [1], [0, 0, 1, 1], [], []>} : vector<16x32xf32>, vector<32x128xf32>, vector<16x128xf32> -> vector<16x128xf32>
    %c8_179 = arith.constant 8 : index
    %c0_180 = arith.constant 0 : index
    %481 = vector.load %arg2[%c8_179, %c0_180] : memref<50x128xf32, #tpu.memory_space<vmem>>, vector<1x128xf32>
    %482 = vector.broadcast %481 : vector<1x128xf32> to vector<16x128xf32>
    %483 = arith.addf %480, %482 : vector<16x128xf32>
    %c0_181 = arith.constant 0 : index
    %c0_182 = arith.constant 0 : index
    %484 = vector.load %arg4[%c0_181, %c0_182] : memref<16x128xf32, #tpu.memory_space<vmem>>, vector<16x128xf32>
    tpu.vector_store %arg4[%c0_181, %c0_182], %483 {strides = array<i32>} : memref<16x128xf32, #tpu.memory_space<vmem>>, vector<16x128xf32>,
    return
  }
}

</mosaic_0001>

<bundles_post_ra>
// kernel: tpu_custom_call.1
= control target key start
LH: loop header
LB: loop body
LE: loop exit
PB: predicated region body
PF: predicated region fallthrough
CT: control target
= control target key end

     0   :  { %9 = vsyncpa [#allocation3], 0  ;;  %s6385_s0 = inlined_call_operand.vmem [shape: f32[16,4], index: 0, kind: input, shape index: {}]   ;;  %s6386_s1 = inlined_call_operand.vmem [shape: f32[2,1], index: 1, kind: input, shape index: {}]   ;;  %s6387_s2 = inlined_call_operand.hbm [shape: f32[50,128], index: 2, kind: input, shape index: {}]   ;;  %s6388_s3 = inlined_call_operand.hbm [shape: f32[392,128], index: 3, kind: input, shape index: {}]   ;;  %s6389_s4 = inlined_call_operand.hbm [shape: f32[16,128], index: 4, kind: output, shape index: {}]  }
   0x1   :  { %10 = vsyncpa [#allocation6], 0 }
   0x2   :  { %11 = vsyncpa [#allocation4], 0  ;;  %s5540_s15 = smov [#allocation2]   ;;  %s5468_s19 = scalar_lea.hbm %s6387_s2, 896 }
   0x3   :  { %s21_s16 = sshll.u32 %s5540_s15, 4  ;;  %p5469_p0 = scmp.ne.s32.totalorder %s6387_s2, %s5468_s19  ;;  %s22_s16 = int_to_ptr.vmem [resolvable:$true] %s21_s16 }
   0x4   :  { %p5472_p1 = scmp.lt.u32.totalorder %s5468_s19, %s6387_s2 }
   0x6   :  { %p5474_p2 = pnand %p5472_p1, %p5469_p0 }
   0x8   :  { %5477 = shalt.err (!%p5474_p2)
}
   0x9   :  { %s5478_s24 = scalar_lea.vmem %s22_s16, 896  ;;  %p5483_p4 = scmp.lt.s32.totalorder %s22_s16, %s22_s16 }
   0xa   :  { %p5479_p3 = scmp.ne.s32.totalorder %s22_s16, %s5478_s24  ;;  %p5484_p5 = scmp.lt.s32.totalorder %s5478_s24, %s5478_s24 }
   0xc   :  { %p5485_p6 = por %p5484_p5, %p5483_p4 }
   0xe   :  { %p5486_p7 = pnand %p5485_p6, %p5479_p3 }
  0x10   :  { %5489 = shalt.err (!%p5486_p7)
}
  0x11   :  { %s5541_s25 = smov 128   ;;  %s5542_s26 = smov 8  }
  0x12   :  { %27 = dma.hbm_to_vmem [thread:$0]  %s6387_s2, 896, %s22_s16, [#allocation3], %s5541_s25, %s5541_s25, %s5542_s26  }
  0x13   :  { %s5543_s29 = smov [#allocation5]   ;;  %s5490_s7 = scalar_lea.hbm %s6388_s3, 6272 }
  0x14   :  { %s33_s30 = sshll.u32 %s5543_s29, 4  ;;  %p5491_p8 = scmp.ne.s32.totalorder %s6388_s3, %s5490_s7  ;;  %s34_s30 = int_to_ptr.vmem [resolvable:$true] %s33_s30 }
  0x15   :  { %p5494_p9 = scmp.lt.u32.totalorder %s5490_s7, %s6388_s3 }
  0x17   :  { %p5496_p10 = pnand %p5494_p9, %p5491_p8 }
  0x19   :  { %5499 = shalt.err (!%p5496_p10)
}
  0x1a   :  { %s5500_s12 = scalar_lea.vmem %s34_s30, 6272  ;;  %p5505_p12 = scmp.lt.s32.totalorder %s34_s30, %s34_s30 }
  0x1b   :  { %p5501_p11 = scmp.ne.s32.totalorder %s34_s30, %s5500_s12  ;;  %p5506_p13 = scmp.lt.s32.totalorder %s5500_s12, %s5500_s12 }
  0x1d   :  { %p5507_p0 = por %p5506_p13, %p5505_p12 }
  0x1f   :  { %p5508_p1 = pnand %p5507_p0, %p5501_p11 }
  0x21   :  { %5511 = shalt.err (!%p5508_p1)
}
  0x22   :  { %39 = dma.hbm_to_vmem [thread:$0]  %s6388_s3, 6272, %s34_s30, [#allocation6], %s5541_s25, %s5541_s25, %s5542_s26  }
  0x23   :  { %5534 = dma.done.wait [#allocation3], 896  }
  0x24   :  { %5535 = vsyncadd [#allocation3], 4294966400 }
  0x25   :  { %5536 = dma.done.wait [#allocation6], 6272  }
  0x26   :  { %5537 = vsyncadd [#allocation6], 4294961024  ;;  %v58_v0 = vlaneseq  ;;  %v5544_v3 = vmov 0   ;;  %vm81_vm0 = vcmask 1043456   ;;  %v68_v9 = vld [vmem:[#allocation5] sm:$0xf] }
  0x27   :  { %5243 = vset.pattern.permute.xlu0 %v5544_v3  ;;  %4620 = vmatprep.subr.msk.mxu1 %vm81_vm0, %v68_v9  ;;  %v49_v10 = vld [vmem:[#allocation2 + $0x1] sm:$0x1]  ;;  %v47_v24 = vld [vmem:[%s6385_s0 + $0x8] sm:$0xff]  ;;  %v4263_v25 = vld [vmem:[#allocation2] ss:$0 sm:$0xff]  ;;  %vm74_vm4 = vcmask 31744  }
  0x28   :  { %v5617_v1 = vshrl.u32 %v58_v0, 7  ;;  %v371_v2 = vand.u32 127, %v58_v0  ;;  %4621 = vmatpush3.msk.msra.mxu1 %vm81_vm0, %v68_v9  ;;  %v56_v12 = vadd.f32 0.0001, %v49_v10  ;;  %v257_v15 = vld [vmem:[%s6386_s1] sm:$0x3]  ;;  %v55_v28 = vsub.f32 %v47_v24, %v4263_v25 }
  0x29   :  { %261 = vperm.xlu0 %5243, %v257_v15   ;;  %v46_v23 = vld [vmem:[%s6385_s0] sm:$0xff]  ;;  %v167_v36 = vld [vmem:[#allocation5 + $0x10] sm:$0xff]  ;;  %v168_v38 = vld [vmem:[#allocation5 + $0x18] sm:$0xff]  ;;  %v5545_v45 = vmov 0.0|0.0   ;;  %vm5546_vm5 = vmmov 0   ;;  %v5547_v48 = vmov 0.0  }
  0x2a   :  { %v368_v4 = vadd.s32 8, %v5617_v1  ;;  %v394_v5 = vcvt.s32.f32 %v371_v2  ;;  %v4279_v6 = vadd.s32 4294967280, %v371_v2  ;;  %vm400_vm1 = vcmp.lt.s32.totalorder %v371_v2, 16  ;;  %v166_v35 = vld [vmem:[#allocation5 + $0x8] sm:$0xff]  ;;  %v169_v39 = vld [vmem:[#allocation5 + $0x20] sm:$0xff]  ;;  %v279_v42 = vld [vmem:[#allocation5 + $0x30] sm:$0xff]  ;;  %5107 = vmatprep.subr.bf16.mxu0 %v5545_v45  ;;  %4644 = vmatprep.mubr.msk.f32.mxu0 %vm5546_vm5, %v5547_v48 }
  0x2b   :  { %5324 = vrsqrt.f32 %v56_v12  ;;  %v372_v18 = vcvt.s32.f32 %v5617_v1  ;;  %v60_v26 = vsub.s32 0, %v5617_v1  ;;  %v54_v27 = vsub.f32 %v46_v23, %v4263_v25  ;;  %v278_v41 = vld [vmem:[#allocation5 + $0x28] sm:$0xff]  ;;  %v280_v44 = vld [vmem:[#allocation5 + $0x38] sm:$0xff]  ;;  %v281_v46 = vld [vmem:[#allocation5 + $0x40] sm:$0xff]  ;;  %s5548_s0 = smov 96   ;;  %s5549_s18 = smov 88  }
  0x2c   :  { %v373_v7 = vcvt.s32.f32 %v368_v4  ;;  %v395_v8 = vadd.f32 0.5, %v394_v5  ;;  %v399_v14 = vcvt.s32.f32 %v4279_v6  ;;  %v5099_v37 = vpack.c.bf16 %v167_v36, %v166_v35  ;;  %v4273_v49 = vld [vmem:[#allocation2 + $0x4] ss:$0 sm:$0xff]  ;;  %v4274_v50 = vld [vmem:[#allocation2 + $0x5] ss:$0 sm:$0xff]  ;;  %v409_v62 = vld [vmem:[#allocation5 + $0x90] sm:$0xff] }
  0x2d   :  { %v5103_v40 = vpack.c.bf16 %v169_v39, %v168_v38  ;;  %v5108_v43 = vpack.c.bf16 %v279_v42, %v278_v41  ;;  %v5111_v47 = vpack.c.bf16 %v281_v46, %v280_v44  ;;  %vm175_vm7 = vcmask 261120   ;;  %v4266_v56 = vld [vmem:[#allocation2 + $0x2] ss:$0 sm:$0xff]  ;;  %v410_v5 = vld [vmem:[#allocation5 + $0x98] sm:$0xff]  ;;  %v411_v6 = vld [vmem:[#allocation5 + $0xa0] sm:$0xff]  ;;  %s5550_s19 = smov 120  }
  0x2e   :  { %v376_v11 = vadd.f32 0.5, %v373_v7  ;;  %v396_v13 = vmul.f32 0.125, %v395_v8  ;;  %5100 = vmatprep.subr.bf16.mxu1 %v5099_v37  ;;  %v408_v61 = vld [vmem:[#allocation5 + $0x88] sm:$0xff]  ;;  %v5117_v7 = vpack.c.bf16 %v411_v6, %v410_v5  ;;  %v362_v24 = vld [vmem:[#allocation2 + $0x30] sm:$0x3]  ;;  %vm515_vm10 = vcmask 64512  }
  0x2f   :  { %5109 = vmatpush3.bf16.msra.mxu0 %v5108_v43  ;;  %v5114_v2 = vpack.c.bf16 %v409_v62, %v408_v61  ;;  %v4270_v10 = vld [vmem:[#allocation2 + $0x3] ss:$0 sm:$0xff]  ;;  %v4275_v15 = vld [vmem:[#allocation2 + $0x6] ss:$0 sm:$0xff]  ;;  %vm5704_vm11 = vmpackc.low %vm515_vm10, %vm515_vm10  ;;  %vm614_vm13 = vcmask 146432   ;;  %vm621_vm14 = vcmask 140288  }
  0x30   :  { %v379_v16 = vmul.f32 0.125, %v376_v11  ;;  %v397_v17 = vfloor.f32 %v396_v13  ;;  %5110 = vmatprep.subr.bf16.mxu0 %v5545_v45  ;;  %v360_v13 = vld [vmem:[#allocation2 + $0x20] sm:$0xff]  ;;  %s5552_s20 = smov 64   ;;  %vm666_vm15 = vcmask 1041408   ;;  %s5553_s21 = smov 56   ;;  %vm1860_vm0 = vcmask 254976  }
  0x31   :  { %s5554_s22 = smov 80   ;;  %s5555_s23 = smov 112  }
  0x32   :  { %v382_v19 = vfloor.f32 %v379_v16  ;;  %v5624_v20 = vsel %vm400_vm1, %v397_v17, %v399_v14  ;;  %s5556_s24 = smov 48   ;;  %s5557_s27 = smov 72  }
  0x33   :  { %vm5634_vm3 = vcmp.eq.f32.partialorder %v372_v18, %v5624_v20  ;;  %5112 = vmatpush3.bf16.msra.mxu0 %v5111_v47  ;;  %s5558_s28 = smov 104   ;;  %s5559_s29 = smov 40  }
  0x34   :  { %vm5627_vm2 = vcmp.eq.f32.partialorder %v382_v19, %v5624_v20  ;;  %5119 = vmatprep.subr.bf16.mxu0 %v5545_v45  ;;  %v361_v19 = vld [vmem:[#allocation2 + $0x28] sm:$0xff]  ;;  %s5561_s30 = smov [#allocation7]  }
  0x35   :  { %v5325_v29 = vpop.eup %5324  ;;  %s4250_s5 = sshll.u32 %s5561_s30, 4  ;;  %s4251_s5 = int_to_ptr.vmem [resolvable:$true] %s4250_s5 }
  0x36   :  { %v61_v30 = vrot.slane %v5325_v29, %v60_v26  ;;  %v4280_v29 = vld [vmem:[#allocation2 + $0x9] ss:$0 sm:$0xff]  ;;  %s5512_s6 = scalar_lea.vmem %s4251_s5, 256  ;;  %p5517_p3 = scmp.lt.s32.totalorder %s4251_s5, %s4251_s5 }
  0x37   :  { %p5513_p2 = scmp.ne.s32.totalorder %s4251_s5, %s5512_s6  ;;  %p5518_p4 = scmp.lt.s32.totalorder %s5512_s6, %s5512_s6 }
  0x38   :  { %v62_v31 = vmul.f32 %v61_v30, %v54_v27  ;;  %v63_v32 = vmul.f32 %v61_v30, %v55_v28 }
  0x39   :  { %p5519_p5 = por %p5518_p4, %p5517_p3 }
  0x3a   :  { %v4264_v33 = vclamps-f32 %v62_v31, 5.0  ;;  %v4265_v34 = vclamps-f32 %v63_v32, 5.0 }
  0x3b   :  { %p5520_p6 = pnand %p5519_p5, %p5513_p2 }
  0x3c   :  { %4622 = vmatprep.mubr.msk.f32.mxu1 %vm74_vm4, %v4264_v33 }
  0x3d   :  { %4623 = vmatmul.mubr.msk.f32.vlgmr.msra.gmra.mrb[0].mxu1 %vm74_vm4, %v4265_v34 }
  0x3e   :  { %5102 = vmatpush3.bf16.msra.mxu1 %v5099_v37 }
  0x3f   :  { %5104 = vmatprep.subr.bf16.mxu1 %v5103_v40 }
  0x42   :  { %5106 = vmatpush3.bf16.msra.mxu1 %v5103_v40 }
  0x43   :  { %5113 = vmatprep.subr.bf16.mxu1 %v5545_v45 }
  0xa8   :  { %v262_v51 = vpop.permute.xlu0 %261 }
  0xa9   :  { %v268_v52 = vmul.f32 %v4273_v49, %v262_v51 }
  0xab   :  { %v274_v53 = vadd.f32 %v4274_v50, %v268_v52 }
  0xad   :  { %vm275_vm6 = vcmp.ge.f32.partialorder %v274_v53, 0.0  ;;  %v276_v54 = vmul.f32 0.01, %v274_v53 }
  0xaf   :  { %v277_v55 = vsel %vm275_vm6, %v274_v53, %v276_v54  ;;  %v375_v54 = vadd.f32 0.5, %v372_v18 }
  0xb0   :  { %4645 = vmatmul.mubr.msk.f32.vlgmr.msra.gmra.mrb[0].mxu0 %vm175_vm7, %v277_v55 }
  0xb1   :  { %4670 = vmatprep.mubr.msk.f32.mxu0 %vm5546_vm5, %v5547_v48  ;;  %v378_v55 = vmul.f32 0.125, %v375_v54 }
 0x110   :  { %v4624_v57 = vpop.f32.mrb[0].mxu1 }
 0x111   :  { %v157_v58 = vadd.f32 %v4624_v57, %v4266_v56  ;;  %v151_v59 = vpop.f32.mrb[1].mxu1 }
 0x112   :  { %v152_v60 = vadd.f32 %v4266_v56, %v151_v59  ;;  %v381_v56 = vfloor.f32 %v378_v55 }
 0x113   :  { %v163_v63 = vmul.f32 0.01, %v157_v58  ;;  %vm161_vm8 = vcmp.ge.f32.partialorder %v157_v58, 0.0 }
 0x114   :  { %vm160_vm9 = vcmp.ge.f32.partialorder %v152_v60, 0.0  ;;  %v162_v0 = vmul.f32 0.01, %v152_v60  ;;  %vm402_vm12 = vcmp.eq.f32.partialorder %v381_v56, %v5624_v20 }
 0x115   :  { %v165_v4 = vsel %vm161_vm8, %v157_v58, %v163_v63  ;;  %v5551_v58 = vmov -1e+30  }
 0x116   :  { %v164_v3 = vsel %vm160_vm9, %v152_v60, %v162_v0  ;;  %v5742_v59 = vsel %vm402_vm12, 0.0, %v5551_v58  ;;  %v5747_v0 = vsel %vm5627_vm2, 0.0, %v5551_v58 }
 0x117   :  { %4633 = vmatprep.mubr.msk.f32.mxu1 %vm175_vm7, %v164_v3  ;;  %v5753_v3 = vsel %vm5634_vm3, 0.0, %v5551_v58 }
 0x118   :  { %4634 = vmatmul.mubr.msk.f32.vlgmr.msra.gmra.mrb[2].mxu1 %vm175_vm7, %v165_v4 }
 0x119   :  { %5115 = vmatpush3.bf16.msra.mxu1 %v5114_v2  ;;  %4655 = vmatprep.mubr.msk.f32.mxu1 %vm5546_vm5, %v5547_v48 }
 0x11a   :  { %5116 = vmatprep.subr.bf16.mxu1 %v5545_v45 }
 0x11d   :  { %5118 = vmatpush3.bf16.msra.mxu1 %v5117_v7 }
 0x11e   :  { %5123 = vmatprep.subr.bf16.mxu1 %v5545_v45 }
 0x183   :  { %v356_v8 = vpop.f32.mrb[0].mxu0 }
 0x184   :  { %v4646_v9 = vpop.f32.mrb[1].mxu0  ;;  %v357_v23 = vadd.f32 %v4275_v15, %v356_v8 }
 0x186   :  { %v5668_v26 = vadd.f32 %v362_v24, %v357_v23 }
 0x1eb   :  { %v4635_v11 = vpop.f32.mrb[2].mxu1 }
 0x1ec   :  { %v248_v12 = vpop.f32.mrb[3].mxu1  ;;  %v254_v16 = vadd.f32 %v4635_v11, %v4270_v10 }
 0x1ed   :  { %v249_v14 = vadd.f32 %v4270_v10, %v248_v12 }
 0x1ee   :  { %v5666_v25 = vadd.f32 %v361_v19, %v254_v16 }
 0x1ef   :  { %v5660_v17 = vadd.f32 %v360_v13, %v249_v14 }
 0x1f1   :  { %4656 = vmatmul.mubr.msk.f32.vlgmr.msra.gmra.mrb[4].mxu1 %vm175_vm7, %v5660_v17 }
 0x1f2   :  { %4658 = vmatprep.mubr.msk.f32.mxu1 %vm5546_vm5, %v5547_v48 }
 0x1f5   :  { %4659 = vmatmul.mubr.msk.f32.gmra.mrb[6].mxu1 %vm175_vm7, %v5666_v25 }
 0x1f6   :  { %4661 = vmatprep.mubr.msk.f32.mxu1 %vm5546_vm5, %v5547_v48 }
 0x1f9   :  { %4662 = vmatmul.mubr.msk.f32.gmra.mrb[8].mxu1 %vm175_vm7, %v5668_v26 }
 0x1fa   :  { %4685 = vmatprep.mubr.msk.f32.mxu1 %vm5546_vm5, %v5547_v48 }
 0x2c4   :  { %v492_v27 = vpop.f32.mrb[4].mxu1 }
 0x2c5   :  { %v4657_v28 = vpop.f32.mrb[5].mxu1  ;;  %v5678_v31 = vadd.f32 %v4280_v29, %v492_v27 }
 0x2c8   :  { %v497_v30 = vpop.f32.mrb[6].mxu1 }
 0x2c9   :  { %v5680_v32 = vadd.f32 %v4280_v29, %v497_v30  ;;  %v4660_v33 = vpop.f32.mrb[7].mxu1 }
 0x2cb   :  { %v5684_v34 = vpack.i.bf16 %v5680_v32, %v5678_v31 }
 0x2cc   :  { %v502_v35 = vpop.f32.mrb[8].mxu1 }
 0x2cd   :  { %v5686_v36 = vadd.f32 %v4280_v29, %v502_v35  ;;  %5245 = vrot.lane.b32.xlu0 %v5684_v34, %s5548_s0  ;;  %v4663_v37 = vpop.f32.mrb[9].mxu1 }
 0x2cf   :  { %513 = vrot.lane.b32.xlu1 %v5686_v36, %s5548_s0 }
 0x2d1   :  { %760 = vrot.lane.b32.xlu0 %v5686_v36, %s5549_s18 }
 0x2d3   :  { %5250 = vrot.lane.b32.xlu1 %v5684_v34, %s5549_s18 }
 0x2d5   :  { %752 = vrot.lane.b32.xlu0 %v5680_v32, %s5550_s19 }
 0x2d7   :  { %750 = vrot.lane.b32.xlu1 %v5678_v31, %s5550_s19 }
 0x2db   :  { %754 = vrot.lane.b32.xlu1 %v5686_v36, %s5550_s19 }
 0x33f   :  { %v5246_v38 = vpop.permute.xlu0 %5245 }
 0x340   :  { %v5248_v39 = vunpack.i.h.bf16 %v5246_v38  ;;  %v5247_v40 = vunpack.i.l.bf16 %v5246_v38 }
 0x341   :  { %v514_v41 = vpop.permute.xlu1 %513 }
 0x342   :  { %v5120_v43 = vpack.c.bf16 %v5248_v39, %v5247_v40 }
 0x343   :  { %v761_v50 = vpop.permute.xlu0 %760 }
 0x344   :  { %5122 = vmatpush3.bf16.xpose.msk.msra.mxu0 %vm5704_vm11, %v5120_v43 }
 0x345   :  { %4668 = vmatprep.subr.mxu0 %v5547_v48  ;;  %v5251_v44 = vpop.permute.xlu1 %5250 }
 0x346   :  { %v5253_v46 = vunpack.i.h.bf16 %v5251_v44  ;;  %v5252_v47 = vunpack.i.l.bf16 %v5251_v44 }
 0x347   :  { %v753_v52 = vpop.permute.xlu0 %752 }
 0x348   :  { %v5127_v49 = vpack.c.bf16 %v5253_v46, %v5252_v47 }
 0x349   :  { %v751_v51 = vpop.permute.xlu1 %750 }
 0x34c   :  { %4669 = vmatpush3.xpose.msk.msra.mxu0 %vm515_vm10, %v514_v41 }
 0x34d   :  { %5126 = vmatprep.subr.bf16.mxu0 %v5545_v45  ;;  %v755_v53 = vpop.permute.xlu1 %754 }
 0x34f   :  { %4671 = vmatmul.mubr.msk.f32.vlgmr.msra.gmra.mrb[2].mxu0 %vm515_vm10, %v5678_v31 }
 0x350   :  { %5129 = vmatpush3.bf16.xpose.msk.msra.mxu0 %vm5704_vm11, %v5127_v49  ;;  %4673 = vmatprep.mubr.msk.f32.mxu0 %vm5546_vm5, %v5547_v48 }
 0x351   :  { %4698 = vmatprep.subr.mxu0 %v5547_v48 }
 0x353   :  { %4674 = vmatmul.mubr.msk.f32.gmra.mrb[4].mxu0 %vm515_vm10, %v5680_v32 }
 0x354   :  { %4676 = vmatprep.mubr.msk.f32.mxu0 %vm5546_vm5, %v5547_v48 }
 0x357   :  { %4677 = vmatmul.mubr.msk.f32.gmra.mrb[6].mxu0 %vm515_vm10, %v5686_v36 }
 0x358   :  { %4699 = vmatpush3.xpose.msk.msra.mxu0 %vm515_vm10, %v761_v50  ;;  %4700 = vmatprep.mubr.msk.f32.mxu0 %vm5546_vm5, %v5547_v48 }
 0x359   :  { %4724 = vmatprep.subr.mxu0 %v5547_v48 }
 0x35b   :  { %4701 = vmatmul.mubr.msk.f32.vlgmr.msra.gmra.mrb[8].mxu0 %vm515_vm10, %v751_v51 }
 0x35c   :  { %4703 = vmatprep.mubr.msk.f32.mxu0 %vm5546_vm5, %v5547_v48 }
 0x35f   :  { %4704 = vmatmul.mubr.msk.f32.gmra.mrb[10].mxu0 %vm515_vm10, %v753_v52 }
 0x360   :  { %4706 = vmatprep.mubr.msk.f32.mxu0 %vm5546_vm5, %v5547_v48 }
 0x363   :  { %4707 = vmatmul.mubr.msk.f32.gmra.mrb[12].mxu0 %vm515_vm10, %v755_v53 }
 0x364   :  { %4726 = vmatprep.mubr.msk.f32.mxu0 %vm5546_vm5, %v5547_v48 }
 0x422   :  { %v594_v57 = vpop.f32.mrb[2].mxu0 }
 0x423   :  { %v608_v60 = vmul.f32 0.35355338, %v594_v57  ;;  %v4672_v61 = vpop.f32.mrb[3].mxu0 }
 0x425   :  { %v611_v62 = vadd.f32 %v608_v60, %v5742_v59 }
 0x426   :  { %v599_v63 = vpop.f32.mrb[4].mxu0 }
 0x427   :  { %v609_v1 = vmul.f32 0.35355338, %v599_v63  ;;  %v4675_v18 = vpop.f32.mrb[5].mxu0  ;;  %v615_v2 = vsel %vm614_vm13, %v611_v62, -inf }
 0x428   :  { %616 = vmax.xlane.f32.xlu0 %v615_v2 }
 0x429   :  { %v612_v20 = vadd.f32 %v609_v1, %v5747_v0 }
 0x42a   :  { %v604_v4 = vpop.f32.mrb[6].mxu0 }
 0x42b   :  { %v610_v5 = vmul.f32 0.35355338, %v604_v4  ;;  %v4678_v6 = vpop.f32.mrb[7].mxu0  ;;  %v618_v7 = vsel %vm614_vm13, %v612_v20, -inf }
 0x42c   :  { %619 = vmax.xlane.f32.xlu1 %v618_v7 }
 0x42d   :  { %v613_v21 = vadd.f32 %v610_v5, %v5753_v3 }
 0x42e   :  { %v840_v8 = vpop.f32.mrb[8].mxu0 }
 0x42f   :  { %v854_v9 = vmul.f32 0.35355338, %v840_v8  ;;  %v4702_v10 = vpop.f32.mrb[9].mxu0  ;;  %v622_v11 = vsel %vm621_vm14, %v613_v21, -inf }
 0x430   :  { %623 = vmax.xlane.f32.xlu0 %v622_v11 }
 0x431   :  { %v857_v12 = vadd.f32 %v854_v9, %v5742_v59 }
 0x432   :  { %v845_v22 = vpop.f32.mrb[10].mxu0 }
 0x433   :  { %v855_v13 = vmul.f32 0.35355338, %v845_v22  ;;  %v4705_v14 = vpop.f32.mrb[11].mxu0  ;;  %v860_v15 = vsel %vm614_vm13, %v857_v12, -inf }
 0x434   :  { %861 = vmax.xlane.f32.xlu0 %v860_v15 }
 0x435   :  { %v858_v16 = vadd.f32 %v855_v13, %v5747_v0 }
 0x436   :  { %v850_v19 = vpop.f32.mrb[12].mxu0 }
 0x437   :  { %v856_v23 = vmul.f32 0.35355338, %v850_v19  ;;  %v4708_v24 = vpop.f32.mrb[13].mxu0  ;;  %v863_v27 = vsel %vm614_vm13, %v858_v16, -inf }
 0x438   :  { %864 = vmax.xlane.f32.xlu1 %v863_v27 }
 0x439   :  { %v859_v28 = vadd.f32 %v856_v23, %v5753_v3 }
 0x43b   :  { %v866_v29 = vsel %vm621_vm14, %v859_v28, -inf }
 0x43c   :  { %867 = vmax.xlane.f32.xlu0 %v866_v29 }
 0x449   :  { %653 = vrot.lane.b32.xlu1 %v5686_v36, %s5552_s20 }
 0x452   :  { %5255 = vrot.lane.b32.xlu0 %v5684_v34, %s5552_s20 }
 0x4b5   :  { %v617_v30 = vpop.xlane.xlu0 %616 }
 0x4b6   :  { %v625_v33 = vsub.f32 %v611_v62, %v617_v30 }
 0x4b8   :  { %v628_v35 = vmul.f32 1.442695, %v625_v33 }
 0x4b9   :  { %v620_v37 = vpop.xlane.xlu1 %619 }
 0x4ba   :  { %5326 = vpow2.f32 %v628_v35  ;;  %v626_v38 = vsub.f32 %v612_v20, %v620_v37 }
 0x4bc   :  { %v630_v39 = vmul.f32 1.442695, %v626_v38 }
 0x4bd   :  { %v624_v40 = vpop.xlane.xlu0 %623 }
 0x4be   :  { %5328 = vpow2.f32 %v630_v39  ;;  %v627_v41 = vsub.f32 %v613_v21, %v624_v40 }
 0x4c0   :  { %v632_v43 = vmul.f32 1.442695, %v627_v41  ;;  %v749_v41 = vld [vmem:[#allocation5 + $0xa8] sm:$0xff] }
 0x4c1   :  { %v862_v44 = vpop.xlane.xlu0 %861 }
 0x4c2   :  { %5330 = vpow2.f32 %v632_v43  ;;  %v869_v46 = vsub.f32 %v857_v12, %v862_v44  ;;  %v992_v43 = vld [vmem:[#allocation5 + $0xb0] sm:$0xff] }
 0x4c3   :  { %4725 = vmatpush3.msra.mxu0 %v992_v43 }
 0x4c4   :  { %v5327_v47 = vpop.eup %5326  ;;  %v872_v49 = vmul.f32 1.442695, %v869_v46  ;;  %5133 = vmatprep.subr.bf16.mxu0 %v5545_v45 }
 0x4c5   :  { %v865_v50 = vpop.xlane.xlu1 %864  ;;  %v634_v51 = vsel %vm614_vm13, %v5327_v47, 0.0 }
 0x4c6   :  { %5332 = vpow2.f32 %v872_v49  ;;  %v870_v52 = vsub.f32 %v858_v16, %v865_v50  ;;  %635 = vadd.xlane.f32.xlu1 %v634_v51 }
 0x4c8   :  { %v5329_v53 = vpop.eup %5328  ;;  %v874_v54 = vmul.f32 1.442695, %v870_v52 }
 0x4c9   :  { %v868_v55 = vpop.xlane.xlu0 %867  ;;  %v637_v56 = vsel %vm614_vm13, %v5329_v53, 0.0  ;;  %v654_v5 = vpop.permute.xlu1 %653 }
 0x4ca   :  { %5334 = vpow2.f32 %v874_v54  ;;  %v871_v57 = vsub.f32 %v859_v28, %v868_v55  ;;  %638 = vadd.xlane.f32.xlu0 %v637_v56 }
 0x4cc   :  { %v5331_v58 = vpop.eup %5330  ;;  %v876_v60 = vmul.f32 1.442695, %v871_v57 }
 0x4cd   :  { %v5256_v61 = vpop.permute.xlu0 %5255  ;;  %v640_v62 = vsel %vm621_vm14, %v5331_v58, 0.0 }
 0x4ce   :  { %5336 = vpow2.f32 %v876_v60  ;;  %v5258_v63 = vunpack.i.h.bf16 %v5256_v61  ;;  %v5257_v1 = vunpack.i.l.bf16 %v5256_v61  ;;  %641 = vadd.xlane.f32.xlu1 %v640_v62 }
 0x4d0   :  { %v5333_v18 = vpop.eup %5332  ;;  %v5124_v2 = vpack.c.bf16 %v5258_v63, %v5257_v1 }
 0x4d1   :  { %v878_v20 = vsel %vm614_vm13, %v5333_v18, 0.0 }
 0x4d2   :  { %879 = vadd.xlane.f32.xlu0 %v878_v20  ;;  %5125 = vmatpush3.bf16.msra.mxu1 %v5124_v2 }
 0x4d3   :  { %4683 = vmatprep.subr.mxu1 %v5547_v48 }
 0x4d4   :  { %v5335_v4 = vpop.eup %5334 }
 0x4d5   :  { %v881_v6 = vsel %vm614_vm13, %v5335_v4, 0.0 }
 0x4d6   :  { %882 = vadd.xlane.f32.xlu1 %v881_v6  ;;  %4684 = vmatpush3.msk.msra.mxu1 %vm666_vm15, %v654_v5 }
 0x4d7   :  { %5130 = vmatprep.subr.bf16.mxu1 %v5545_v45 }
 0x4d8   :  { %v5337_v7 = vpop.eup %5336 }
 0x4d9   :  { %v884_v21 = vsel %vm621_vm14, %v5337_v7, 0.0 }
 0x4da   :  { %885 = vadd.xlane.f32.xlu1 %v884_v21 }
 0x4e8   :  { %5260 = vrot.lane.b32.xlu0 %v5684_v34, %s5553_s21 }
 0x4eb   :  { %897 = vrot.lane.b32.xlu1 %v5686_v36, %s5553_s21 }
 0x4ec   :  { %5265 = vrot.lane.b32.xlu0 %v5684_v34, %s5554_s22 }
 0x4ef   :  { %1181 = vrot.lane.b32.xlu1 %v5686_v36, %s5554_s22 }
 0x4f0   :  { %1171 = vrot.lane.b32.xlu0 %v5678_v31, %s5555_s23 }
 0x4f3   :  { %1173 = vrot.lane.b32.xlu1 %v5680_v32, %s5555_s23 }
 0x4f4   :  { %1175 = vrot.lane.b32.xlu0 %v5686_v36, %s5555_s23 }
 0x553   :  { %v636_v8 = vpop.xlane.xlu1 %635 }
 0x554   :  { %5338 = vrcp.f32 %v636_v8 }
 0x557   :  { %v639_v9 = vpop.xlane.xlu0 %638 }
 0x558   :  { %5340 = vrcp.f32 %v639_v9 }
 0x55b   :  { %v642_v10 = vpop.xlane.xlu1 %641 }
 0x55c   :  { %5342 = vrcp.f32 %v642_v10 }
 0x55e   :  { %v5339_v11 = vpop.eup %5338 }
 0x55f   :  { %v646_v12 = vmul.f32 %v5339_v11, %v5327_v47  ;;  %v880_v22 = vpop.xlane.xlu0 %879 }
 0x560   :  { %5344 = vrcp.f32 %v880_v22 }
 0x561   :  { %4686 = vmatmul.mubr.msk.f32.vlgmr.msra.gmra.mrb[10].mxu1 %vm614_vm13, %v646_v12 }
 0x562   :  { %v5341_v13 = vpop.eup %5340  ;;  %4688 = vmatprep.mubr.msk.f32.mxu1 %vm5546_vm5, %v5547_v48 }
 0x563   :  { %v883_v14 = vpop.xlane.xlu1 %882  ;;  %v5261_v15 = vpop.permute.xlu0 %5260  ;;  %v647_v16 = vmul.f32 %v5341_v13, %v5329_v53 }
 0x564   :  { %5346 = vrcp.f32 %v883_v14  ;;  %v5263_v19 = vunpack.i.h.bf16 %v5261_v15  ;;  %v5262_v23 = vunpack.i.l.bf16 %v5261_v15 }
 0x565   :  { %4689 = vmatmul.mubr.msk.f32.gmra.mrb[12].mxu1 %vm614_vm13, %v647_v16 }
 0x566   :  { %v5343_v24 = vpop.eup %5342  ;;  %v5131_v27 = vpack.c.bf16 %v5263_v19, %v5262_v23  ;;  %4691 = vmatprep.mubr.msk.f32.mxu1 %vm5546_vm5, %v5547_v48 }
 0x567   :  { %v886_v28 = vpop.xlane.xlu1 %885  ;;  %v648_v29 = vmul.f32 %v5343_v24, %v5331_v58  ;;  %v5266_v49 = vpop.permute.xlu0 %5265 }
 0x568   :  { %5348 = vrcp.f32 %v886_v28  ;;  %5132 = vmatpush3.bf16.msra.mxu1 %v5131_v27  ;;  %v5268_v51 = vunpack.i.h.bf16 %v5266_v49  ;;  %v5267_v52 = vunpack.i.l.bf16 %v5266_v49 }
 0x569   :  { %4692 = vmatmul.mubr.msk.f32.gmra.mrb[14].mxu1 %vm614_vm13, %v648_v29  ;;  %4713 = vmatprep.subr.mxu1 %v5547_v48 }
 0x56a   :  { %v5345_v30 = vpop.eup %5344  ;;  %4715 = vmatprep.mubr.msk.f32.mxu1 %vm5546_vm5, %v5547_v48  ;;  %v5134_v55 = vpack.c.bf16 %v5268_v51, %v5267_v52 }
 0x56b   :  { %v890_v33 = vmul.f32 %v5345_v30, %v5333_v18  ;;  %v898_v35 = vpop.permute.xlu1 %897  ;;  %v1172_v1 = vpop.permute.xlu0 %1171 }
 0x56c   :  { %4714 = vmatpush3.msk.msra.mxu1 %vm666_vm15, %v898_v35 }
 0x56d   :  { %4716 = vmatmul.mubr.msk.f32.vlgmr.msra.gmra.mrb[16].mxu1 %vm614_vm13, %v890_v33  ;;  %4735 = vmatprep.subr.mxu1 %v5547_v48 }
 0x56e   :  { %v5347_v37 = vpop.eup %5346  ;;  %4718 = vmatprep.mubr.msk.f32.mxu1 %vm5546_vm5, %v5547_v48  ;;  %4736 = vmatpush3.msra.mxu1 %v749_v41 }
 0x56f   :  { %v891_v38 = vmul.f32 %v5347_v37, %v5335_v4  ;;  %5137 = vmatprep.subr.bf16.mxu1 %v5545_v45  ;;  %v1182_v62 = vpop.permute.xlu1 %1181  ;;  %v1176_v2 = vpop.permute.xlu0 %1175 }
 0x571   :  { %4719 = vmatmul.mubr.msk.f32.gmra.mrb[18].mxu1 %vm614_vm13, %v891_v38 }
 0x572   :  { %v5349_v39 = vpop.eup %5348  ;;  %4721 = vmatprep.mubr.msk.f32.mxu1 %vm5546_vm5, %v5547_v48 }
 0x573   :  { %v892_v40 = vmul.f32 %v5349_v39, %v5337_v7  ;;  %v1174_v18 = vpop.permute.xlu1 %1173 }
 0x575   :  { %4722 = vmatmul.mubr.msk.f32.gmra.mrb[20].mxu1 %vm614_vm13, %v892_v40 }
 0x576   :  { %4737 = vmatprep.mubr.msk.f32.mxu1 %vm5546_vm5, %v5547_v48 }
 0x634   :  { %v735_v44 = vpop.f32.mrb[10].mxu1 }
 0x635   :  { %v4687_v46 = vpop.f32.mrb[11].mxu1  ;;  %4738 = vmatmul.mubr.msk.f32.vlgmr.msra.gmra.mrb[22].mxu1 %vm515_vm10, %v735_v44 }
 0x636   :  { %4740 = vmatprep.mubr.msk.f32.mxu1 %vm5546_vm5, %v5547_v48 }
 0x638   :  { %v740_v47 = vpop.f32.mrb[12].mxu1 }
 0x639   :  { %v4690_v50 = vpop.f32.mrb[13].mxu1  ;;  %4741 = vmatmul.mubr.msk.f32.gmra.mrb[24].mxu1 %vm515_vm10, %v740_v47 }
 0x63a   :  { %4743 = vmatprep.mubr.msk.f32.mxu1 %vm5546_vm5, %v5547_v48 }
 0x63c   :  { %v745_v53 = vpop.f32.mrb[14].mxu1 }
 0x63d   :  { %v4693_v54 = vpop.f32.mrb[15].mxu1  ;;  %4744 = vmatmul.mubr.msk.f32.gmra.mrb[26].mxu1 %vm515_vm10, %v745_v53 }
 0x63e   :  { %4767 = vmatprep.mubr.msk.f32.mxu1 %vm5546_vm5, %v5547_v48 }
 0x640   :  { %v978_v56 = vpop.f32.mrb[16].mxu1 }
 0x641   :  { %v4717_v57 = vpop.f32.mrb[17].mxu1  ;;  %4727 = vmatmul.mubr.msk.f32.vlgmr.msra.gmra.mrb[14].mxu0 %vm515_vm10, %v978_v56 }
 0x642   :  { %5136 = vmatpush3.bf16.xpose.msk.msra.mxu0 %vm5704_vm11, %v5134_v55  ;;  %4729 = vmatprep.mubr.msk.f32.mxu0 %vm5546_vm5, %v5547_v48 }
 0x643   :  { %4750 = vmatprep.subr.mxu0 %v5547_v48 }
 0x644   :  { %v983_v58 = vpop.f32.mrb[18].mxu1 }
 0x645   :  { %v4720_v60 = vpop.f32.mrb[19].mxu1  ;;  %4730 = vmatmul.mubr.msk.f32.gmra.mrb[16].mxu0 %vm515_vm10, %v983_v58 }
 0x646   :  { %4732 = vmatprep.mubr.msk.f32.mxu0 %vm5546_vm5, %v5547_v48 }
 0x648   :  { %v988_v61 = vpop.f32.mrb[20].mxu1 }
 0x649   :  { %v4723_v63 = vpop.f32.mrb[21].mxu1  ;;  %4733 = vmatmul.mubr.msk.f32.gmra.mrb[18].mxu0 %vm515_vm10, %v988_v61 }
 0x64a   :  { %4751 = vmatpush3.xpose.msk.msra.mxu0 %vm515_vm10, %v1182_v62  ;;  %4752 = vmatprep.mubr.msk.f32.mxu0 %vm5546_vm5, %v5547_v48 }
 0x64b   :  { %4776 = vmatprep.subr.mxu0 %v5547_v48 }
 0x64d   :  { %4753 = vmatmul.mubr.msk.f32.vlgmr.msra.gmra.mrb[20].mxu0 %vm515_vm10, %v1172_v1 }
 0x64e   :  { %4755 = vmatprep.mubr.msk.f32.mxu0 %vm5546_vm5, %v5547_v48 }
 0x651   :  { %4756 = vmatmul.mubr.msk.f32.gmra.mrb[22].mxu0 %vm515_vm10, %v1174_v18 }
 0x652   :  { %4758 = vmatprep.mubr.msk.f32.mxu0 %vm5546_vm5, %v5547_v48 }
 0x655   :  { %4759 = vmatmul.mubr.msk.f32.gmra.mrb[24].mxu0 %vm515_vm10, %v1176_v2 }
 0x656   :  { %4778 = vmatprep.mubr.msk.f32.mxu0 %vm5546_vm5, %v5547_v48 }
 0x708   :  { %v1157_v20 = vpop.f32.mrb[22].mxu1 }
 0x709   :  { %v4739_v4 = vpop.f32.mrb[23].mxu1 }
 0x70c   :  { %v1162_v5 = vpop.f32.mrb[24].mxu1 }
 0x70d   :  { %v4742_v6 = vpop.f32.mrb[25].mxu1 }
 0x710   :  { %v1167_v7 = vpop.f32.mrb[26].mxu1 }
 0x711   :  { %v4745_v21 = vpop.f32.mrb[27].mxu1 }
 0x714   :  { %v1068_v8 = vpop.f32.mrb[14].mxu0 }
 0x715   :  { %v5846_v9 = vadd.f32 %v1157_v20, %v1068_v8  ;;  %v4728_v10 = vpop.f32.mrb[15].mxu0 }
 0x718   :  { %v1073_v11 = vpop.f32.mrb[16].mxu0 }
 0x719   :  { %v5848_v12 = vadd.f32 %v1162_v5, %v1073_v11  ;;  %v4731_v22 = vpop.f32.mrb[17].mxu0 }
 0x71c   :  { %v1078_v13 = vpop.f32.mrb[18].mxu0 }
 0x71d   :  { %v5850_v14 = vadd.f32 %v1167_v7, %v1078_v13  ;;  %v4734_v15 = vpop.f32.mrb[19].mxu0 }
 0x720   :  { %v1261_v16 = vpop.f32.mrb[20].mxu0 }
 0x721   :  { %v1275_v19 = vmul.f32 0.35355338, %v1261_v16  ;;  %v4754_v23 = vpop.f32.mrb[21].mxu0 }
 0x722   :  { %v1413_v23 = vld [vmem:[#allocation5 + $0xb8] sm:$0xff] }
 0x723   :  { %v1278_v24 = vadd.f32 %v1275_v19, %v5742_v59  ;;  %4777 = vmatpush3.msra.mxu0 %v1413_v23 }
 0x724   :  { %v1266_v27 = vpop.f32.mrb[22].mxu0  ;;  %5144 = vmatprep.subr.bf16.mxu0 %v5545_v45 }
 0x725   :  { %v1276_v28 = vmul.f32 0.35355338, %v1266_v27  ;;  %v4757_v29 = vpop.f32.mrb[23].mxu0  ;;  %v1281_v30 = vsel %vm614_vm13, %v1278_v24, -inf }
 0x726   :  { %1282 = vmax.xlane.f32.xlu1 %v1281_v30 }
 0x727   :  { %v1279_v33 = vadd.f32 %v1276_v28, %v5747_v0 }
 0x728   :  { %v1271_v35 = vpop.f32.mrb[24].mxu0 }
 0x729   :  { %v1277_v37 = vmul.f32 0.35355338, %v1271_v35  ;;  %v4760_v38 = vpop.f32.mrb[25].mxu0  ;;  %v1284_v39 = vsel %vm614_vm13, %v1279_v33, -inf }
 0x72a   :  { %1285 = vmax.xlane.f32.xlu0 %v1284_v39 }
 0x72b   :  { %v1280_v40 = vadd.f32 %v1277_v37, %v5753_v3 }
 0x72d   :  { %v1287_v41 = vsel %vm621_vm14, %v1280_v40, -inf }
 0x72e   :  { %1288 = vmax.xlane.f32.xlu0 %v1287_v41 }
 0x7b3   :  { %v1283_v43 = vpop.xlane.xlu1 %1282 }
 0x7b4   :  { %v1290_v44 = vsub.f32 %v1278_v24, %v1283_v43 }
 0x7b6   :  { %v1293_v46 = vmul.f32 1.442695, %v1290_v44 }
 0x7b7   :  { %v1286_v47 = vpop.xlane.xlu0 %1285 }
 0x7b8   :  { %5350 = vpow2.f32 %v1293_v46  ;;  %v1291_v49 = vsub.f32 %v1279_v33, %v1286_v47 }
 0x7ba   :  { %v1295_v50 = vmul.f32 1.442695, %v1291_v49 }
 0x7bb   :  { %v1289_v55 = vpop.xlane.xlu0 %1288 }
 0x7bc   :  { %5352 = vpow2.f32 %v1295_v50  ;;  %v1292_v56 = vsub.f32 %v1280_v40, %v1289_v55 }
 0x7be   :  { %v1297_v57 = vmul.f32 1.442695, %v1292_v56 }
 0x7c0   :  { %5354 = vpow2.f32 %v1297_v57 }
 0x7c2   :  { %v5351_v51 = vpop.eup %5350 }
 0x7c3   :  { %v1299_v52 = vsel %vm614_vm13, %v5351_v51, 0.0 }
 0x7c4   :  { %1300 = vadd.xlane.f32.xlu1 %v1299_v52 }
 0x7c6   :  { %v5353_v53 = vpop.eup %5352 }
 0x7c7   :  { %v1302_v54 = vsel %vm614_vm13, %v5353_v53, 0.0 }
 0x7c8   :  { %1303 = vadd.xlane.f32.xlu0 %v1302_v54 }
 0x7ca   :  { %v5355_v58 = vpop.eup %5354 }
 0x7cb   :  { %v1305_v60 = vsel %vm621_vm14, %v5355_v58, 0.0 }
 0x7d5   :  { %1318 = vrot.lane.b32.xlu1 %v5686_v36, %s5556_s24 }
 0x7d9   :  { %5275 = vrot.lane.b32.xlu1 %v5684_v34, %s5557_s27 }
 0x7de   :  { %5270 = vrot.lane.b32.xlu0 %v5684_v34, %s5556_s24 }
 0x7e2   :  { %1516 = vrot.lane.b32.xlu0 %v5686_v36, %s5557_s27 }
 0x7e6   :  { %1508 = vrot.lane.b32.xlu0 %v5680_v32, %s5558_s28 }
 0x7fd   :  { %1306 = vadd.xlane.f32.xlu1 %v1305_v60 }
 0x80e   :  { %1506 = vrot.lane.b32.xlu1 %v5678_v31, %s5558_s28 }
 0x812   :  { %1510 = vrot.lane.b32.xlu1 %v5686_v36, %s5558_s28 }
 0x851   :  { %v1301_v61 = vpop.xlane.xlu1 %1300 }
 0x852   :  { %5356 = vrcp.f32 %v1301_v61 }
 0x855   :  { %v1304_v62 = vpop.xlane.xlu0 %1303  ;;  %v1319_v1 = vpop.permute.xlu1 %1318 }
 0x856   :  { %5358 = vrcp.f32 %v1304_v62 }
 0x859   :  { %v5271_v63 = vpop.permute.xlu0 %5270  ;;  %v5276_v4 = vpop.permute.xlu1 %5275 }
 0x85a   :  { %v5273_v32 = vunpack.i.h.bf16 %v5271_v63  ;;  %v5272_v18 = vunpack.i.l.bf16 %v5271_v63  ;;  %v5278_v31 = vunpack.i.h.bf16 %v5276_v4  ;;  %v5277_v7 = vunpack.i.l.bf16 %v5276_v4 }
 0x85c   :  { %v5138_v2 = vpack.c.bf16 %v5273_v32, %v5272_v18  ;;  %v5357_v20 = vpop.eup %5356  ;;  %v5141_v8 = vpack.c.bf16 %v5278_v31, %v5277_v7 }
 0x85d   :  { %v1311_v5 = vmul.f32 %v5357_v20, %v5351_v51  ;;  %v1517_v10 = vpop.permute.xlu0 %1516 }
 0x85e   :  { %5139 = vmatpush3.bf16.msra.mxu1 %v5138_v2 }
 0x85f   :  { %4765 = vmatprep.subr.mxu1 %v5547_v48 }
 0x860   :  { %v5359_v6 = vpop.eup %5358 }
 0x861   :  { %v1312_v21 = vmul.f32 %v5359_v6, %v5353_v53  ;;  %v1509_v16 = vpop.permute.xlu0 %1508 }
 0x862   :  { %4766 = vmatpush3.msk.msra.mxu1 %vm666_vm15, %v1319_v1 }
 0x863   :  { %4768 = vmatmul.mubr.msk.f32.vlgmr.msra.gmra.mrb[28].mxu1 %vm614_vm13, %v1311_v5  ;;  %5140 = vmatprep.subr.bf16.mxu1 %v5545_v45 }
 0x864   :  { %4770 = vmatprep.mubr.msk.f32.mxu1 %vm5546_vm5, %v5547_v48 }
 0x867   :  { %4771 = vmatmul.mubr.msk.f32.gmra.mrb[30].mxu1 %vm614_vm13, %v1312_v21 }
 0x868   :  { %4773 = vmatprep.mubr.msk.f32.mxu1 %vm5546_vm5, %v5547_v48 }
 0x869   :  { %5143 = vmatpush3.bf16.xpose.msk.msra.mxu1 %vm5704_vm11, %v5141_v8 }
 0x86a   :  { %4791 = vmatprep.subr.mxu1 %v5547_v48 }
 0x871   :  { %4792 = vmatpush3.xpose.msk.msra.mxu1 %vm515_vm10, %v1517_v10 }
 0x872   :  { %4817 = vmatprep.subr.mxu1 %v5547_v48 }
 0x88a   :  { %v1307_v11 = vpop.xlane.xlu1 %1306 }
 0x88b   :  { %5360 = vrcp.f32 %v1307_v11 }
 0x88e   :  { %v1507_v15 = vpop.permute.xlu1 %1506 }
 0x892   :  { %v1511_v19 = vpop.permute.xlu1 %1510 }
 0x895   :  { %v5361_v22 = vpop.eup %5360 }
 0x896   :  { %v1313_v13 = vmul.f32 %v5361_v22, %v5355_v58 }
 0x898   :  { %4774 = vmatmul.mubr.msk.f32.gmra.mrb[32].mxu1 %vm614_vm13, %v1313_v13 }
 0x899   :  { %4793 = vmatprep.mubr.msk.f32.mxu1 %vm5546_vm5, %v5547_v48 }
 0x89c   :  { %4794 = vmatmul.mubr.msk.f32.vlgmr.msra.gmra.mrb[34].mxu1 %vm515_vm10, %v1507_v15 }
 0x89d   :  { %4796 = vmatprep.mubr.msk.f32.mxu1 %vm5546_vm5, %v5547_v48 }
 0x8a0   :  { %4797 = vmatmul.mubr.msk.f32.gmra.mrb[36].mxu1 %vm515_vm10, %v1509_v16 }
 0x8a1   :  { %4799 = vmatprep.mubr.msk.f32.mxu1 %vm5546_vm5, %v5547_v48 }
 0x8a4   :  { %4800 = vmatmul.mubr.msk.f32.gmra.mrb[38].mxu1 %vm515_vm10, %v1511_v19 }
 0x8a5   :  { %4819 = vmatprep.mubr.msk.f32.mxu1 %vm5546_vm5, %v5547_v48 }
 0x936   :  { %v1399_v24 = vpop.f32.mrb[28].mxu1 }
 0x937   :  { %v4769_v27 = vpop.f32.mrb[29].mxu1  ;;  %4779 = vmatmul.mubr.msk.f32.vlgmr.msra.gmra.mrb[26].mxu0 %vm515_vm10, %v1399_v24 }
 0x938   :  { %4781 = vmatprep.mubr.msk.f32.mxu0 %vm5546_vm5, %v5547_v48 }
 0x93a   :  { %v1404_v28 = vpop.f32.mrb[30].mxu1 }
 0x93b   :  { %v4772_v29 = vpop.f32.mrb[31].mxu1  ;;  %4782 = vmatmul.mubr.msk.f32.gmra.mrb[28].mxu0 %vm515_vm10, %v1404_v28 }
 0x93c   :  { %4784 = vmatprep.mubr.msk.f32.mxu0 %vm5546_vm5, %v5547_v48 }
 0x96b   :  { %v1409_v30 = vpop.f32.mrb[32].mxu1 }
 0x96c   :  { %v4775_v33 = vpop.f32.mrb[33].mxu1  ;;  %4785 = vmatmul.mubr.msk.f32.gmra.mrb[30].mxu0 %vm515_vm10, %v1409_v30 }
 0x96d   :  { %4808 = vmatprep.mubr.msk.f32.mxu0 %vm5546_vm5, %v5547_v48 }
 0x96f   :  { %v1596_v35 = vpop.f32.mrb[34].mxu1 }
 0x970   :  { %v1610_v37 = vmul.f32 0.35355338, %v1596_v35  ;;  %v4795_v38 = vpop.f32.mrb[35].mxu1 }
 0x972   :  { %v1613_v39 = vadd.f32 %v1610_v37, %v5742_v59 }
 0x973   :  { %v1601_v40 = vpop.f32.mrb[36].mxu1 }
 0x974   :  { %v1611_v41 = vmul.f32 0.35355338, %v1601_v40  ;;  %v4798_v43 = vpop.f32.mrb[37].mxu1  ;;  %v1616_v44 = vsel %vm614_vm13, %v1613_v39, -inf }
 0x975   :  { %1617 = vmax.xlane.f32.xlu0 %v1616_v44 }
 0x976   :  { %v1614_v46 = vadd.f32 %v1611_v41, %v5747_v0 }
 0x977   :  { %v1606_v47 = vpop.f32.mrb[38].mxu1 }
 0x978   :  { %v1612_v49 = vmul.f32 0.35355338, %v1606_v47  ;;  %v4801_v50 = vpop.f32.mrb[39].mxu1  ;;  %v1619_v51 = vsel %vm614_vm13, %v1614_v46, -inf }
 0x979   :  { %1620 = vmax.xlane.f32.xlu1 %v1619_v51 }
 0x97a   :  { %v1615_v52 = vadd.f32 %v1612_v49, %v5753_v3 }
 0x97c   :  { %v1622_v53 = vsel %vm621_vm14, %v1615_v52, -inf }
 0x97d   :  { %1623 = vmax.xlane.f32.xlu0 %v1622_v53 }
 0xa02   :  { %v1618_v54 = vpop.xlane.xlu0 %1617 }
 0xa03   :  { %v1625_v55 = vsub.f32 %v1613_v39, %v1618_v54 }
 0xa05   :  { %v1628_v56 = vmul.f32 1.442695, %v1625_v55 }
 0xa06   :  { %v1621_v57 = vpop.xlane.xlu1 %1620 }
 0xa07   :  { %5362 = vpow2.f32 %v1628_v56  ;;  %v1626_v58 = vsub.f32 %v1614_v46, %v1621_v57  ;;  %v4336_v46 = vld [vmem:[#allocation2 + $0xa] ss:$0 sm:$0xff] }
 0xa09   :  { %v1630_v60 = vmul.f32 1.442695, %v1626_v58 }
 0xa0a   :  { %v1489_v61 = vpop.f32.mrb[26].mxu0  ;;  %v1624_v62 = vpop.xlane.xlu0 %1623 }
 0xa0b   :  { %5364 = vpow2.f32 %v1630_v60  ;;  %v5918_v63 = vadd.f32 %v1489_v61, %v5846_v9  ;;  %v1627_v1 = vsub.f32 %v1615_v52, %v1624_v62  ;;  %v4780_v32 = vpop.f32.mrb[27].mxu0 }
 0xa0d   :  { %v1632_v18 = vmul.f32 1.442695, %v1627_v1 }
 0xa0e   :  { %v1494_v2 = vpop.f32.mrb[28].mxu0 }
 0xa0f   :  { %5366 = vpow2.f32 %v1632_v18  ;;  %v5921_v20 = vadd.f32 %v1494_v2, %v5848_v12  ;;  %v4783_v4 = vpop.f32.mrb[29].mxu0  ;;  %v1748_v12 = vld [vmem:[#allocation5 + $0xc0] sm:$0xff] }
 0xa10   :  { %4818 = vmatpush3.msra.mxu1 %v1748_v12  ;;  %v1909_v12 = vld [vmem:[#allocation5 + $0xc8] sm:$0xff] }
 0xa11   :  { %v5363_v5 = vpop.eup %5362  ;;  %5153 = vmatprep.subr.bf16.mxu1 %v5545_v45 }
 0xa12   :  { %v1634_v6 = vsel %vm614_vm13, %v5363_v5, 0.0 }
 0xa13   :  { %1635 = vadd.xlane.f32.xlu0 %v1634_v6 }
 0xa15   :  { %v5365_v31 = vpop.eup %5364 }
 0xa16   :  { %v1637_v7 = vsel %vm614_vm13, %v5365_v31, 0.0 }
 0xa17   :  { %1638 = vadd.xlane.f32.xlu1 %v1637_v7 }
 0xa19   :  { %v5367_v21 = vpop.eup %5366 }
 0xa1a   :  { %v1640_v9 = vsel %vm621_vm14, %v5367_v21, 0.0 }
 0xa1b   :  { %1641 = vadd.xlane.f32.xlu0 %v1640_v9 }
 0xa28   :  { %5280 = vrot.lane.b32.xlu1 %v5684_v34, %s5559_s29 }
 0xa31   :  { %1653 = vrot.lane.b32.xlu0 %v5686_v36, %s5559_s29 }
 0xa3f   :  { %v1499_v8 = vpop.f32.mrb[30].mxu0 }
 0xa40   :  { %v1505_v10 = vadd.f32 %v1499_v8, %v5850_v14  ;;  %v4786_v11 = vpop.f32.mrb[31].mxu0  ;;  %v1910_v8 = vld [vmem:[#allocation5 + $0xd0] sm:$0xff] }
 0xa41   :  { %v1911_v11 = vld [vmem:[#allocation5 + $0xd8] sm:$0xff] }
 0xaa0   :  { %v1636_v22 = vpop.xlane.xlu0 %1635 }
 0xaa1   :  { %5368 = vrcp.f32 %v1636_v22  ;;  %v1912_v22 = vld [vmem:[#allocation5 + $0xe0] sm:$0xff] }
 0xaa4   :  { %v1639_v13 = vpop.xlane.xlu1 %1638 }
 0xaa5   :  { %5370 = vrcp.f32 %v1639_v13  ;;  %v5151_v13 = vpack.c.bf16 %v1912_v22, %v1911_v11 }
 0xaa8   :  { %v5281_v15 = vpop.permute.xlu1 %5280  ;;  %v1642_v16 = vpop.xlane.xlu0 %1641 }
 0xaa9   :  { %v5283_v19 = vunpack.i.h.bf16 %v5281_v15  ;;  %v5282_v23 = vunpack.i.l.bf16 %v5281_v15  ;;  %5372 = vrcp.f32 %v1642_v16 }
 0xaab   :  { %v5145_v34 = vpack.c.bf16 %v5283_v19, %v5282_v23  ;;  %v5369_v24 = vpop.eup %5368 }
 0xaac   :  { %v1646_v36 = vmul.f32 %v5369_v24, %v5363_v5  ;;  %v1654_v27 = vpop.permute.xlu0 %1653 }
 0xaad   :  { %5146 = vmatpush3.bf16.msra.mxu0 %v5145_v34 }
 0xaae   :  { %4806 = vmatprep.subr.mxu0 %v5547_v48 }
 0xaaf   :  { %v5371_v28 = vpop.eup %5370 }
 0xab0   :  { %v1647_v14 = vmul.f32 %v5371_v28, %v5365_v31 }
 0xab1   :  { %4807 = vmatpush3.msk.msra.mxu0 %vm666_vm15, %v1654_v27 }
 0xab2   :  { %4809 = vmatmul.mubr.msk.f32.vlgmr.msra.gmra.mrb[32].mxu0 %vm614_vm13, %v1646_v36  ;;  %5147 = vmatprep.subr.bf16.mxu0 %v5545_v45 }
 0xab3   :  { %4811 = vmatprep.mubr.msk.f32.mxu0 %vm5546_vm5, %v5547_v48  ;;  %v5373_v29 = vpop.eup %5372 }
 0xab4   :  { %v1648_v30 = vmul.f32 %v5373_v29, %v5367_v21  ;;  %v4337_v29 = vld [vmem:[#allocation2 + $0xb] ss:$0 sm:$0xff] }
 0xab6   :  { %4812 = vmatmul.mubr.msk.f32.gmra.mrb[34].mxu0 %vm614_vm13, %v1647_v14 }
 0xab7   :  { %4814 = vmatprep.mubr.msk.f32.mxu0 %vm5546_vm5, %v5547_v48 }
 0xaba   :  { %4815 = vmatmul.mubr.msk.f32.gmra.mrb[36].mxu0 %vm614_vm13, %v1648_v30 }
 0xabb   :  { %4836 = vmatprep.mubr.msk.f32.mxu0 %vm5546_vm5, %v5547_v48 }
 0xb85   :  { %v1734_v33 = vpop.f32.mrb[32].mxu0 }
 0xb86   :  { %v4810_v35 = vpop.f32.mrb[33].mxu0  ;;  %4820 = vmatmul.mubr.msk.f32.vlgmr.msra.gmra.mrb[40].mxu1 %vm515_vm10, %v1734_v33  ;;  %v4338_v33 = vld [vmem:[#allocation2 + $0xc] ss:$0 sm:$0xff] }
 0xb87   :  { %4822 = vmatprep.mubr.msk.f32.mxu1 %vm5546_vm5, %v5547_v48 }
 0xb89   :  { %v1739_v37 = vpop.f32.mrb[34].mxu0 }
 0xb8a   :  { %v4813_v38 = vpop.f32.mrb[35].mxu0  ;;  %4823 = vmatmul.mubr.msk.f32.gmra.mrb[42].mxu1 %vm515_vm10, %v1739_v37 }
 0xb8b   :  { %4825 = vmatprep.mubr.msk.f32.mxu1 %vm5546_vm5, %v5547_v48 }
 0xb8d   :  { %v1744_v39 = vpop.f32.mrb[36].mxu0 }
 0xb8e   :  { %v4816_v40 = vpop.f32.mrb[37].mxu0  ;;  %4826 = vmatmul.mubr.msk.f32.gmra.mrb[44].mxu1 %vm515_vm10, %v1744_v39 }
 0xb8f   :  { %4853 = vmatprep.mubr.msk.f32.mxu1 %vm5546_vm5, %v5547_v48 }
 0xc59   :  { %v1824_v41 = vpop.f32.mrb[40].mxu1 }
 0xc5a   :  { %v1838_v43 = vadd.f32 %v1824_v41, %v5918_v63  ;;  %v4821_v44 = vpop.f32.mrb[41].mxu1 }
 0xc5c   :  { %v1841_v47 = vadd.f32 %v1838_v43, %v5660_v17 }
 0xc5d   :  { %v1829_v49 = vpop.f32.mrb[42].mxu1 }
 0xc5e   :  { %v1839_v50 = vadd.f32 %v1829_v49, %v5921_v20  ;;  %v4824_v51 = vpop.f32.mrb[43].mxu1  ;;  %v1849_v52 = vadd.f32 %v4336_v46, %v1841_v47  ;;  %v2088_v49 = vld [vmem:[#allocation5 + $0xe8] sm:$0xff] }
 0xc60   :  { %v1842_v53 = vadd.f32 %v1839_v50, %v5666_v25  ;;  %v1854_v54 = vsel %vm175_vm7, %v1849_v52, 0.0  ;;  %v2089_v50 = vld [vmem:[#allocation5 + $0xf0] sm:$0xff] }
 0xc61   :  { %1855 = vadd.xlane.f32.xlu1 %v1854_v54  ;;  %v1834_v55 = vpop.f32.mrb[44].mxu1  ;;  %v5154_v51 = vpack.c.bf16 %v2089_v50, %v2088_v49 }
 0xc62   :  { %v1840_v56 = vadd.f32 %v1834_v55, %v1505_v10  ;;  %v4827_v57 = vpop.f32.mrb[45].mxu1  ;;  %v1850_v58 = vadd.f32 %v4336_v46, %v1842_v53  ;;  %v5148_v10 = vpack.c.bf16 %v1910_v8, %v1909_v12  ;;  %v2091_v53 = vld [vmem:[#allocation5 + $0x100] sm:$0xff]  ;;  %v4339_v55 = vld [vmem:[#allocation2 + $0xd] ss:$0 sm:$0xff] }
 0xc63   :  { %5155 = vmatpush3.bf16.msra.mxu1 %v5154_v51 }
 0xc64   :  { %v1843_v60 = vadd.f32 %v1840_v56, %v5668_v26  ;;  %v1857_v61 = vsel %vm175_vm7, %v1850_v58, 0.0  ;;  %5149 = vmatpush3.bf16.msra.mxu0 %v5148_v10  ;;  %5156 = vmatprep.subr.bf16.mxu1 %v5545_v45 }
 0xc65   :  { %1858 = vadd.xlane.f32.xlu0 %v1857_v61  ;;  %5150 = vmatprep.subr.bf16.mxu0 %v5545_v45 }
 0xc66   :  { %v1851_v17 = vadd.f32 %v4336_v46, %v1843_v60 }
 0xc68   :  { %v1861_v62 = vsel %vm1860_vm0, %v1851_v17, 0.0  ;;  %5152 = vmatpush3.bf16.msra.mxu0 %v5151_v13 }
 0xc69   :  { %1862 = vadd.xlane.f32.xlu1 %v1861_v62  ;;  %5159 = vmatprep.subr.bf16.mxu0 %v5545_v45 }
 0xcee   :  { %v1856_v63 = vpop.xlane.xlu1 %1855 }
 0xcef   :  { %v1865_v1 = vmul.f32 0.03125, %v1856_v63 }
 0xcf1   :  { %v1868_v25 = vsub.f32 %v1849_v52, %v1865_v1  ;;  %v2090_v52 = vld [vmem:[#allocation5 + $0xf8] sm:$0xff] }
 0xcf2   :  { %v1859_v32 = vpop.xlane.xlu0 %1858  ;;  %v5157_v54 = vpack.c.bf16 %v2091_v53, %v2090_v52 }
 0xcf3   :  { %v1866_v18 = vmul.f32 0.03125, %v1859_v32  ;;  %v1871_v2 = vmul.f32 %v1868_v25, %v1868_v25 }
 0xcf4   :  { %5158 = vmatpush3.bf16.msra.mxu1 %v5157_v54 }
 0xcf5   :  { %v1869_v20 = vsub.f32 %v1850_v58, %v1866_v18  ;;  %v1874_v4 = vsel %vm175_vm7, %v1871_v2, 0.0  ;;  %5165 = vmatprep.subr.bf16.mxu1 %v5545_v45 }
 0xcf6   :  { %1875 = vadd.xlane.f32.xlu0 %v1874_v4  ;;  %v1863_v5 = vpop.xlane.xlu1 %1862 }
 0xcf7   :  { %v1867_v26 = vmul.f32 0.03125, %v1863_v5  ;;  %v1872_v6 = vmul.f32 %v1869_v20, %v1869_v20 }
 0xcf9   :  { %v1870_v31 = vsub.f32 %v1851_v17, %v1867_v26  ;;  %v1877_v7 = vsel %vm175_vm7, %v1872_v6, 0.0 }
 0xcfa   :  { %1878 = vadd.xlane.f32.xlu1 %v1877_v7 }
 0xcfb   :  { %v1873_v21 = vmul.f32 %v1870_v31, %v1870_v31 }
 0xcfd   :  { %v1880_v9 = vsel %vm1860_vm0, %v1873_v21, 0.0 }
 0xcfe   :  { %1881 = vadd.xlane.f32.xlu0 %v1880_v9 }
 0xd83   :  { %v1876_v15 = vpop.xlane.xlu0 %1875 }
 0xd84   :  { %v1883_v16 = vmul.f32 0.03125, %v1876_v15 }
 0xd86   :  { %v1886_v19 = vadd.f32 1e-05, %v1883_v16 }
 0xd87   :  { %v1879_v23 = vpop.xlane.xlu1 %1878 }
 0xd88   :  { %5374 = vrsqrt.f32 %v1886_v19  ;;  %v1884_v34 = vmul.f32 0.03125, %v1879_v23 }
 0xd8a   :  { %v1887_v24 = vadd.f32 1e-05, %v1884_v34 }
 0xd8b   :  { %v1882_v36 = vpop.xlane.xlu0 %1881 }
 0xd8c   :  { %5376 = vrsqrt.f32 %v1887_v24  ;;  %v1885_v27 = vmul.f32 0.03125, %v1882_v36 }
 0xd8e   :  { %v1888_v28 = vadd.f32 1e-05, %v1885_v27 }
 0xd90   :  { %5378 = vrsqrt.f32 %v1888_v28 }
 0xd92   :  { %v5375_v14 = vpop.eup %5374 }
 0xd93   :  { %v1892_v30 = vmul.f32 %v5375_v14, %v1868_v25 }
 0xd95   :  { %v1899_v35 = vmul.f32 %v4337_v29, %v1892_v30 }
 0xd96   :  { %v5377_v37 = vpop.eup %5376 }
 0xd97   :  { %v5966_v38 = vadd.f32 %v4338_v33, %v1899_v35  ;;  %v1893_v39 = vmul.f32 %v5377_v37, %v1869_v20 }
 0xd99   :  { %4837 = vmatmul.mubr.msk.f32.vlgmr.msra.gmra.mrb[38].mxu0 %vm175_vm7, %v5966_v38  ;;  %v1900_v40 = vmul.f32 %v4337_v29, %v1893_v39 }
 0xd9a   :  { %v5379_v41 = vpop.eup %5378  ;;  %4839 = vmatprep.mubr.msk.f32.mxu0 %vm5546_vm5, %v5547_v48 }
 0xd9b   :  { %v5972_v43 = vadd.f32 %v4338_v33, %v1900_v40  ;;  %v1894_v44 = vmul.f32 %v5379_v41, %v1870_v31 }
 0xd9d   :  { %4840 = vmatmul.mubr.msk.f32.gmra.mrb[40].mxu0 %vm175_vm7, %v5972_v43  ;;  %v1901_v46 = vmul.f32 %v4337_v29, %v1894_v44 }
 0xd9e   :  { %4842 = vmatprep.mubr.msk.f32.mxu0 %vm5546_vm5, %v5547_v48 }
 0xd9f   :  { %v5978_v47 = vadd.f32 %v4338_v33, %v1901_v46 }
 0xda1   :  { %4843 = vmatmul.mubr.msk.f32.gmra.mrb[42].mxu0 %vm175_vm7, %v5978_v47 }
 0xda2   :  { %4870 = vmatprep.mubr.msk.f32.mxu0 %vm5546_vm5, %v5547_v48 }
 0xe6c   :  { %v1993_v56 = vpop.f32.mrb[38].mxu0 }
 0xe6d   :  { %v5986_v57 = vadd.f32 %v4339_v55, %v1993_v56  ;;  %v4838_v58 = vpop.f32.mrb[39].mxu0 }
 0xe6f   :  { %v5989_v60 = vmul.f32 0.70710677, %v5986_v57 }
 0xe70   :  { %v1998_v61 = vpop.f32.mrb[40].mxu0 }
 0xe71   :  { %v2019_v17 = vand.u32 2147483647, %v5989_v60  ;;  %v5992_v62 = vadd.f32 %v4339_v55, %v1998_v61  ;;  %v4841_v63 = vpop.f32.mrb[41].mxu0  ;;  %vm2013_vm1 = vcmp.ge.f32.partialorder %v5989_v60, 0.0 }
 0xe73   :  { %v2022_v1 = vmul.f32 0.3275911, %v2019_v17  ;;  %v5995_v25 = vmul.f32 0.70710677, %v5992_v62  ;;  %v2061_v21 = vsub.f32 0.0, %v2019_v17 }
 0xe74   :  { %v2003_v32 = vpop.f32.mrb[42].mxu0 }
 0xe75   :  { %v2025_v18 = vadd.f32 1.0, %v2022_v1  ;;  %v2020_v2 = vand.u32 2147483647, %v5995_v25  ;;  %v4844_v20 = vpop.f32.mrb[43].mxu0  ;;  %v5998_v4 = vadd.f32 %v4339_v55, %v2003_v32  ;;  %v2064_v8 = vmul.f32 %v2061_v21, %v2019_v17 }
 0xe76   :  { %v5560_v32 = vmov -1.0   ;;  %vm2014_vm2 = vcmp.ge.f32.partialorder %v5995_v25, 0.0 }
 0xe77   :  { %5380 = vrcp.f32 %v2025_v18  ;;  %v2023_v5 = vmul.f32 0.3275911, %v2020_v2  ;;  %v6001_v26 = vmul.f32 0.70710677, %v5998_v4  ;;  %v2062_v10 = vsub.f32 0.0, %v2020_v2 }
 0xe78   :  { %v2067_v15 = vmul.f32 1.442695, %v2064_v8  ;;  %v2016_v18 = vsel %vm2013_vm1, 1.0, %v5560_v32  ;;  %v2017_v60 = vsel %vm2014_vm2, 1.0, %v5560_v32 }
 0xe79   :  { %v2026_v6 = vadd.f32 1.0, %v2023_v5  ;;  %v2021_v31 = vand.u32 2147483647, %v6001_v26  ;;  %v2065_v16 = vmul.f32 %v2062_v10, %v2020_v2  ;;  %vm2015_vm3 = vcmp.ge.f32.partialorder %v6001_v26, 0.0  ;;  %v4343_v26 = vld [vmem:[#allocation2 + $0xe] ss:$0 sm:$0xff] }
 0xe7b   :  { %5382 = vrcp.f32 %v2026_v6  ;;  %v2024_v7 = vmul.f32 0.3275911, %v2021_v31  ;;  %v2063_v34 = vsub.f32 0.0, %v2021_v31  ;;  %v2069_v27 = vmul.f32 1.442695, %v2065_v16 }
 0xe7d   :  { %v2027_v9 = vadd.f32 1.0, %v2024_v7  ;;  %v2066_v30 = vmul.f32 %v2063_v34, %v2021_v31  ;;  %v2007_v31 = vmul.f32 0.5, %v5986_v57 }
 0xe7f   :  { %5384 = vrcp.f32 %v2027_v9  ;;  %v2071_v44 = vmul.f32 1.442695, %v2066_v30 }
 0xe80   :  { %5386 = vpow2.f32 %v2067_v15  ;;  %v2018_v15 = vsel %vm2015_vm3, 1.0, %v5560_v32 }
 0xe81   :  { %v5381_v12 = vpop.eup %5380  ;;  %5388 = vpow2.f32 %v2069_v27 }
 0xe82   :  { %v2034_v11 = vmul.f32 1.0614054, %v5381_v12  ;;  %5390 = vpow2.f32 %v2071_v44 }
 0xe84   :  { %v2037_v22 = vadd.f32 -1.4531521, %v2034_v11 }
 0xe85   :  { %v5383_v13 = vpop.eup %5382 }
 0xe86   :  { %v2040_v19 = vmul.f32 %v5381_v12, %v2037_v22  ;;  %v2035_v23 = vmul.f32 1.0614054, %v5383_v13  ;;  %v2008_v22 = vmul.f32 0.5, %v5992_v62 }
 0xe88   :  { %v2043_v24 = vadd.f32 1.4214138, %v2040_v19  ;;  %v2038_v36 = vadd.f32 -1.4531521, %v2035_v23  ;;  %v2009_v19 = vmul.f32 0.5, %v5998_v4 }
 0xe89   :  { %v5385_v28 = vpop.eup %5384 }
 0xe8a   :  { %v2046_v14 = vmul.f32 %v5381_v12, %v2043_v24  ;;  %v2041_v29 = vmul.f32 %v5383_v13, %v2038_v36  ;;  %v2036_v33 = vmul.f32 1.0614054, %v5385_v28  ;;  %v5387_v54 = vpop.eup %5386 }
 0xe8b   :  { %v5389_v1 = vpop.eup %5388 }
 0xe8c   :  { %v2049_v35 = vadd.f32 -0.28449672, %v2046_v14  ;;  %v2044_v37 = vadd.f32 1.4214138, %v2041_v29  ;;  %v2039_v39 = vadd.f32 -1.4531521, %v2036_v33 }
 0xe8e   :  { %v2052_v40 = vmul.f32 %v5381_v12, %v2049_v35  ;;  %v2047_v41 = vmul.f32 %v5383_v13, %v2044_v37  ;;  %v2042_v46 = vmul.f32 %v5385_v28, %v2039_v39 }
 0xe90   :  { %v2055_v49 = vadd.f32 0.2548296, %v2052_v40  ;;  %v2050_v50 = vadd.f32 -0.28449672, %v2047_v41  ;;  %v2045_v51 = vadd.f32 1.4214138, %v2042_v46 }
 0xe92   :  { %v2058_v52 = vmul.f32 %v5381_v12, %v2055_v49  ;;  %v2053_v53 = vmul.f32 %v5383_v13, %v2050_v50  ;;  %v2048_v55 = vmul.f32 %v5385_v28, %v2045_v51  ;;  %v5391_v12 = vpop.eup %5390 }
 0xe94   :  { %v2073_v56 = vmul.f32 %v5387_v54, %v2058_v52  ;;  %v2056_v58 = vadd.f32 0.2548296, %v2053_v53  ;;  %v2051_v61 = vadd.f32 -0.28449672, %v2048_v55 }
 0xe96   :  { %v2076_v17 = vsub.f32 1.0, %v2073_v56  ;;  %v2059_v63 = vmul.f32 %v5383_v13, %v2056_v58  ;;  %v2054_v2 = vmul.f32 %v5385_v28, %v2051_v61 }
 0xe98   :  { %v2079_v20 = vmul.f32 %v2076_v17, %v2016_v18  ;;  %v2074_v5 = vmul.f32 %v5389_v1, %v2059_v63  ;;  %v2057_v6 = vadd.f32 0.2548296, %v2054_v2  ;;  %v2244_v17 = vld [vmem:[#allocation5 + $0x108] sm:$0xff]  ;;  %v2245_v63 = vld [vmem:[#allocation5 + $0x110] sm:$0xff]  ;;  %v2246_v18 = vld [vmem:[#allocation5 + $0x118] sm:$0xff] }
 0xe99   :  { %v5160_v1 = vpack.c.bf16 %v2245_v63, %v2244_v17  ;;  %v2247_v2 = vld [vmem:[#allocation5 + $0x120] sm:$0xff] }
 0xe9a   :  { %v2082_v7 = vadd.f32 1.0, %v2079_v20  ;;  %v2077_v21 = vsub.f32 1.0, %v2074_v5  ;;  %v2060_v9 = vmul.f32 %v5385_v28, %v2057_v6  ;;  %v5163_v20 = vpack.c.bf16 %v2247_v2, %v2246_v18 }
 0xe9b   :  { %5161 = vmatpush3.bf16.msra.mxu0 %v5160_v1 }
 0xe9c   :  { %v2085_v8 = vmul.f32 %v2082_v7, %v2007_v31  ;;  %v2080_v10 = vmul.f32 %v2077_v21, %v2017_v60  ;;  %v2075_v11 = vmul.f32 %v5391_v12, %v2060_v9  ;;  %5162 = vmatprep.subr.bf16.mxu0 %v5545_v45 }
 0xe9e   :  { %v2083_v13 = vadd.f32 1.0, %v2080_v10  ;;  %4854 = vmatmul.mubr.msk.f32.vlgmr.msra.gmra.mrb[46].mxu1 %vm175_vm7, %v2085_v8  ;;  %v2078_v25 = vsub.f32 1.0, %v2075_v11  ;;  %v4347_v11 = vld [vmem:[#allocation2 + $0xf] ss:$0 sm:$0xff] }
 0xe9f   :  { %4856 = vmatprep.mubr.msk.f32.mxu1 %vm5546_vm5, %v5547_v48  ;;  %5164 = vmatpush3.bf16.msra.mxu0 %v5163_v20 }
 0xea0   :  { %v2086_v57 = vmul.f32 %v2083_v13, %v2008_v22  ;;  %v2081_v16 = vmul.f32 %v2078_v25, %v2018_v15  ;;  %5169 = vmatprep.subr.bf16.mxu0 %v5545_v45  ;;  %v4348_v13 = vld [vmem:[#allocation2 + $0x10] ss:$0 sm:$0xff] }
 0xea2   :  { %4857 = vmatmul.mubr.msk.f32.gmra.mrb[48].mxu1 %vm175_vm7, %v2086_v57  ;;  %v2084_v23 = vadd.f32 1.0, %v2081_v16 }
 0xea3   :  { %4859 = vmatprep.mubr.msk.f32.mxu1 %vm5546_vm5, %v5547_v48 }
 0xea4   :  { %v2087_v62 = vmul.f32 %v2084_v23, %v2009_v19 }
 0xea6   :  { %4860 = vmatmul.mubr.msk.f32.gmra.mrb[50].mxu1 %vm175_vm7, %v2087_v62 }
 0xea7   :  { %4885 = vmatprep.mubr.msk.f32.mxu1 %vm5546_vm5, %v5547_v48 }
 0xf71   :  { %v2172_v34 = vpop.f32.mrb[46].mxu1 }
 0xf72   :  { %v2173_v24 = vadd.f32 %v4343_v26, %v2172_v34  ;;  %v4855_v36 = vpop.f32.mrb[47].mxu1 }
 0xf74   :  { %v2186_v27 = vadd.f32 %v2173_v24, %v5966_v38 }
 0xf75   :  { %v2177_v28 = vpop.f32.mrb[48].mxu1 }
 0xf76   :  { %v2178_v14 = vadd.f32 %v4343_v26, %v2177_v28  ;;  %v4858_v29 = vpop.f32.mrb[49].mxu1  ;;  %v2191_v4 = vsel %vm175_vm7, %v2186_v27, 0.0  ;;  %v4349_v28 = vld [vmem:[#allocation2 + $0x11] ss:$0 sm:$0xff] }
 0xf77   :  { %2192 = vadd.xlane.f32.xlu1 %v2191_v4 }
 0xf78   :  { %v2187_v30 = vadd.f32 %v2178_v14, %v5972_v43 }
 0xf79   :  { %v2182_v33 = vpop.f32.mrb[50].mxu1 }
 0xf7a   :  { %v2194_v35 = vsel %vm175_vm7, %v2187_v30, 0.0  ;;  %v2183_v37 = vadd.f32 %v4343_v26, %v2182_v33  ;;  %v4861_v39 = vpop.f32.mrb[51].mxu1 }
 0xf7b   :  { %2195 = vadd.xlane.f32.xlu0 %v2194_v35 }
 0xf7c   :  { %v2188_v40 = vadd.f32 %v2183_v37, %v5978_v47 }
 0xf7e   :  { %v2197_v41 = vsel %vm1860_vm0, %v2188_v40, 0.0 }
 0xf7f   :  { %2198 = vadd.xlane.f32.xlu1 %v2197_v41 }
0x1004   :  { %v2193_v38 = vpop.xlane.xlu1 %2192 }
0x1005   :  { %v2200_v44 = vmul.f32 0.03125, %v2193_v38 }
0x1007   :  { %v2203_v46 = vsub.f32 %v2186_v27, %v2200_v44 }
0x1008   :  { %v2196_v49 = vpop.xlane.xlu0 %2195 }
0x1009   :  { %v2201_v50 = vmul.f32 0.03125, %v2196_v49  ;;  %v2206_v51 = vmul.f32 %v2203_v46, %v2203_v46 }
0x100b   :  { %v2204_v52 = vsub.f32 %v2187_v30, %v2201_v50  ;;  %v2209_v43 = vsel %vm175_vm7, %v2206_v51, 0.0 }
0x100c   :  { %2210 = vadd.xlane.f32.xlu0 %v2209_v43  ;;  %v2199_v53 = vpop.xlane.xlu1 %2198 }
0x100d   :  { %v2207_v54 = vmul.f32 %v2204_v52, %v2204_v52  ;;  %v2202_v55 = vmul.f32 0.03125, %v2199_v53 }
0x100f   :  { %v2212_v56 = vsel %vm175_vm7, %v2207_v54, 0.0  ;;  %v2205_v58 = vsub.f32 %v2188_v40, %v2202_v55 }
0x1010   :  { %2213 = vadd.xlane.f32.xlu1 %v2212_v56 }
0x1011   :  { %v2208_v47 = vmul.f32 %v2205_v58, %v2205_v58 }
0x1013   :  { %v2215_v61 = vsel %vm1860_vm0, %v2208_v47, 0.0 }
0x1014   :  { %2216 = vadd.xlane.f32.xlu0 %v2215_v61 }
0x1099   :  { %v2211_v5 = vpop.xlane.xlu0 %2210 }
0x109a   :  { %v2218_v6 = vmul.f32 0.03125, %v2211_v5 }
0x109c   :  { %v2221_v31 = vadd.f32 1e-05, %v2218_v6 }
0x109d   :  { %v2214_v7 = vpop.xlane.xlu1 %2213 }
0x109e   :  { %5392 = vrsqrt.f32 %v2221_v31  ;;  %v2219_v21 = vmul.f32 0.03125, %v2214_v7 }
0x10a0   :  { %v2222_v60 = vadd.f32 1e-05, %v2219_v21 }
0x10a1   :  { %v2217_v9 = vpop.xlane.xlu0 %2216 }
0x10a2   :  { %5394 = vrsqrt.f32 %v2222_v60  ;;  %v2220_v12 = vmul.f32 0.03125, %v2217_v9 }
0x10a4   :  { %v2223_v8 = vadd.f32 1e-05, %v2220_v12 }
0x10a6   :  { %5396 = vrsqrt.f32 %v2223_v8 }
0x10a8   :  { %v5393_v10 = vpop.eup %5392 }
0x10a9   :  { %v2227_v22 = vmul.f32 %v5393_v10, %v2203_v46 }
0x10ab   :  { %v2234_v25 = vmul.f32 %v4347_v11, %v2227_v22 }
0x10ac   :  { %v5395_v57 = vpop.eup %5394 }
0x10ad   :  { %v6033_v15 = vadd.f32 %v4348_v13, %v2234_v25  ;;  %v2228_v16 = vmul.f32 %v5395_v57, %v2204_v52 }
0x10af   :  { %4871 = vmatmul.mubr.msk.f32.vlgmr.msra.gmra.mrb[44].mxu0 %vm175_vm7, %v6033_v15  ;;  %v2235_v19 = vmul.f32 %v4347_v11, %v2228_v16 }
0x10b0   :  { %4873 = vmatprep.mubr.msk.f32.mxu0 %vm5546_vm5, %v5547_v48  ;;  %v5397_v23 = vpop.eup %5396 }
0x10b1   :  { %v6039_v62 = vadd.f32 %v4348_v13, %v2235_v19  ;;  %v2229_v26 = vmul.f32 %v5397_v23, %v2205_v58 }
0x10b3   :  { %4874 = vmatmul.mubr.msk.f32.gmra.mrb[46].mxu0 %vm175_vm7, %v6039_v62  ;;  %v2236_v34 = vmul.f32 %v4347_v11, %v2229_v26 }
0x10b4   :  { %4876 = vmatprep.mubr.msk.f32.mxu0 %vm5546_vm5, %v5547_v48 }
0x10b5   :  { %v6045_v24 = vadd.f32 %v4348_v13, %v2236_v34 }
0x10b7   :  { %4877 = vmatmul.mubr.msk.f32.gmra.mrb[48].mxu0 %vm175_vm7, %v6045_v24 }
0x10b8   :  { %4900 = vmatprep.mubr.msk.f32.mxu0 %vm5546_vm5, %v5547_v48 }
0x1182   :  { %v2328_v36 = vpop.f32.mrb[44].mxu0 }
0x1183   :  { %v4872_v27 = vpop.f32.mrb[45].mxu0  ;;  %v6051_v29 = vadd.f32 %v4349_v28, %v2328_v36 }
0x1186   :  { %v2333_v14 = vpop.f32.mrb[46].mxu0 }
0x1187   :  { %v6053_v4 = vadd.f32 %v4349_v28, %v2333_v14  ;;  %v4875_v30 = vpop.f32.mrb[47].mxu0 }
0x1189   :  { %v6057_v33 = vpack.i.bf16 %v6053_v4, %v6051_v29 }
0x118a   :  { %v2338_v35 = vpop.f32.mrb[48].mxu0 }
0x118b   :  { %5285 = vrot.lane.b32.xlu1 %v6057_v33, %s5548_s0  ;;  %v6061_v37 = vadd.f32 %v4349_v28, %v2338_v35  ;;  %v4878_v39 = vpop.f32.mrb[49].mxu0 }
0x118d   :  { %2349 = vrot.lane.b32.xlu0 %v6061_v37, %s5548_s0 }
0x118f   :  { %5290 = vrot.lane.b32.xlu1 %v6057_v33, %s5549_s18 }
0x1191   :  { %2582 = vrot.lane.b32.xlu0 %v6051_v29, %s5550_s19 }
0x1193   :  { %2592 = vrot.lane.b32.xlu1 %v6061_v37, %s5549_s18 }
0x1195   :  { %2586 = vrot.lane.b32.xlu0 %v6061_v37, %s5550_s19 }
0x1197   :  { %2584 = vrot.lane.b32.xlu1 %v6053_v4, %s5550_s19 }
0x11fd   :  { %v5286_v40 = vpop.permute.xlu1 %5285 }
0x11fe   :  { %v5288_v41 = vunpack.i.h.bf16 %v5286_v40  ;;  %v5287_v38 = vunpack.i.l.bf16 %v5286_v40 }
0x11ff   :  { %v2350_v51 = vpop.permute.xlu0 %2349 }
0x1200   :  { %v5166_v44 = vpack.c.bf16 %v5288_v41, %v5287_v38 }
0x1201   :  { %v5291_v46 = vpop.permute.xlu1 %5290 }
0x1202   :  { %5168 = vmatpush3.bf16.xpose.msk.msra.mxu1 %vm5704_vm11, %v5166_v44  ;;  %v5293_v49 = vunpack.i.h.bf16 %v5291_v46  ;;  %v5292_v50 = vunpack.i.l.bf16 %v5291_v46 }
0x1203   :  { %4883 = vmatprep.subr.mxu1 %v5547_v48  ;;  %v2583_v53 = vpop.permute.xlu0 %2582 }
0x1204   :  { %v5173_v52 = vpack.c.bf16 %v5293_v49, %v5292_v50 }
0x1205   :  { %v2593_v43 = vpop.permute.xlu1 %2592 }
0x1207   :  { %v2587_v55 = vpop.permute.xlu0 %2586 }
0x1209   :  { %v2585_v54 = vpop.permute.xlu1 %2584 }
0x120a   :  { %4884 = vmatpush3.xpose.msk.msra.mxu1 %vm515_vm10, %v2350_v51 }
0x120b   :  { %5172 = vmatprep.subr.bf16.mxu1 %v5545_v45 }
0x120d   :  { %4886 = vmatmul.mubr.msk.f32.vlgmr.msra.gmra.mrb[52].mxu1 %vm515_vm10, %v6051_v29 }
0x120e   :  { %5175 = vmatpush3.bf16.xpose.msk.msra.mxu1 %vm5704_vm11, %v5173_v52  ;;  %4888 = vmatprep.mubr.msk.f32.mxu1 %vm5546_vm5, %v5547_v48 }
0x120f   :  { %4913 = vmatprep.subr.mxu1 %v5547_v48 }
0x1211   :  { %4889 = vmatmul.mubr.msk.f32.gmra.mrb[54].mxu1 %vm515_vm10, %v6053_v4 }
0x1212   :  { %4891 = vmatprep.mubr.msk.f32.mxu1 %vm5546_vm5, %v5547_v48 }
0x1215   :  { %4892 = vmatmul.mubr.msk.f32.gmra.mrb[56].mxu1 %vm515_vm10, %v6061_v37 }
0x1216   :  { %4914 = vmatpush3.xpose.msk.msra.mxu1 %vm515_vm10, %v2593_v43  ;;  %4915 = vmatprep.mubr.msk.f32.mxu1 %vm5546_vm5, %v5547_v48 }
0x1217   :  { %4939 = vmatprep.subr.mxu1 %v5547_v48 }
0x1219   :  { %4916 = vmatmul.mubr.msk.f32.vlgmr.msra.gmra.mrb[58].mxu1 %vm515_vm10, %v2583_v53 }
0x121a   :  { %4918 = vmatprep.mubr.msk.f32.mxu1 %vm5546_vm5, %v5547_v48 }
0x121d   :  { %4919 = vmatmul.mubr.msk.f32.gmra.mrb[60].mxu1 %vm515_vm10, %v2585_v54 }
0x121e   :  { %4921 = vmatprep.mubr.msk.f32.mxu1 %vm5546_vm5, %v5547_v48 }
0x1221   :  { %4922 = vmatmul.mubr.msk.f32.gmra.mrb[62].mxu1 %vm515_vm10, %v2587_v55 }
0x1222   :  { %4941 = vmatprep.mubr.msk.f32.mxu1 %vm5546_vm5, %v5547_v48 }
0x12e0   :  { %v2429_v56 = vpop.f32.mrb[52].mxu1 }
0x12e1   :  { %v2443_v58 = vmul.f32 0.35355338, %v2429_v56  ;;  %v4887_v47 = vpop.f32.mrb[53].mxu1 }
0x12e3   :  { %v2446_v61 = vadd.f32 %v2443_v58, %v5742_v59 }
0x12e4   :  { %v2434_v17 = vpop.f32.mrb[54].mxu1 }
0x12e5   :  { %v2444_v63 = vmul.f32 0.35355338, %v2434_v17  ;;  %v4890_v1 = vpop.f32.mrb[55].mxu1  ;;  %v2449_v18 = vsel %vm614_vm13, %v2446_v61, -inf }
0x12e6   :  { %2450 = vmax.xlane.f32.xlu1 %v2449_v18 }
0x12e7   :  { %v2447_v2 = vadd.f32 %v2444_v63, %v5747_v0 }
0x12e8   :  { %v2439_v20 = vpop.f32.mrb[56].mxu1 }
0x12e9   :  { %v2445_v5 = vmul.f32 0.35355338, %v2439_v20  ;;  %v4893_v6 = vpop.f32.mrb[57].mxu1  ;;  %v2452_v31 = vsel %vm614_vm13, %v2447_v2, -inf }
0x12ea   :  { %2453 = vmax.xlane.f32.xlu0 %v2452_v31 }
0x12eb   :  { %v2448_v7 = vadd.f32 %v2445_v5, %v5753_v3 }
0x12ec   :  { %v2672_v21 = vpop.f32.mrb[58].mxu1 }
0x12ed   :  { %v2686_v60 = vmul.f32 0.35355338, %v2672_v21  ;;  %v4917_v9 = vpop.f32.mrb[59].mxu1  ;;  %v2455_v12 = vsel %vm621_vm14, %v2448_v7, -inf }
0x12ee   :  { %2456 = vmax.xlane.f32.xlu0 %v2455_v12 }
0x12ef   :  { %v2689_v8 = vadd.f32 %v2686_v60, %v5742_v59 }
0x12f0   :  { %v2677_v10 = vpop.f32.mrb[60].mxu1 }
0x12f1   :  { %v2687_v11 = vmul.f32 0.35355338, %v2677_v10  ;;  %v4920_v22 = vpop.f32.mrb[61].mxu1  ;;  %v2692_v13 = vsel %vm614_vm13, %v2689_v8, -inf }
0x12f2   :  { %2693 = vmax.xlane.f32.xlu1 %v2692_v13 }
0x12f3   :  { %v2690_v25 = vadd.f32 %v2687_v11, %v5747_v0 }
0x12f4   :  { %v2682_v57 = vpop.f32.mrb[62].mxu1 }
0x12f5   :  { %v2688_v16 = vmul.f32 0.35355338, %v2682_v57  ;;  %v4923_v19 = vpop.f32.mrb[63].mxu1  ;;  %v2695_v23 = vsel %vm614_vm13, %v2690_v25, -inf }
0x12f6   :  { %2696 = vmax.xlane.f32.xlu0 %v2695_v23 }
0x12f7   :  { %v2691_v26 = vadd.f32 %v2688_v16, %v5753_v3 }
0x12f9   :  { %v2698_v34 = vsel %vm621_vm14, %v2691_v26, -inf }
0x12fa   :  { %2699 = vmax.xlane.f32.xlu1 %v2698_v34 }
0x130b   :  { %5295 = vrot.lane.b32.xlu1 %v6057_v33, %s5552_s20 }
0x1373   :  { %v2451_v36 = vpop.xlane.xlu1 %2450 }
0x1374   :  { %v2458_v27 = vsub.f32 %v2446_v61, %v2451_v36 }
0x1376   :  { %v2461_v28 = vmul.f32 1.442695, %v2458_v27 }
0x1377   :  { %v2454_v14 = vpop.xlane.xlu0 %2453 }
0x1378   :  { %5398 = vpow2.f32 %v2461_v28  ;;  %v2459_v30 = vsub.f32 %v2447_v2, %v2454_v14 }
0x137a   :  { %v2463_v35 = vmul.f32 1.442695, %v2459_v30 }
0x137b   :  { %v2457_v39 = vpop.xlane.xlu0 %2456 }
0x137c   :  { %5400 = vpow2.f32 %v2463_v35  ;;  %v2460_v40 = vsub.f32 %v2448_v7, %v2457_v39 }
0x137e   :  { %v2465_v41 = vmul.f32 1.442695, %v2460_v40 }
0x137f   :  { %v2694_v38 = vpop.xlane.xlu1 %2693 }
0x1380   :  { %5402 = vpow2.f32 %v2465_v41  ;;  %v2701_v44 = vsub.f32 %v2689_v8, %v2694_v38  ;;  %v2581_v41 = vld [vmem:[#allocation5 + $0x128] sm:$0xff]  ;;  %v2824_v38 = vld [vmem:[#allocation5 + $0x130] sm:$0xff] }
0x1381   :  { %4940 = vmatpush3.msra.mxu1 %v2824_v38 }
0x1382   :  { %v5399_v46 = vpop.eup %5398  ;;  %v2704_v49 = vmul.f32 1.442695, %v2701_v44  ;;  %5179 = vmatprep.subr.bf16.mxu1 %v5545_v45 }
0x1383   :  { %v2697_v50 = vpop.xlane.xlu0 %2696  ;;  %v2467_v51 = vsel %vm614_vm13, %v5399_v46, 0.0 }
0x1384   :  { %5404 = vpow2.f32 %v2704_v49  ;;  %v2702_v52 = vsub.f32 %v2690_v25, %v2697_v50  ;;  %2468 = vadd.xlane.f32.xlu0 %v2467_v51 }
0x1386   :  { %v5401_v43 = vpop.eup %5400  ;;  %v2706_v53 = vmul.f32 1.442695, %v2702_v52 }
0x1387   :  { %v2700_v54 = vpop.xlane.xlu1 %2699  ;;  %v2470_v55 = vsel %vm614_vm13, %v5401_v43, 0.0 }
0x1388   :  { %5406 = vpow2.f32 %v2706_v53  ;;  %v2703_v56 = vsub.f32 %v2691_v26, %v2700_v54  ;;  %2471 = vadd.xlane.f32.xlu1 %v2470_v55 }
0x138a   :  { %v5403_v58 = vpop.eup %5402  ;;  %v2708_v47 = vmul.f32 1.442695, %v2703_v56 }
0x138b   :  { %v5296_v61 = vpop.permute.xlu1 %5295  ;;  %v2473_v17 = vsel %vm621_vm14, %v5403_v58, 0.0 }
0x138c   :  { %5408 = vpow2.f32 %v2708_v47  ;;  %v5298_v63 = vunpack.i.h.bf16 %v5296_v61  ;;  %v5297_v1 = vunpack.i.l.bf16 %v5296_v61  ;;  %2474 = vadd.xlane.f32.xlu0 %v2473_v17 }
0x138e   :  { %v5405_v18 = vpop.eup %5404  ;;  %v5170_v2 = vpack.c.bf16 %v5298_v63, %v5297_v1 }
0x138f   :  { %v2710_v20 = vsel %vm614_vm13, %v5405_v18, 0.0 }
0x1390   :  { %2711 = vadd.xlane.f32.xlu1 %v2710_v20  ;;  %5171 = vmatpush3.bf16.msra.mxu0 %v5170_v2 }
0x1391   :  { %4898 = vmatprep.subr.mxu0 %v5547_v48 }
0x1392   :  { %v5407_v5 = vpop.eup %5406 }
0x1393   :  { %v2713_v6 = vsel %vm614_vm13, %v5407_v5, 0.0 }
0x1394   :  { %2714 = vadd.xlane.f32.xlu0 %v2713_v6 }
0x1396   :  { %v5409_v31 = vpop.eup %5408 }
0x1397   :  { %v2716_v7 = vsel %vm621_vm14, %v5409_v31, 0.0 }
0x1398   :  { %2717 = vadd.xlane.f32.xlu0 %v2716_v7 }
0x13a1   :  { %5300 = vrot.lane.b32.xlu1 %v6057_v33, %s5553_s21 }
0x13a5   :  { %2729 = vrot.lane.b32.xlu1 %v6061_v37, %s5553_s21 }
0x13a9   :  { %5305 = vrot.lane.b32.xlu1 %v6057_v33, %s5554_s22 }
0x13ad   :  { %3003 = vrot.lane.b32.xlu1 %v6051_v29, %s5555_s23 }
0x13ae   :  { %2486 = vrot.lane.b32.xlu0 %v6061_v37, %s5552_s20 }
0x13b1   :  { %3007 = vrot.lane.b32.xlu1 %v6061_v37, %s5555_s23 }
0x13b2   :  { %3013 = vrot.lane.b32.xlu0 %v6061_v37, %s5554_s22 }
0x13b6   :  { %3005 = vrot.lane.b32.xlu0 %v6053_v4, %s5555_s23 }
0x1411   :  { %v2469_v21 = vpop.xlane.xlu0 %2468 }
0x1412   :  { %5410 = vrcp.f32 %v2469_v21 }
0x1415   :  { %v2472_v60 = vpop.xlane.xlu1 %2471 }
0x1416   :  { %5412 = vrcp.f32 %v2472_v60 }
0x1419   :  { %v2475_v9 = vpop.xlane.xlu0 %2474 }
0x141a   :  { %5414 = vrcp.f32 %v2475_v9 }
0x141c   :  { %v5411_v22 = vpop.eup %5410 }
0x141d   :  { %v2712_v12 = vpop.xlane.xlu1 %2711  ;;  %v2479_v57 = vmul.f32 %v5411_v22, %v5399_v46 }
0x141e   :  { %5416 = vrcp.f32 %v2712_v12 }
0x1420   :  { %v5413_v19 = vpop.eup %5412 }
0x1421   :  { %v2715_v8 = vpop.xlane.xlu0 %2714  ;;  %v5301_v10 = vpop.permute.xlu1 %5300  ;;  %v2480_v26 = vmul.f32 %v5413_v19, %v5401_v43 }
0x1422   :  { %v5303_v13 = vunpack.i.h.bf16 %v5301_v10  ;;  %v5302_v25 = vunpack.i.l.bf16 %v5301_v10  ;;  %5418 = vrcp.f32 %v2715_v8 }
0x1424   :  { %v5177_v23 = vpack.c.bf16 %v5303_v13, %v5302_v25  ;;  %v5415_v34 = vpop.eup %5414 }
0x1425   :  { %v2718_v11 = vpop.xlane.xlu0 %2717  ;;  %v2730_v36 = vpop.permute.xlu1 %2729  ;;  %v2481_v27 = vmul.f32 %v5415_v34, %v5403_v58 }
0x1426   :  { %5420 = vrcp.f32 %v2718_v11 }
0x1428   :  { %v5417_v28 = vpop.eup %5416 }
0x1429   :  { %v2487_v16 = vpop.permute.xlu0 %2486  ;;  %v2722_v14 = vmul.f32 %v5417_v28, %v5405_v18  ;;  %v5306_v50 = vpop.permute.xlu1 %5305 }
0x142a   :  { %4899 = vmatpush3.msk.msra.mxu0 %vm666_vm15, %v2487_v16  ;;  %v5308_v52 = vunpack.i.h.bf16 %v5306_v50  ;;  %v5307_v43 = vunpack.i.l.bf16 %v5306_v50 }
0x142b   :  { %4901 = vmatmul.mubr.msk.f32.vlgmr.msra.gmra.mrb[50].mxu0 %vm614_vm13, %v2479_v57  ;;  %5176 = vmatprep.subr.bf16.mxu0 %v5545_v45 }
0x142c   :  { %5178 = vmatpush3.bf16.msra.mxu0 %v5177_v23  ;;  %4903 = vmatprep.mubr.msk.f32.mxu0 %vm5546_vm5, %v5547_v48  ;;  %v5419_v30 = vpop.eup %5418  ;;  %v5180_v55 = vpack.c.bf16 %v5308_v52, %v5307_v43 }
0x142d   :  { %4928 = vmatprep.subr.mxu0 %v5547_v48  ;;  %v2723_v35 = vmul.f32 %v5419_v30, %v5407_v5  ;;  %v3014_v63 = vpop.permute.xlu0 %3013  ;;  %v3004_v18 = vpop.permute.xlu1 %3003 }
0x142f   :  { %4904 = vmatmul.mubr.msk.f32.gmra.mrb[52].mxu0 %vm614_vm13, %v2480_v26 }
0x1430   :  { %4929 = vmatpush3.msk.msra.mxu0 %vm666_vm15, %v2730_v36  ;;  %4906 = vmatprep.mubr.msk.f32.mxu0 %vm5546_vm5, %v5547_v48  ;;  %v5421_v39 = vpop.eup %5420 }
0x1431   :  { %4950 = vmatprep.subr.mxu0 %v5547_v48  ;;  %v2724_v40 = vmul.f32 %v5421_v39, %v5409_v31  ;;  %v3006_v2 = vpop.permute.xlu0 %3005  ;;  %v3008_v20 = vpop.permute.xlu1 %3007 }
0x1433   :  { %4907 = vmatmul.mubr.msk.f32.gmra.mrb[54].mxu0 %vm614_vm13, %v2481_v27 }
0x1434   :  { %4930 = vmatprep.mubr.msk.f32.mxu0 %vm5546_vm5, %v5547_v48 }
0x1437   :  { %4931 = vmatmul.mubr.msk.f32.vlgmr.msra.gmra.mrb[56].mxu0 %vm614_vm13, %v2722_v14 }
0x1438   :  { %4933 = vmatprep.mubr.msk.f32.mxu0 %vm5546_vm5, %v5547_v48  ;;  %4951 = vmatpush3.msra.mxu0 %v2581_v41 }
0x1439   :  { %5183 = vmatprep.subr.bf16.mxu0 %v5545_v45 }
0x143b   :  { %4934 = vmatmul.mubr.msk.f32.gmra.mrb[58].mxu0 %vm614_vm13, %v2723_v35 }
0x143c   :  { %4936 = vmatprep.mubr.msk.f32.mxu0 %vm5546_vm5, %v5547_v48 }
0x143f   :  { %4937 = vmatmul.mubr.msk.f32.gmra.mrb[60].mxu0 %vm614_vm13, %v2724_v40 }
0x1440   :  { %4952 = vmatprep.mubr.msk.f32.mxu0 %vm5546_vm5, %v5547_v48 }
0x14fe   :  { %v2567_v44 = vpop.f32.mrb[50].mxu0 }
0x14ff   :  { %v4902_v46 = vpop.f32.mrb[51].mxu0  ;;  %4953 = vmatmul.mubr.msk.f32.vlgmr.msra.gmra.mrb[62].mxu0 %vm515_vm10, %v2567_v44 }
0x1500   :  { %4955 = vmatprep.mubr.msk.f32.mxu0 %vm5546_vm5, %v5547_v48 }
0x1502   :  { %v2572_v49 = vpop.f32.mrb[52].mxu0 }
0x1503   :  { %v4905_v51 = vpop.f32.mrb[53].mxu0  ;;  %4956 = vmatmul.mubr.msk.f32.gmra.mrb[64].mxu0 %vm515_vm10, %v2572_v49 }
0x1504   :  { %4958 = vmatprep.mubr.msk.f32.mxu0 %vm5546_vm5, %v5547_v48 }
0x1506   :  { %v2577_v53 = vpop.f32.mrb[54].mxu0 }
0x1507   :  { %v4908_v54 = vpop.f32.mrb[55].mxu0  ;;  %4959 = vmatmul.mubr.msk.f32.gmra.mrb[66].mxu0 %vm515_vm10, %v2577_v53 }
0x1508   :  { %4982 = vmatprep.mubr.msk.f32.mxu0 %vm5546_vm5, %v5547_v48 }
0x150a   :  { %v2810_v56 = vpop.f32.mrb[56].mxu0 }
0x150b   :  { %v4932_v58 = vpop.f32.mrb[57].mxu0  ;;  %4942 = vmatmul.mubr.msk.f32.vlgmr.msra.gmra.mrb[64].mxu1 %vm515_vm10, %v2810_v56 }
0x150c   :  { %5182 = vmatpush3.bf16.xpose.msk.msra.mxu1 %vm5704_vm11, %v5180_v55  ;;  %4944 = vmatprep.mubr.msk.f32.mxu1 %vm5546_vm5, %v5547_v48 }
0x150d   :  { %4965 = vmatprep.subr.mxu1 %v5547_v48 }
0x150e   :  { %v2815_v47 = vpop.f32.mrb[58].mxu0 }
0x150f   :  { %v4935_v61 = vpop.f32.mrb[59].mxu0  ;;  %4945 = vmatmul.mubr.msk.f32.gmra.mrb[66].mxu1 %vm515_vm10, %v2815_v47 }
0x1510   :  { %4947 = vmatprep.mubr.msk.f32.mxu1 %vm5546_vm5, %v5547_v48 }
0x1512   :  { %v2820_v17 = vpop.f32.mrb[60].mxu0 }
0x1513   :  { %v4938_v1 = vpop.f32.mrb[61].mxu0  ;;  %4948 = vmatmul.mubr.msk.f32.gmra.mrb[68].mxu1 %vm515_vm10, %v2820_v17 }
0x1514   :  { %4966 = vmatpush3.xpose.msk.msra.mxu1 %vm515_vm10, %v3014_v63  ;;  %4967 = vmatprep.mubr.msk.f32.mxu1 %vm5546_vm5, %v5547_v48 }
0x1515   :  { %4991 = vmatprep.subr.mxu1 %v5547_v48 }
0x1517   :  { %4968 = vmatmul.mubr.msk.f32.vlgmr.msra.gmra.mrb[70].mxu1 %vm515_vm10, %v3004_v18 }
0x1518   :  { %4970 = vmatprep.mubr.msk.f32.mxu1 %vm5546_vm5, %v5547_v48 }
0x151b   :  { %4971 = vmatmul.mubr.msk.f32.gmra.mrb[72].mxu1 %vm515_vm10, %v3006_v2 }
0x151c   :  { %4973 = vmatprep.mubr.msk.f32.mxu1 %vm5546_vm5, %v5547_v48 }
0x151f   :  { %4974 = vmatmul.mubr.msk.f32.gmra.mrb[74].mxu1 %vm515_vm10, %v3008_v20 }
0x1520   :  { %4993 = vmatprep.mubr.msk.f32.mxu1 %vm5546_vm5, %v5547_v48 }
0x15d2   :  { %v2989_v5 = vpop.f32.mrb[62].mxu0 }
0x15d3   :  { %v4954_v6 = vpop.f32.mrb[63].mxu0 }
0x15d6   :  { %v2994_v31 = vpop.f32.mrb[64].mxu0 }
0x15d7   :  { %v4957_v7 = vpop.f32.mrb[65].mxu0 }
0x15da   :  { %v2999_v21 = vpop.f32.mrb[66].mxu0 }
0x15db   :  { %v4960_v60 = vpop.f32.mrb[67].mxu0 }
0x15de   :  { %v2900_v9 = vpop.f32.mrb[64].mxu1 }
0x15df   :  { %v6200_v12 = vadd.f32 %v2989_v5, %v2900_v9  ;;  %v4943_v8 = vpop.f32.mrb[65].mxu1 }
0x15e2   :  { %v2905_v10 = vpop.f32.mrb[66].mxu1 }
0x15e3   :  { %v6202_v11 = vadd.f32 %v2994_v31, %v2905_v10  ;;  %v4946_v22 = vpop.f32.mrb[67].mxu1 }
0x15e6   :  { %v2910_v13 = vpop.f32.mrb[68].mxu1 }
0x15e7   :  { %v6204_v25 = vadd.f32 %v2999_v21, %v2910_v13  ;;  %v4949_v57 = vpop.f32.mrb[69].mxu1 }
0x15ea   :  { %v3093_v16 = vpop.f32.mrb[70].mxu1 }
0x15eb   :  { %v3107_v19 = vmul.f32 0.35355338, %v3093_v16  ;;  %v4969_v23 = vpop.f32.mrb[71].mxu1 }
0x15ed   :  { %v3110_v26 = vadd.f32 %v3107_v19, %v5742_v59  ;;  %v3245_v19 = vld [vmem:[#allocation5 + $0x138] sm:$0xff] }
0x15ee   :  { %v3098_v34 = vpop.f32.mrb[72].mxu1  ;;  %4992 = vmatpush3.msra.mxu1 %v3245_v19 }
0x15ef   :  { %v3108_v36 = vmul.f32 0.35355338, %v3098_v34  ;;  %v4972_v27 = vpop.f32.mrb[73].mxu1  ;;  %v3113_v28 = vsel %vm614_vm13, %v3110_v26, -inf  ;;  %5190 = vmatprep.subr.bf16.mxu1 %v5545_v45 }
0x15f0   :  { %3114 = vmax.xlane.f32.xlu0 %v3113_v28 }
0x15f1   :  { %v3111_v14 = vadd.f32 %v3108_v36, %v5747_v0 }
0x15f2   :  { %v3103_v30 = vpop.f32.mrb[74].mxu1 }
0x15f3   :  { %v3109_v35 = vmul.f32 0.35355338, %v3103_v30  ;;  %v4975_v39 = vpop.f32.mrb[75].mxu1  ;;  %v3116_v40 = vsel %vm614_vm13, %v3111_v14, -inf }
0x15f4   :  { %3117 = vmax.xlane.f32.xlu1 %v3116_v40 }
0x15f5   :  { %v3112_v41 = vadd.f32 %v3109_v35, %v5753_v3 }
0x15f7   :  { %v3119_v38 = vsel %vm621_vm14, %v3112_v41, -inf }
0x15f8   :  { %3120 = vmax.xlane.f32.xlu0 %v3119_v38 }
0x1605   :  { %5310 = vrot.lane.b32.xlu1 %v6057_v33, %s5556_s24 }
0x1609   :  { %5315 = vrot.lane.b32.xlu1 %v6057_v33, %s5557_s27 }
0x167d   :  { %v3115_v44 = vpop.xlane.xlu0 %3114 }
0x167e   :  { %v3122_v46 = vsub.f32 %v3110_v26, %v3115_v44 }
0x1680   :  { %v3125_v49 = vmul.f32 1.442695, %v3122_v46 }
0x1681   :  { %v3118_v50 = vpop.xlane.xlu1 %3117 }
0x1682   :  { %5422 = vpow2.f32 %v3125_v49  ;;  %v3123_v51 = vsub.f32 %v3111_v14, %v3118_v50 }
0x1684   :  { %v3127_v52 = vmul.f32 1.442695, %v3123_v51 }
0x1685   :  { %v5311_v43 = vpop.permute.xlu1 %5310  ;;  %v3121_v17 = vpop.xlane.xlu0 %3120 }
0x1686   :  { %5424 = vpow2.f32 %v3127_v52  ;;  %v5313_v53 = vunpack.i.h.bf16 %v5311_v43  ;;  %v5312_v54 = vunpack.i.l.bf16 %v5311_v43  ;;  %v3124_v63 = vsub.f32 %v3112_v41, %v3121_v17 }
0x1688   :  { %v5184_v55 = vpack.c.bf16 %v5313_v53, %v5312_v54  ;;  %v3129_v1 = vmul.f32 1.442695, %v3124_v63 }
0x1689   :  { %v5316_v20 = vpop.permute.xlu1 %5315 }
0x168a   :  { %5185 = vmatpush3.bf16.msra.mxu0 %v5184_v55  ;;  %5426 = vpow2.f32 %v3129_v1  ;;  %v5317_v7 = vunpack.i.l.bf16 %v5316_v20 }
0x168b   :  { %4980 = vmatprep.subr.mxu0 %v5547_v48 }
0x168c   :  { %v5423_v56 = vpop.eup %5422 }
0x168d   :  { %v3131_v58 = vsel %vm614_vm13, %v5423_v56, 0.0 }
0x168e   :  { %3132 = vadd.xlane.f32.xlu0 %v3131_v58 }
0x1690   :  { %v5425_v47 = vpop.eup %5424 }
0x1691   :  { %v3134_v61 = vsel %vm614_vm13, %v5425_v47, 0.0 }
0x1692   :  { %3135 = vadd.xlane.f32.xlu1 %v3134_v61 }
0x1694   :  { %v5427_v18 = vpop.eup %5426 }
0x1695   :  { %v3137_v2 = vsel %vm621_vm14, %v5427_v18, 0.0 }
0x16a3   :  { %3348 = vrot.lane.b32.xlu1 %v6061_v37, %s5557_s27 }
0x16a4   :  { %3150 = vrot.lane.b32.xlu0 %v6061_v37, %s5556_s24 }
0x16a7   :  { %3340 = vrot.lane.b32.xlu1 %v6053_v4, %s5558_s28  ;;  %v5318_v4 = vunpack.i.h.bf16 %v5316_v20 }
0x16a9   :  { %v5187_v9 = vpack.c.bf16 %v5318_v4, %v5317_v7 }
0x16c3   :  { %3138 = vadd.xlane.f32.xlu0 %v3137_v2 }
0x16d9   :  { %3338 = vrot.lane.b32.xlu0 %v6051_v29, %s5558_s28 }
0x171b   :  { %v3133_v5 = vpop.xlane.xlu0 %3132 }
0x171c   :  { %5428 = vrcp.f32 %v3133_v5 }
0x171f   :  { %v3136_v6 = vpop.xlane.xlu1 %3135  ;;  %v3151_v31 = vpop.permute.xlu0 %3150 }
0x1720   :  { %5430 = vrcp.f32 %v3136_v6  ;;  %4981 = vmatpush3.msk.msra.mxu0 %vm666_vm15, %v3151_v31 }
0x1721   :  { %5186 = vmatprep.subr.bf16.mxu0 %v5545_v45 }
0x1723   :  { %v3349_v10 = vpop.permute.xlu1 %3348 }
0x1726   :  { %v5429_v21 = vpop.eup %5428 }
0x1727   :  { %v3143_v60 = vmul.f32 %v5429_v21, %v5423_v56  ;;  %v3341_v16 = vpop.permute.xlu1 %3340 }
0x1729   :  { %4983 = vmatmul.mubr.msk.f32.vlgmr.msra.gmra.mrb[68].mxu0 %vm614_vm13, %v3143_v60 }
0x172a   :  { %v5431_v8 = vpop.eup %5430  ;;  %5189 = vmatpush3.bf16.xpose.msk.msra.mxu0 %vm5704_vm11, %v5187_v9  ;;  %4985 = vmatprep.mubr.msk.f32.mxu0 %vm5546_vm5, %v5547_v48 }
0x172b   :  { %v3144_v29 = vmul.f32 %v5431_v8, %v5425_v47  ;;  %5006 = vmatprep.subr.mxu0 %v5547_v48 }
0x172d   :  { %4986 = vmatmul.mubr.msk.f32.gmra.mrb[70].mxu0 %vm614_vm13, %v3144_v29 }
0x172e   :  { %4988 = vmatprep.mubr.msk.f32.mxu0 %vm5546_vm5, %v5547_v48 }
0x1732   :  { %5007 = vmatpush3.xpose.msk.msra.mxu0 %vm515_vm10, %v3349_v10 }
0x1733   :  { %5032 = vmatprep.subr.mxu0 %v5547_v48 }
0x1750   :  { %v3139_v22 = vpop.xlane.xlu0 %3138 }
0x1751   :  { %5432 = vrcp.f32 %v3139_v22 }
0x1754   :  { %v3339_v57 = vpop.permute.xlu0 %3338 }
0x175b   :  { %v5433_v42 = vpop.eup %5432 }
0x175c   :  { %v3145_v13 = vmul.f32 %v5433_v42, %v5427_v18  ;;  %v3580_v42 = vld [vmem:[#allocation5 + $0x140] sm:$0xff] }
0x175e   :  { %4989 = vmatmul.mubr.msk.f32.gmra.mrb[72].mxu0 %vm614_vm13, %v3145_v13 }
0x175f   :  { %5008 = vmatprep.mubr.msk.f32.mxu0 %vm5546_vm5, %v5547_v48 }
0x1762   :  { %5009 = vmatmul.mubr.msk.f32.vlgmr.msra.gmra.mrb[74].mxu0 %vm515_vm10, %v3339_v57 }
0x1763   :  { %5011 = vmatprep.mubr.msk.f32.mxu0 %vm5546_vm5, %v5547_v48  ;;  %5033 = vmatpush3.msra.mxu0 %v3580_v42 }
0x1764   :  { %5199 = vmatprep.subr.bf16.mxu0 %v5545_v45 }
0x1766   :  { %5012 = vmatmul.mubr.msk.f32.gmra.mrb[76].mxu0 %vm515_vm10, %v3341_v16 }
0x1767   :  { %5014 = vmatprep.mubr.msk.f32.mxu0 %vm5546_vm5, %v5547_v48 }
0x17fc   :  { %v3231_v23 = vpop.f32.mrb[68].mxu0 }
0x17fd   :  { %v4984_v26 = vpop.f32.mrb[69].mxu0  ;;  %4994 = vmatmul.mubr.msk.f32.vlgmr.msra.gmra.mrb[76].mxu1 %vm515_vm10, %v3231_v23 }
0x17fe   :  { %4996 = vmatprep.mubr.msk.f32.mxu1 %vm5546_vm5, %v5547_v48 }
0x1800   :  { %v3236_v34 = vpop.f32.mrb[70].mxu0 }
0x1801   :  { %v4987_v36 = vpop.f32.mrb[71].mxu0  ;;  %4997 = vmatmul.mubr.msk.f32.gmra.mrb[78].mxu1 %vm515_vm10, %v3236_v34 }
0x1802   :  { %4999 = vmatprep.mubr.msk.f32.mxu1 %vm5546_vm5, %v5547_v48 }
0x1831   :  { %v3241_v27 = vpop.f32.mrb[72].mxu0 }
0x1832   :  { %v4990_v28 = vpop.f32.mrb[73].mxu0  ;;  %5000 = vmatmul.mubr.msk.f32.gmra.mrb[80].mxu1 %vm515_vm10, %v3241_v27 }
0x1833   :  { %5023 = vmatprep.mubr.msk.f32.mxu1 %vm5546_vm5, %v5547_v48  ;;  %v6298_v28 = vld [vmem:[#allocation2 + $0x12] ss:$0 sm:$0xff] }
0x1835   :  { %v3428_v14 = vpop.f32.mrb[74].mxu0 }
0x1836   :  { %v3442_v30 = vmul.f32 0.35355338, %v3428_v14  ;;  %v5010_v35 = vpop.f32.mrb[75].mxu0 }
0x1838   :  { %v3445_v39 = vadd.f32 %v3442_v30, %v5742_v59 }
0x1839   :  { %v3433_v40 = vpop.f32.mrb[76].mxu0 }
0x183a   :  { %v3443_v41 = vmul.f32 0.35355338, %v3433_v40  ;;  %v5013_v38 = vpop.f32.mrb[77].mxu0  ;;  %v3448_v44 = vsel %vm614_vm13, %v3445_v39, -inf }
0x183b   :  { %3449 = vmax.xlane.f32.xlu0 %v3448_v44 }
0x183c   :  { %v3446_v46 = vadd.f32 %v3443_v41, %v5747_v0 }
0x183e   :  { %v3451_v49 = vsel %vm614_vm13, %v3446_v46, -inf }
0x183f   :  { %3452 = vmax.xlane.f32.xlu1 %v3451_v49 }
0x1850   :  { %5320 = vrot.lane.b32.xlu1 %v6057_v33, %s5559_s29 }
0x1854   :  { %3342 = vrot.lane.b32.xlu1 %v6061_v37, %s5558_s28 }
0x18c8   :  { %v3450_v50 = vpop.xlane.xlu0 %3449 }
0x18c9   :  { %v3457_v51 = vsub.f32 %v3445_v39, %v3450_v50 }
0x18cb   :  { %v3460_v59 = vmul.f32 1.442695, %v3457_v51 }
0x18cc   :  { %v3453_v52 = vpop.xlane.xlu1 %3452 }
0x18cd   :  { %5434 = vpow2.f32 %v3460_v59  ;;  %v3458_v43 = vsub.f32 %v3446_v46, %v3453_v52 }
0x18cf   :  { %v3462_v53 = vmul.f32 1.442695, %v3458_v43 }
0x18d0   :  { %v5321_v54 = vpop.permute.xlu1 %5320  ;;  %v3321_v55 = vpop.f32.mrb[76].mxu1 }
0x18d1   :  { %5436 = vpow2.f32 %v3462_v53  ;;  %v5323_v0 = vunpack.i.h.bf16 %v5321_v54  ;;  %v5322_v56 = vunpack.i.l.bf16 %v5321_v54  ;;  %v3335_v58 = vadd.f32 %v3321_v55, %v6200_v12  ;;  %v4995_v47 = vpop.f32.mrb[77].mxu1 }
0x18d3   :  { %v5191_v61 = vpack.c.bf16 %v5323_v0, %v5322_v56 }
0x18d4   :  { %v3343_v33 = vpop.permute.xlu1 %3342  ;;  %v3326_v17 = vpop.f32.mrb[78].mxu1 }
0x18d5   :  { %v3336_v63 = vadd.f32 %v3326_v17, %v6202_v11  ;;  %v4998_v1 = vpop.f32.mrb[79].mxu1  ;;  %5015 = vmatmul.mubr.msk.f32.gmra.mrb[78].mxu0 %vm515_vm10, %v3343_v33  ;;  %5192 = vmatpush3.bf16.msra.mxu1 %v5191_v61  ;;  %v3739_v61 = vld [vmem:[#allocation5 + $0x148] sm:$0xff]  ;;  %v3740_v33 = vld [vmem:[#allocation5 + $0x150] sm:$0xff] }
0x18d6   :  { %5021 = vmatprep.subr.mxu1 %v5547_v48  ;;  %5034 = vmatprep.mubr.msk.f32.mxu0 %vm5546_vm5, %v5547_v48  ;;  %v5194_v17 = vpack.c.bf16 %v3740_v33, %v3739_v61  ;;  %v3742_v1 = vld [vmem:[#allocation5 + $0x160] sm:$0xff] }
0x18d7   :  { %v5435_v18 = vpop.eup %5434 }
0x18d8   :  { %v3466_v2 = vsel %vm614_vm13, %v5435_v18, 0.0 }
0x18d9   :  { %3467 = vadd.xlane.f32.xlu0 %v3466_v2 }
0x18db   :  { %v5437_v12 = vpop.eup %5436 }
0x18dc   :  { %v3469_v20 = vsel %vm614_vm13, %v5437_v12, 0.0 }
0x18dd   :  { %3470 = vadd.xlane.f32.xlu0 %v3469_v20 }
0x18f3   :  { %3485 = vrot.lane.b32.xlu0 %v6061_v37, %s5559_s29 }
0x1905   :  { %v3331_v11 = vpop.f32.mrb[80].mxu1 }
0x1906   :  { %v6279_v5 = vadd.f32 %v3331_v11, %v6204_v25  ;;  %v5001_v6 = vpop.f32.mrb[81].mxu1 }
0x1966   :  { %v3468_v31 = vpop.xlane.xlu0 %3467 }
0x1967   :  { %5438 = vrcp.f32 %v3468_v31 }
0x196a   :  { %v3471_v4 = vpop.xlane.xlu0 %3470 }
0x196b   :  { %5440 = vrcp.f32 %v3471_v4 }
0x196e   :  { %v3486_v7 = vpop.permute.xlu0 %3485 }
0x196f   :  { %5022 = vmatpush3.msk.msra.mxu1 %vm666_vm15, %v3486_v7  ;;  %v6313_v7 = vld [vmem:[#allocation2 + $0x13] ss:$0 sm:$0xff] }
0x1970   :  { %5193 = vmatprep.subr.bf16.mxu1 %v5545_v45 }
0x1971   :  { %v5439_v21 = vpop.eup %5438 }
0x1972   :  { %v3478_v60 = vmul.f32 %v5439_v21, %v5435_v18 }
0x1974   :  { %5024 = vmatmul.mubr.msk.f32.vlgmr.msra.gmra.mrb[82].mxu1 %vm614_vm13, %v3478_v60  ;;  %v6315_v60 = vld [vmem:[#allocation2 + $0x14] ss:$0 sm:$0xff] }
0x1975   :  { %v5441_v9 = vpop.eup %5440  ;;  %5026 = vmatprep.mubr.msk.f32.mxu1 %vm5546_vm5, %v5547_v48  ;;  %5195 = vmatpush3.bf16.msra.mxu1 %v5194_v17 }
0x1976   :  { %v3479_v37 = vmul.f32 %v5441_v9, %v5437_v12  ;;  %5196 = vmatprep.subr.bf16.mxu1 %v5545_v45 }
0x1978   :  { %5027 = vmatmul.mubr.msk.f32.gmra.mrb[84].mxu1 %vm614_vm13, %v3479_v37 }
0x1979   :  { %5029 = vmatprep.mubr.msk.f32.mxu1 %vm5546_vm5, %v5547_v48 }
0x19a8   :  { %v3438_v25 = vpop.f32.mrb[78].mxu0 }
0x19a9   :  { %v3444_v8 = vmul.f32 0.35355338, %v3438_v25  ;;  %v5016_v29 = vpop.f32.mrb[79].mxu0 }
0x19ab   :  { %v3447_v10 = vadd.f32 %v3444_v8, %v5753_v3 }
0x19ad   :  { %v3454_v22 = vsel %vm621_vm14, %v3447_v10, -inf }
0x19ae   :  { %3455 = vmax.xlane.f32.xlu1 %v3454_v22 }
0x1a3b   :  { %v3456_v3 = vpop.xlane.xlu1 %3455 }
0x1a3c   :  { %v3459_v23 = vsub.f32 %v3447_v10, %v3456_v3  ;;  %v3921_v3 = vld [vmem:[#allocation5 + $0x180] sm:$0xff] }
0x1a3e   :  { %v3464_v26 = vmul.f32 1.442695, %v3459_v23 }
0x1a40   :  { %5442 = vpow2.f32 %v3464_v26  ;;  %v6337_v26 = vld [vmem:[#allocation2 + $0x15] ss:$0 sm:$0xff] }
0x1a47   :  { %v3566_v13 = vpop.f32.mrb[82].mxu1 }
0x1a48   :  { %v5025_v57 = vpop.f32.mrb[83].mxu1  ;;  %5035 = vmatmul.mubr.msk.f32.vlgmr.msra.gmra.mrb[80].mxu0 %vm515_vm10, %v3566_v13  ;;  %v3918_v13 = vld [vmem:[#allocation5 + $0x168] sm:$0xff] }
0x1a49   :  { %5037 = vmatprep.mubr.msk.f32.mxu0 %vm5546_vm5, %v5547_v48  ;;  %v3919_v57 = vld [vmem:[#allocation5 + $0x170] sm:$0xff] }
0x1a4a   :  { %v5443_v49 = vpop.eup %5442 }
0x1a4b   :  { %v3571_v16 = vpop.f32.mrb[84].mxu1  ;;  %v3472_v50 = vsel %vm621_vm14, %v5443_v49, 0.0 }
0x1a4c   :  { %v5028_v19 = vpop.f32.mrb[85].mxu1  ;;  %5038 = vmatmul.mubr.msk.f32.gmra.mrb[82].mxu0 %vm515_vm10, %v3571_v16  ;;  %v5200_v16 = vpack.c.bf16 %v3919_v57, %v3918_v13 }
0x1a4d   :  { %5040 = vmatprep.mubr.msk.f32.mxu0 %vm5546_vm5, %v5547_v48  ;;  %v3920_v19 = vld [vmem:[#allocation5 + $0x178] sm:$0xff] }
0x1a4e   :  { %5201 = vmatpush3.bf16.msra.mxu0 %v5200_v16  ;;  %v5203_v23 = vpack.c.bf16 %v3921_v3, %v3920_v19 }
0x1a4f   :  { %5202 = vmatprep.subr.bf16.mxu0 %v5545_v45 }
0x1a52   :  { %5204 = vmatpush3.bf16.msra.mxu0 %v5203_v23 }
0x1b1b   :  { %v3656_v34 = vpop.f32.mrb[80].mxu0 }
0x1b1c   :  { %v3670_v36 = vadd.f32 %v3656_v34, %v3335_v58  ;;  %v5036_v27 = vpop.f32.mrb[81].mxu0 }
0x1b1e   :  { %v3673_v14 = vadd.f32 %v3670_v36, %v6033_v15 }
0x1b1f   :  { %v3661_v30 = vpop.f32.mrb[82].mxu0 }
0x1b20   :  { %v3671_v35 = vadd.f32 %v3661_v30, %v3336_v63  ;;  %v5039_v39 = vpop.f32.mrb[83].mxu0  ;;  %v3681_v40 = vadd.f32 %v6298_v28, %v3673_v14  ;;  %v3741_v63 = vld [vmem:[#allocation5 + $0x158] sm:$0xff] }
0x1b21   :  { %v5197_v18 = vpack.c.bf16 %v3742_v1, %v3741_v63 }
0x1b22   :  { %v3674_v41 = vadd.f32 %v3671_v35, %v6039_v62  ;;  %v3686_v38 = vsel %vm175_vm7, %v3681_v40, 0.0 }
0x1b23   :  { %3687 = vadd.xlane.f32.xlu0 %v3686_v38  ;;  %5198 = vmatpush3.bf16.msra.mxu1 %v5197_v18 }
0x1b24   :  { %v3682_v44 = vadd.f32 %v6298_v28, %v3674_v41 }
0x1b26   :  { %v3689_v46 = vsel %vm175_vm7, %v3682_v44, 0.0 }
0x1b27   :  { %3690 = vadd.xlane.f32.xlu0 %v3689_v46 }
0x1b2b   :  { %3473 = vadd.xlane.f32.xlu0 %v3472_v50 }
0x1bb0   :  { %v3688_v15 = vpop.xlane.xlu0 %3687 }
0x1bb1   :  { %v3695_v51 = vmul.f32 0.03125, %v3688_v15 }
0x1bb3   :  { %v3698_v59 = vsub.f32 %v3681_v40, %v3695_v51 }
0x1bb4   :  { %v3691_v52 = vpop.xlane.xlu0 %3690 }
0x1bb5   :  { %v3696_v43 = vmul.f32 0.03125, %v3691_v52  ;;  %v3701_v53 = vmul.f32 %v3698_v59, %v3698_v59 }
0x1bb7   :  { %v3699_v54 = vsub.f32 %v3682_v44, %v3696_v43  ;;  %v3704_v62 = vsel %vm175_vm7, %v3701_v53, 0.0 }
0x1bb8   :  { %3705 = vadd.xlane.f32.xlu1 %v3704_v62  ;;  %v3474_v55 = vpop.xlane.xlu0 %3473 }
0x1bb9   :  { %5444 = vrcp.f32 %v3474_v55  ;;  %v3702_v0 = vmul.f32 %v3699_v54, %v3699_v54 }
0x1bbb   :  { %v3707_v56 = vsel %vm175_vm7, %v3702_v0, 0.0 }
0x1bbc   :  { %3708 = vadd.xlane.f32.xlu1 %v3707_v56 }
0x1bc3   :  { %v5445_v58 = vpop.eup %5444 }
0x1bc4   :  { %v3480_v47 = vmul.f32 %v5445_v58, %v5443_v49 }
0x1bc6   :  { %5030 = vmatmul.mubr.msk.f32.gmra.mrb[86].mxu1 %vm614_vm13, %v3480_v47 }
0x1bc7   :  { %5051 = vmatprep.mubr.msk.f32.mxu1 %vm5546_vm5, %v5547_v48 }
0x1c45   :  { %v3706_v2 = vpop.xlane.xlu1 %3705 }
0x1c46   :  { %v3713_v12 = vmul.f32 0.03125, %v3706_v2 }
0x1c48   :  { %v3716_v20 = vadd.f32 1e-05, %v3713_v12 }
0x1c49   :  { %v3709_v11 = vpop.xlane.xlu1 %3708 }
0x1c4a   :  { %5446 = vrsqrt.f32 %v3716_v20  ;;  %v3714_v6 = vmul.f32 0.03125, %v3709_v11 }
0x1c4c   :  { %v3717_v31 = vadd.f32 1e-05, %v3714_v6 }
0x1c4e   :  { %5448 = vrsqrt.f32 %v3717_v31 }
0x1c54   :  { %v5447_v4 = vpop.eup %5446 }
0x1c55   :  { %v3722_v21 = vmul.f32 %v5447_v4, %v3698_v59 }
0x1c57   :  { %v3729_v9 = vmul.f32 %v6313_v7, %v3722_v21 }
0x1c58   :  { %v5449_v37 = vpop.eup %5448 }
0x1c59   :  { %v6319_v25 = vadd.f32 %v6315_v60, %v3729_v9  ;;  %v3723_v8 = vmul.f32 %v5449_v37, %v3699_v54 }
0x1c5b   :  { %5052 = vmatmul.mubr.msk.f32.vlgmr.msra.gmra.mrb[88].mxu1 %vm175_vm7, %v6319_v25  ;;  %v3730_v29 = vmul.f32 %v6313_v7, %v3723_v8 }
0x1c5c   :  { %5054 = vmatprep.mubr.msk.f32.mxu1 %vm5546_vm5, %v5547_v48 }
0x1c5d   :  { %v6327_v10 = vadd.f32 %v6315_v60, %v3730_v29 }
0x1c5f   :  { %5055 = vmatmul.mubr.msk.f32.gmra.mrb[90].mxu1 %vm175_vm7, %v6327_v10 }
0x1c60   :  { %5057 = vmatprep.mubr.msk.f32.mxu1 %vm5546_vm5, %v5547_v48 }
0x1c99   :  { %v3576_v22 = vpop.f32.mrb[86].mxu1 }
0x1c9a   :  { %v5031_v42 = vpop.f32.mrb[87].mxu1  ;;  %5041 = vmatmul.mubr.msk.f32.gmra.mrb[84].mxu0 %vm515_vm10, %v3576_v22 }
0x1c9b   :  { %5068 = vmatprep.mubr.msk.f32.mxu0 %vm5546_vm5, %v5547_v48 }
0x1d2e   :  { %v3823_v34 = vpop.f32.mrb[88].mxu1 }
0x1d2f   :  { %v3824_v36 = vadd.f32 %v6337_v26, %v3823_v34  ;;  %v5053_v27 = vpop.f32.mrb[89].mxu1 }
0x1d31   :  { %v3840_v14 = vmul.f32 0.70710677, %v3824_v36  ;;  %v3837_v42 = vmul.f32 0.5, %v3824_v36 }
0x1d32   :  { %v3828_v30 = vpop.f32.mrb[90].mxu1 }
0x1d33   :  { %v3849_v35 = vand.u32 2147483647, %v3840_v14  ;;  %v3829_v39 = vadd.f32 %v6337_v26, %v3828_v30  ;;  %v5056_v40 = vpop.f32.mrb[91].mxu1  ;;  %vm3843_vm4 = vcmp.ge.f32.partialorder %v3840_v14, 0.0 }
0x1d34   :  { %v3846_v8 = vsel %vm3843_vm4, 1.0, %v5560_v32 }
0x1d35   :  { %v3852_v41 = vmul.f32 0.3275911, %v3849_v35  ;;  %v3841_v38 = vmul.f32 0.70710677, %v3829_v39  ;;  %v3891_v50 = vsub.f32 0.0, %v3849_v35  ;;  %v3838_v23 = vmul.f32 0.5, %v3829_v39 }
0x1d37   :  { %v3855_v44 = vadd.f32 1.0, %v3852_v41  ;;  %v3850_v45 = vand.u32 2147483647, %v3841_v38  ;;  %v3894_v51 = vmul.f32 %v3891_v50, %v3849_v35  ;;  %vm3844_vm6 = vcmp.ge.f32.partialorder %v3841_v38, 0.0 }
0x1d38   :  { %v3847_v16 = vsel %vm3844_vm6, 1.0, %v5560_v32 }
0x1d39   :  { %5450 = vrcp.f32 %v3855_v44  ;;  %v3853_v46 = vmul.f32 0.3275911, %v3850_v45  ;;  %v3892_v59 = vsub.f32 0.0, %v3850_v45  ;;  %v3897_v54 = vmul.f32 1.442695, %v3894_v51 }
0x1d3a   :  { %v4412_v44 = vld [vmem:[#allocation2 + $0x16] ss:$0 sm:$0xff] }
0x1d3b   :  { %v3856_v49 = vadd.f32 1.0, %v3853_v46  ;;  %v3895_v62 = vmul.f32 %v3892_v59, %v3850_v45 }
0x1d3d   :  { %5452 = vrcp.f32 %v3856_v49  ;;  %v3899_v47 = vmul.f32 1.442695, %v3895_v62 }
0x1d3e   :  { %5454 = vpow2.f32 %v3897_v54 }
0x1d3f   :  { %5456 = vpow2.f32 %v3899_v47 }
0x1d43   :  { %v5451_v15 = vpop.eup %5450 }
0x1d44   :  { %v3864_v52 = vmul.f32 1.0614054, %v5451_v15 }
0x1d46   :  { %v3867_v43 = vadd.f32 -1.4531521, %v3864_v52 }
0x1d47   :  { %v5453_v53 = vpop.eup %5452 }
0x1d48   :  { %v3870_v55 = vmul.f32 %v5451_v15, %v3867_v43  ;;  %v3865_v0 = vmul.f32 1.0614054, %v5453_v53  ;;  %v5455_v6 = vpop.eup %5454 }
0x1d49   :  { %v5457_v37 = vpop.eup %5456 }
0x1d4a   :  { %v3873_v56 = vadd.f32 1.4214138, %v3870_v55  ;;  %v3868_v58 = vadd.f32 -1.4531521, %v3865_v0 }
0x1d4c   :  { %v3876_v61 = vmul.f32 %v5451_v15, %v3873_v56  ;;  %v3871_v33 = vmul.f32 %v5453_v53, %v3868_v58 }
0x1d4e   :  { %v3879_v17 = vadd.f32 -0.28449672, %v3876_v61  ;;  %v3874_v63 = vadd.f32 1.4214138, %v3871_v33 }
0x1d50   :  { %v3882_v1 = vmul.f32 %v5451_v15, %v3879_v17  ;;  %v3877_v18 = vmul.f32 %v5453_v53, %v3874_v63 }
0x1d52   :  { %v3885_v2 = vadd.f32 0.2548296, %v3882_v1  ;;  %v3880_v12 = vadd.f32 -0.28449672, %v3877_v18 }
0x1d54   :  { %v3888_v20 = vmul.f32 %v5451_v15, %v3885_v2  ;;  %v3883_v11 = vmul.f32 %v5453_v53, %v3880_v12  ;;  %v4057_v12 = vld [vmem:[#allocation5 + $0x48] sm:$0xff] }
0x1d56   :  { %v3903_v31 = vmul.f32 %v5455_v6, %v3888_v20  ;;  %v3886_v4 = vadd.f32 0.2548296, %v3883_v11  ;;  %v4058_v20 = vld [vmem:[#allocation5 + $0x50] sm:$0xff]  ;;  %v4059_v6 = vld [vmem:[#allocation5 + $0x58] sm:$0xff] }
0x1d57   :  { %v5205_v11 = vpack.c.bf16 %v4058_v20, %v4057_v12 }
0x1d58   :  { %v3906_v21 = vsub.f32 1.0, %v3903_v31  ;;  %v3889_v9 = vmul.f32 %v5453_v53, %v3886_v4  ;;  %v4060_v31 = vld [vmem:[#allocation5 + $0x60] sm:$0xff] }
0x1d59   :  { %5206 = vmatprep.subr.bf16.mxu1 %v5205_v11  ;;  %v5209_v4 = vpack.c.bf16 %v4060_v31, %v4059_v6  ;;  %v4421_v6 = vld [vmem:[#allocation2 + $0x8] ss:$0 sm:$0xff] }
0x1d5a   :  { %v3909_v29 = vmul.f32 %v3906_v21, %v3846_v8  ;;  %v3904_v22 = vmul.f32 %v5457_v37, %v3889_v9  ;;  %5208 = vmatpush3.bf16.msra.mxu1 %v5205_v11 }
0x1d5b   :  { %5210 = vmatprep.subr.bf16.mxu1 %v5209_v4 }
0x1d5c   :  { %v3912_v13 = vadd.f32 1.0, %v3909_v29  ;;  %v3907_v57 = vsub.f32 1.0, %v3904_v22  ;;  %v4416_v22 = vld [vmem:[#allocation2 + $0x17] ss:$0 sm:$0xff] }
0x1d5e   :  { %v3915_v19 = vmul.f32 %v3912_v13, %v3837_v42  ;;  %v3910_v3 = vmul.f32 %v3907_v57, %v3847_v16  ;;  %5212 = vmatpush3.bf16.msra.mxu1 %v5209_v4  ;;  %v4417_v13 = vld [vmem:[#allocation2 + $0x18] ss:$0 sm:$0xff] }
0x1d60   :  { %v3913_v34 = vadd.f32 1.0, %v3910_v3  ;;  %5069 = vmatmul.mubr.msk.f32.vlgmr.msra.gmra.mrb[86].mxu0 %vm175_vm7, %v3915_v19 }
0x1d61   :  { %5071 = vmatprep.mubr.msk.f32.mxu0 %vm5546_vm5, %v5547_v48 }
0x1d62   :  { %v3916_v27 = vmul.f32 %v3913_v34, %v3838_v23 }
0x1d64   :  { %5072 = vmatmul.mubr.msk.f32.gmra.mrb[88].mxu0 %vm175_vm7, %v3916_v27 }
0x1d65   :  { %5074 = vmatprep.mubr.msk.f32.mxu0 %vm5546_vm5, %v5547_v48 }
0x1d6d   :  { %v3666_v36 = vpop.f32.mrb[84].mxu0 }
0x1d6e   :  { %v3672_v14 = vadd.f32 %v3666_v36, %v6279_v5  ;;  %v5042_v30 = vpop.f32.mrb[85].mxu0 }
0x1d70   :  { %v3675_v35 = vadd.f32 %v3672_v14, %v6045_v24 }
0x1d72   :  { %v3683_v39 = vadd.f32 %v6298_v28, %v3675_v35 }
0x1d74   :  { %v3692_v40 = vsel %vm1860_vm0, %v3683_v39, 0.0 }
0x1d75   :  { %3693 = vadd.xlane.f32.xlu0 %v3692_v40 }
0x1e02   :  { %v3694_v41 = vpop.xlane.xlu0 %3693 }
0x1e03   :  { %v3697_v38 = vmul.f32 0.03125, %v3694_v41 }
0x1e05   :  { %v3700_v46 = vsub.f32 %v3683_v39, %v3697_v38  ;;  %v4153_v38 = vld [vmem:[#allocation5 + $0x68] sm:$0xff] }
0x1e07   :  { %v3703_v24 = vmul.f32 %v3700_v46, %v3700_v46 }
0x1e09   :  { %v3710_v52 = vsel %vm1860_vm0, %v3703_v24, 0.0 }
0x1e33   :  { %v4002_v45 = vpop.f32.mrb[86].mxu0 }
0x1e34   :  { %v4003_v49 = vadd.f32 %v4412_v44, %v4002_v45  ;;  %v5070_v50 = vpop.f32.mrb[87].mxu0 }
0x1e36   :  { %v4015_v48 = vadd.f32 %v4003_v49, %v6319_v25 }
0x1e37   :  { %v4007_v15 = vpop.f32.mrb[88].mxu0 }
0x1e38   :  { %v4008_v51 = vadd.f32 %v4412_v44, %v4007_v15  ;;  %v5073_v5 = vpop.f32.mrb[89].mxu0  ;;  %v4019_v59 = vsel %vm175_vm7, %v4015_v48, 0.0  ;;  %v4154_v44 = vld [vmem:[#allocation5 + $0x70] sm:$0xff]  ;;  %v4156_v15 = vld [vmem:[#allocation5 + $0x80] sm:$0xff] }
0x1e39   :  { %4020 = vadd.xlane.f32.xlu1 %v4019_v59  ;;  %v5213_v45 = vpack.c.bf16 %v4154_v44, %v4153_v38 }
0x1e3a   :  { %v4016_v28 = vadd.f32 %v4008_v51, %v6327_v10 }
0x1e3b   :  { %5214 = vmatprep.subr.bf16.mxu0 %v5213_v45 }
0x1e3c   :  { %v4022_v43 = vsel %vm175_vm7, %v4016_v28, 0.0  ;;  %5216 = vmatpush3.bf16.msra.mxu0 %v5213_v45 }
0x1e3d   :  { %3711 = vadd.xlane.f32.xlu1 %v3710_v52  ;;  %4023 = vadd.xlane.f32.xlu0 %v4022_v43 }
0x1ec6   :  { %v4021_v53 = vpop.xlane.xlu1 %4020 }
0x1ec7   :  { %v4025_v54 = vmul.f32 0.03125, %v4021_v53 }
0x1ec9   :  { %v4027_v62 = vsub.f32 %v4015_v48, %v4025_v54  ;;  %v4155_v48 = vld [vmem:[#allocation5 + $0x78] sm:$0xff] }
0x1eca   :  { %v3712_v55 = vpop.xlane.xlu1 %3711  ;;  %v4024_v25 = vpop.xlane.xlu0 %4023  ;;  %v5217_v5 = vpack.c.bf16 %v4156_v15, %v4155_v48 }
0x1ecb   :  { %v3715_v0 = vmul.f32 0.03125, %v3712_v55  ;;  %v4026_v56 = vmul.f32 0.03125, %v4024_v25  ;;  %v4029_v58 = vmul.f32 %v4027_v62, %v4027_v62 }
0x1ecc   :  { %5218 = vmatprep.subr.bf16.mxu0 %v5217_v5 }
0x1ecd   :  { %v3718_v47 = vadd.f32 1e-05, %v3715_v0  ;;  %v4028_v61 = vsub.f32 %v4016_v28, %v4026_v56  ;;  %v4031_v33 = vsel %vm175_vm7, %v4029_v58, 0.0  ;;  %5220 = vmatpush3.bf16.msra.mxu0 %v5217_v5 }
0x1ece   :  { %4032 = vadd.xlane.f32.xlu0 %v4031_v33  ;;  %v4418_v33 = vld [vmem:[#allocation2 + $0x7] ss:$0 sm:$0xff] }
0x1ecf   :  { %5458 = vrsqrt.f32 %v3718_v47  ;;  %v4030_v10 = vmul.f32 %v4028_v61, %v4028_v61 }
0x1ed1   :  { %v4034_v17 = vsel %vm175_vm7, %v4030_v10, 0.0 }
0x1ed2   :  { %4035 = vadd.xlane.f32.xlu1 %v4034_v17 }
0x1ed9   :  { %v5459_v63 = vpop.eup %5458 }
0x1eda   :  { %v3724_v1 = vmul.f32 %v5459_v63, %v3700_v46 }
0x1edc   :  { %v3731_v18 = vmul.f32 %v6313_v7, %v3724_v1 }
0x1ede   :  { %v3738_v2 = vadd.f32 %v6315_v60, %v3731_v18 }
0x1ee0   :  { %5058 = vmatmul.mubr.msk.f32.gmra.mrb[92].mxu1 %vm175_vm7, %v3738_v2 }
0x1f5b   :  { %v4033_v21 = vpop.xlane.xlu0 %4032 }
0x1f5c   :  { %v4037_v9 = vmul.f32 0.03125, %v4033_v21 }
0x1f5e   :  { %v4039_v37 = vadd.f32 1e-05, %v4037_v9 }
0x1f5f   :  { %v4036_v8 = vpop.xlane.xlu1 %4035 }
0x1f60   :  { %5460 = vrsqrt.f32 %v4039_v37  ;;  %v4038_v7 = vmul.f32 0.03125, %v4036_v8 }
0x1f62   :  { %v4040_v29 = vadd.f32 1e-05, %v4038_v7 }
0x1f64   :  { %5462 = vrsqrt.f32 %v4040_v29 }
0x1f6a   :  { %v5461_v60 = vpop.eup %5460 }
0x1f6b   :  { %v4043_v42 = vmul.f32 %v5461_v60, %v4027_v62 }
0x1f6d   :  { %v4049_v57 = vmul.f32 %v4416_v22, %v4043_v42 }
0x1f6e   :  { %v5463_v16 = vpop.eup %5462 }
0x1f6f   :  { %v4044_v19 = vmul.f32 %v5463_v16, %v4028_v61  ;;  %v4055_v3 = vadd.f32 %v4417_v13, %v4049_v57 }
0x1f71   :  { %v4050_v23 = vmul.f32 %v4416_v22, %v4044_v19  ;;  %5085 = vmatprep.mubr.msk.f32.mxu1 %vm175_vm7, %v4055_v3 }
0x1f73   :  { %v4056_v34 = vadd.f32 %v4417_v13, %v4050_v23 }
0x1f75   :  { %5086 = vmatmul.mubr.msk.f32.vlgmr.msra.gmra.mrb[94].mxu1 %vm175_vm7, %v4056_v34 }
0x1fb3   :  { %v3833_v27 = vpop.f32.mrb[92].mxu1 }
0x1fb4   :  { %v3834_v36 = vadd.f32 %v6337_v26, %v3833_v27  ;;  %v5059_v14 = vpop.f32.mrb[93].mxu1 }
0x1fb6   :  { %v3842_v30 = vmul.f32 0.70710677, %v3834_v36  ;;  %v3839_v58 = vmul.f32 0.5, %v3834_v36 }
0x1fb8   :  { %v3851_v35 = vand.u32 2147483647, %v3842_v30  ;;  %vm3845_vm5 = vcmp.ge.f32.partialorder %v3842_v30, 0.0 }
0x1fb9   :  { %v3848_v0 = vsel %vm3845_vm5, 1.0, %v5560_v32 }
0x1fba   :  { %v3854_v39 = vmul.f32 0.3275911, %v3851_v35  ;;  %v3893_v41 = vsub.f32 0.0, %v3851_v35 }
0x1fbc   :  { %v3857_v40 = vadd.f32 1.0, %v3854_v39  ;;  %v3896_v49 = vmul.f32 %v3893_v41, %v3851_v35 }
0x1fbe   :  { %5464 = vrcp.f32 %v3857_v40  ;;  %v3901_v26 = vmul.f32 1.442695, %v3896_v49 }
0x1fc0   :  { %5466 = vpow2.f32 %v3901_v26 }
0x1fc8   :  { %v5465_v46 = vpop.eup %5464 }
0x1fc9   :  { %v3866_v50 = vmul.f32 1.0614054, %v5465_v46 }
0x1fca   :  { %v5467_v62 = vpop.eup %5466 }
0x1fcb   :  { %v3869_v51 = vadd.f32 -1.4531521, %v3866_v50 }
0x1fcd   :  { %v3872_v59 = vmul.f32 %v5465_v46, %v3869_v51 }
0x1fcf   :  { %v3875_v24 = vadd.f32 1.4214138, %v3872_v59 }
0x1fd1   :  { %v3878_v28 = vmul.f32 %v5465_v46, %v3875_v24 }
0x1fd3   :  { %v3881_v52 = vadd.f32 -0.28449672, %v3878_v28 }
0x1fd5   :  { %v3884_v43 = vmul.f32 %v5465_v46, %v3881_v52 }
0x1fd7   :  { %v3887_v53 = vadd.f32 0.2548296, %v3884_v43 }
0x1fd9   :  { %v3890_v54 = vmul.f32 %v5465_v46, %v3887_v53 }
0x1fdb   :  { %v3905_v55 = vmul.f32 %v5467_v62, %v3890_v54 }
0x1fdd   :  { %v3908_v25 = vsub.f32 1.0, %v3905_v55 }
0x1fdf   :  { %v3911_v56 = vmul.f32 %v3908_v25, %v3848_v0 }
0x1fe1   :  { %v3914_v47 = vadd.f32 1.0, %v3911_v56 }
0x1fe3   :  { %v3917_v61 = vmul.f32 %v3914_v47, %v3839_v58 }
0x1fe5   :  { %5075 = vmatmul.mubr.msk.f32.gmra.mrb[90].mxu0 %vm175_vm7, %v3917_v61 }
0x2048   :  { %v5087_v10 = vpop.f32.mrb[94].mxu1 }
0x2049   :  { %v4144_v17 = vadd.f32 %v5087_v10, %v4418_v33  ;;  %v4138_v63 = vpop.f32.mrb[95].mxu1 }
0x204a   :  { %v4139_v1 = vadd.f32 %v4418_v33, %v4138_v63 }
0x204b   :  { %v4150_v18 = vmul.f32 0.01, %v4144_v17  ;;  %vm4148_vm8 = vcmp.ge.f32.partialorder %v4144_v17, 0.0 }
0x204c   :  { %vm4147_vm9 = vcmp.ge.f32.partialorder %v4139_v1, 0.0  ;;  %v4149_v2 = vmul.f32 0.01, %v4139_v1 }
0x204d   :  { %v4152_v20 = vsel %vm4148_vm8, %v4144_v17, %v4150_v18 }
0x204e   :  { %v4151_v12 = vsel %vm4147_vm9, %v4139_v1, %v4149_v2 }
0x204f   :  { %5096 = vmatprep.mubr.msk.f32.mxu0 %vm175_vm7, %v4151_v12 }
0x2050   :  { %5097 = vmatmul.mubr.msk.f32.vlgmr.msra.gmra.mrb[92].mxu0 %vm175_vm7, %v4152_v20 }
0x20b8   :  { %v4012_v32 = vpop.f32.mrb[90].mxu0 }
0x20b9   :  { %v5076_v11 = vpop.f32.mrb[91].mxu0 }
0x2123   :  { %v5098_v31 = vpop.f32.mrb[92].mxu0 }
0x2124   :  { %v4240_v4 = vadd.f32 %v5098_v31, %v4421_v6  ;;  %v4234_v21 = vpop.f32.mrb[93].mxu0 }
0x2125   :  { %v4235_v9 = vadd.f32 %v4421_v6, %v4234_v21 }
0x2126   :  { %4244 = vst [vmem:[#allocation7 + $0x8] sm:$0xff] %v4240_v4 }
0x2127   :  { %4243 = vst [vmem:[#allocation7] sm:$0xff] %v4235_v9 }
0x2128   :  { %5523 = shalt.err (!%p5520_p6)
}
0x2129   :  { %s5524_s9 = scalar_lea.hbm %s6389_s4, 256 }
0x212a   :  { %p5525_p7 = scmp.ne.s32.totalorder %s6389_s4, %s5524_s9  ;;  %p5528_p8 = scmp.lt.u32.totalorder %s5524_s9, %s6389_s4 }
0x212c   :  { %p5530_p9 = pnand %p5528_p8, %p5525_p7 }
0x212e   :  { %5533 = shalt.err (!%p5530_p9)
}
0x212f   :  { %4256 = dma.vmem_to_hbm [thread:$0]  %s4251_s5, 256, %s6389_s4, [#allocation4], %s5541_s25, %s5541_s25, %s5542_s26  }
0x2130   :  { %5538 = dma.done.wait [#allocation4], 256  }
0x2131   :  { %5539 = vsyncadd [#allocation4], 4294967040 }
0x2132   :  { %4260 = vsyncpa [#allocation3], 1 }
0x2133   :  { %4261 = vsyncpa [#allocation6], 1 }
0x2134   :  { %4262 = vsyncpa [#allocation4], 1 }

</bundles_post_ra>
